<compile_context>
chip_gen: v6e
topology: v6e:2x2x1
jax: 0.10.0
libtpu: 0.0.40
codegen_flags: <defaults>
</compile_context>

<pallas_src>
import numpy as np
import jax
import jax.numpy as jnp
from jax import lax
from jax.experimental import pallas as pl
from jax.experimental.pallas import tpu as pltpu


def pixelwise_net_pallas(v_vol, r_chw, params):
    """v_vol: [B, D, H, W] (PyTorch v with the singleton channel squeezed);
       r_chw: [B, Cr, H, W] (PyTorch layout).  Returns [B, 1, H, W] float32."""
    (a0, b0, w1, s1, b1, w2, b2,
     w3, s3, b3, w4, s4, b4, w5, s5, b5) = params

    f32 = jnp.float32
    bf16 = jnp.bfloat16
    B, D, H, W = v_vol.shape
    Cr = r_chw.shape[1]
    HW = H * W
    CIN3 = Cr + 8                 # conv3 input channels (r ++ vmax)
    BAND = 64                     # channel rows per slab band (>= max conv input channels)
    OFF0 = 2 * W                  # first interior pixel inside the padded pixel axis
    PPAD = HW + 4 * W             # flat padded pixel axis (2 halo rows top + bottom)
    TAPS = tuple((dy, dx) for dy in (-1, 0, 1) for dx in (-1, 0, 1))  # k = (dy+1)*3+(dx+1)

    # ---- pack all tiny params into one [80, 64] f32 buffer (one DMA instead of ~13) ----
    pk = jnp.zeros((80, 64), f32)
    for idx, vec in enumerate([a0, b0, s1, b1, b2, s3, b3, s4, b4, s5, b5]):
        pk = pk.at[:vec.shape[0], idx].set(vec.astype(f32))
    pk = pk.at[0:8, 16:32].set(w1.T.astype(f32))                   # w1^T  [8,16]
    pk = pk.at[0:8, 32:40].set(w2.T.astype(f32))                   # w2^T  [8,8]
    pk = pk.at[64:73, 0:64].set(w5.reshape(9, 64).astype(f32))     # conv5 tap matrix rows

    # ---- 3x3 conv weights as per-tap [cout, cin] bf16 matrices (tap k = ky*3+kx) ----
    w3t = jnp.transpose(w3.reshape(9, CIN3, 64), (0, 2, 1)).astype(bf16)   # [9,64,CIN3]
    w4t = jnp.transpose(w4.reshape(9, 64, 64), (0, 2, 1)).astype(bf16)     # [9,64,64]

    # bf16 inputs: half the HBM->VMEM bytes (v is the dominant traffic: D*HW per batch).
    v_in = v_vol.reshape(B, D, 1, HW).astype(bf16)
    r_in = r_chw.reshape(B, Cr, HW).astype(bf16)

    def kernel(v_ref, r_ref, pk_ref, w3_ref, w4_ref, out_ref,
               vmax_ref, slab_ref, z_ref):
        d = pl.program_id(1)

        # ---- per-depth 1x1x1 conv chain: only [*, HW]-sized values are ever live ----
        a0c = pk_ref[0:16, 0:1]
        b0c = pk_ref[0:16, 1:2]
        s1c = pk_ref[0:8, 2:3]
        b1c = pk_ref[0:8, 3:4]
        b2c = pk_ref[0:8, 4:5]
        w1t = pk_ref[0:8, 16:32]                                   # [8, 16]
        w2t = pk_ref[0:8, 32:40]                                   # [8, 8]

        vd = v_ref[...].astype(f32)                                # [1, HW]
        h0 = jnp.maximum(a0c * vd + b0c, 0.0)                      # [16, HW]
        h1 = jnp.dot(w1t, h0, preferred_element_type=f32)          # [8, HW]
        h1 = jnp.maximum(s1c * h1 + b1c, 0.0)
        h2 = jnp.dot(w2t, h1, preferred_element_type=f32) + b2c    # [8, HW]

        @pl.when(d == 0)
        def _():
            vmax_ref[...] = h2

        @pl.when(d != 0)
        def _():
            vmax_ref[...] = jnp.maximum(vmax_ref[...], h2)

        # ---- 2-D conv path: once per batch item, at the last depth step ----
        @pl.when(d == pl.num_programs(1) - 1)
        def _():
            s3c = pk_ref[0:64, 5:6]
            b3c = pk_ref[0:64, 6:7]
            s4c = pk_ref[0:64, 7:8]
            b4c = pk_ref[0:64, 8:9]
            s5c = pk_ref[0:1, 9:10]
            b5c = pk_ref[0:1, 10:11]
            w5m = pk_ref[64:80, 0:64]                              # [16, 64] (rows 9..15 zero)

            # x-column masks, computed once per batch item (hoisted out of all tap loops).
            col = lax.broadcasted_iota(jnp.int32, (1, HW), 1) % W
            ne0 = col != 0                                         # pixel not in column 0
            neW = col != (W - 1)                                   # pixel not in column W-1

            def maskv(keep, x):
                return jnp.where(keep, x, jnp.zeros_like(x))

            # Zero only the halo strips; band interiors are fully overwritten below.
            slab_ref[:, 0:OFF0] = jnp.zeros((3 * BAND, OFF0), bf16)
            slab_ref[:, OFF0 + HW:PPAD] = jnp.zeros((3 * BAND, OFF0), bf16)
            z_ref[:, 0:OFF0] = jnp.zeros((16, OFF0), f32)
            z_ref[:, OFF0 + HW:PPAD] = jnp.zeros((16, OFF0), f32)

            # torch.cat((r, vmax), dim=1) -> band 0; pre-masked copies -> band 1 (for
            # dx=-1 taps: source x==W-1 zeroed) and band 2 (dx=+1: source x==0 zeroed),
            # so the 3x3 taps below need no per-tap edge masking.
            slab_ref[0:Cr, OFF0:OFF0 + HW] = r_ref[...]
            slab_ref[Cr:CIN3, OFF0:OFF0 + HW] = vmax_ref[...].astype(bf16)
            x0 = slab_ref[0:CIN3, OFF0:OFF0 + HW]
            slab_ref[BAND:BAND + CIN3, OFF0:OFF0 + HW] = maskv(neW, x0)
            slab_ref[2 * BAND:2 * BAND + CIN3, OFF0:OFF0 + HW] = maskv(ne0, x0)

            def conv3x3_bn_relu(cin, w_ref, scale, bias):
                acc = None
                for k, (dy, dx) in enumerate(TAPS):
                    band = 0 if dx == 0 else (BAND if dx == -1 else 2 * BAND)
                    off = OFF0 + dy * W + dx                       # static lane offset
                    tap = slab_ref[band:band + cin, off:off + HW]  # [cin, HW] bf16
                    part = jnp.dot(w_ref[k], tap, preferred_element_type=f32)
                    acc = part if acc is None else acc + part      # init from first tap
                return jnp.maximum(acc * scale + bias, 0.0)        # [cout, HW] f32

            y3 = conv3x3_bn_relu(CIN3, w3_ref, s3c, b3c)           # [64, HW]
            y3b = y3.astype(bf16)
            slab_ref[0:64, OFF0:OFF0 + HW] = y3b
            slab_ref[BAND:BAND + 64, OFF0:OFF0 + HW] = maskv(neW, y3b)
            slab_ref[2 * BAND:2 * BAND + 64, OFF0:OFF0 + HW] = maskv(ne0, y3b)

            y4 = conv3x3_bn_relu(64, w4_ref, s4c, b4c)             # [64, HW] f32

            # conv5 (64 -> 1) as contract-then-shift: one MXU matmul, then 9 lane-offset
            # [1, HW] row adds from a small zero-haloed scratch (no y4 slab writeback,
            # no 64-channel VPU reduction tree).
            z = jnp.dot(w5m, y4, preferred_element_type=f32)       # [16, HW]
            z_ref[:, OFF0:OFF0 + HW] = z
            acc5 = None
            for k, (dy, dx) in enumerate(TAPS):
                off = OFF0 + dy * W + dx
                row = z_ref[k:k + 1, off:off + HW]                 # [1, HW] f32
                if dx == -1:
                    row = jnp.where(ne0, row, 0.0)
                elif dx == 1:
                    row = jnp.where(neW, row, 0.0)
                acc5 = row if acc5 is None else acc5 + row
            y5 = jnp.maximum(s5c * acc5 + b5c, 0.0)                # [1, HW]

            out_ref[...] = 1.0 / (1.0 + jnp.exp(-y5))              # exact sigmoid

    grid_spec = pltpu.PrefetchScalarGridSpec(
        num_scalar_prefetch=0,
        grid=(B, D),
        in_specs=[
            pl.BlockSpec((None, None, 1, HW), lambda b, d: (b, d, 0, 0)),  # v depth slice
            pl.BlockSpec((None, Cr, HW), lambda b, d: (b, 0, 0)),          # r (per batch)
            pl.BlockSpec((80, 64), lambda b, d: (0, 0)),                   # packed params
            pl.BlockSpec((9, 64, CIN3), lambda b, d: (0, 0, 0)),           # w3 taps (bf16)
            pl.BlockSpec((9, 64, 64), lambda b, d: (0, 0, 0)),             # w4 taps (bf16)
        ],
        out_specs=pl.BlockSpec((None, 1, HW), lambda b, d: (b, 0, 0)),
        scratch_shapes=[
            pltpu.VMEM((8, HW), f32),             # running depth-max carry
            pltpu.VMEM((3 * BAND, PPAD), bf16),   # padded slab: base / left / right bands
            pltpu.VMEM((16, PPAD), f32),          # conv5 contract-then-shift staging
        ],
    )

    out = pl.pallas_call(
        kernel,
        out_shape=jax.ShapeDtypeStruct((B, 1, HW), f32),
        grid_spec=grid_spec,
        compiler_params=pltpu.CompilerParams(
            dimension_semantics=("parallel", "arbitrary")),   # batch parallel, depth carried
    )(v_in, r_in, pk, w3t, w4t)

    return out.reshape(B, 1, H, W)


def pixelwise_net_reference(v_vol, r_chw, params):
    """Plain-JAX (f32) reference. v_vol: [B, D, H, W]; r_chw: [B, Cr, H, W] -> [B, 1, H, W]."""
    (a0, b0, w1, s1, b1, w2, b2,
     w3, s3, b3, w4, s4, b4, w5, s5, b5) = params
    v = v_vol[..., None]                                           # [B,D,H,W,1]
    h0 = jnp.maximum(v * a0 + b0, 0.0)                             # [B,D,H,W,16]
    h1 = jnp.einsum('bdhwi,io->bdhwo', h0, w1)
    h1 = jnp.maximum(h1 * s1 + b1, 0.0)
    h2 = jnp.einsum('bdhwi,io->bdhwo', h1, w2) + b2
    vmax = h2.max(axis=1)                                          # [B,H,W,8]
    r = jnp.transpose(r_chw, (0, 2, 3, 1))                         # NHWC
    x = jnp.concatenate([r, vmax], axis=-1)                        # [B,H,W,Cr+8]

    def cbr(x, w, s, b):
        y = lax.conv_general_dilated(x, w, window_strides=(1, 1), padding='SAME',
                                     dimension_numbers=('NHWC', 'HWIO', 'NHWC'))
        return jnp.maximum(y * s + b, 0.0)

    y = cbr(x, w3, s3, b3)
    y = cbr(y, w4, s4, b4)
    y = cbr(y, w5, s5, b5)
    out = 1.0 / (1.0 + jnp.exp(-y))                                # [B,H,W,1]
    return jnp.transpose(out, (0, 3, 1, 2))                        # [B,1,H,W]


if __name__ == "__main__":
    B, D, H, W, Cr = 2, 8, 16, 16, 32

    key = jax.random.PRNGKey(0)
    keys = jax.random.split(key, 20)

    def nrm(k, shape, scale):
        return jax.random.normal(k, shape, dtype=jnp.float32) * scale

    # BN folded in eval mode into per-channel (scale, bias); conv0 weight folded into a0.
    params = (
        nrm(keys[0], (16,), 0.5),                # a0 = conv0 weight * bn0 scale
        nrm(keys[1], (16,), 0.1),                # b0
        nrm(keys[2], (16, 8), 0.3),              # w1 (in, out)
        1.0 + nrm(keys[3], (8,), 0.1),           # s1
        nrm(keys[4], (8,), 0.1),                 # b1
        nrm(keys[5], (8, 8), 0.3),               # w2 (in, out)
        nrm(keys[6], (8,), 0.1),                 # b2 (conv2 bias)
        nrm(keys[7], (3, 3, Cr + 8, 64), 0.05),  # w3 (HWIO)
        1.0 + nrm(keys[8], (64,), 0.1),          # s3
        nrm(keys[9], (64,), 0.1),                # b3
        nrm(keys[10], (3, 3, 64, 64), 0.05),     # w4 (HWIO)
        1.0 + nrm(keys[11], (64,), 0.1),         # s4
        nrm(keys[12], (64,), 0.1),               # b4
        nrm(keys[13], (3, 3, 64, 1), 0.05),      # w5 (HWIO)
        1.0 + nrm(keys[14], (1,), 0.1),          # s5
        nrm(keys[15], (1,), 0.1),                # b5
    )

    # PyTorch inputs: v = [B, 1, D, H, W] (channel squeezed here), r = [B, Cr, H, W].
    v_vol = jax.random.normal(keys[16], (B, D, H, W), dtype=jnp.float32)
    r_chw = jax.random.normal(keys[17], (B, Cr, H, W), dtype=jnp.float32)

    out = pixelwise_net_pallas(v_vol, r_chw, params)
    out = jax.block_until_ready(out)

    ref = jax.block_until_ready(pixelwise_net_reference(v_vol, r_chw, params))

    assert out.shape == (B, 1, H, W)
    # bf16 inputs / slab / conv weights widen the error vs the f32 reference a little;
    # measured worst-case stays well inside 2e-2 on the sigmoid output.
    np.testing.assert_allclose(np.asarray(out), np.asarray(ref), atol=2e-2, rtol=0)
    print("KERNEL_OK")
</pallas_src>

<mosaic_0001>
module attributes {stable_mosaic.version = 11 : i64} {
  func.func @kernel(%arg0: i32, %arg1: i32, %arg2: memref<1x1x1x256xbf16, #tpu.memory_space<vmem>>, %arg3: memref<1x32x256xbf16, #tpu.memory_space<vmem>>, %arg4: memref<80x64xf32, #tpu.memory_space<vmem>>, %arg5: memref<9x64x40xbf16, #tpu.memory_space<vmem>>, %arg6: memref<9x64x64xbf16, #tpu.memory_space<vmem>>, %arg7: memref<1x1x256xf32, #tpu.memory_space<vmem>>, %arg8: memref<8x256xf32, #tpu.memory_space<vmem>>, %arg9: memref<192x320xbf16, #tpu.memory_space<vmem>>, %arg10: memref<16x320xf32, #tpu.memory_space<vmem>>) attributes {dimension_semantics = [#tpu.dimension_semantics<parallel>, #tpu.dimension_semantics<arbitrary>], iteration_bounds = array<i64: 2, 8>, scalar_prefetch = 0 : i64, scratch_operands = 3 : i64, tpu.core_type = #tpu.core_type<tc>, window_params = [{transform_indices = @transform_0, window_bounds = array<i64: 1, 1, 1, 256>}, {transform_indices = @transform_1, window_bounds = array<i64: 1, 32, 256>}, {pipeline_mode = #tpu.pipeline_mode<synchronous>, transform_indices = @transform_2, window_bounds = array<i64: 80, 64>}, {pipeline_mode = #tpu.pipeline_mode<synchronous>, transform_indices = @transform_3, window_bounds = array<i64: 9, 64, 40>}, {pipeline_mode = #tpu.pipeline_mode<synchronous>, transform_indices = @transform_4, window_bounds = array<i64: 9, 64, 64>}, {transform_indices = @transform_5, window_bounds = array<i64: 1, 1, 256>}]} {
    %c0 = arith.constant 0 : index
    %c0_0 = arith.constant 0 : index
    %0 = vector.load %arg4[%c0, %c0_0] : memref<80x64xf32, #tpu.memory_space<vmem>>, vector<16x1xf32>
    %c0_1 = arith.constant 0 : index
    %c1 = arith.constant 1 : index
    %1 = vector.load %arg4[%c0_1, %c1] : memref<80x64xf32, #tpu.memory_space<vmem>>, vector<16x1xf32>
    %c0_2 = arith.constant 0 : index
    %c2 = arith.constant 2 : index
    %2 = vector.load %arg4[%c0_2, %c2] : memref<80x64xf32, #tpu.memory_space<vmem>>, vector<8x1xf32>
    %c0_3 = arith.constant 0 : index
    %c3 = arith.constant 3 : index
    %3 = vector.load %arg4[%c0_3, %c3] : memref<80x64xf32, #tpu.memory_space<vmem>>, vector<8x1xf32>
    %c0_4 = arith.constant 0 : index
    %c4 = arith.constant 4 : index
    %4 = vector.load %arg4[%c0_4, %c4] : memref<80x64xf32, #tpu.memory_space<vmem>>, vector<8x1xf32>
    %c0_5 = arith.constant 0 : index
    %c16 = arith.constant 16 : index
    %5 = vector.load %arg4[%c0_5, %c16] : memref<80x64xf32, #tpu.memory_space<vmem>>, vector<8x16xf32>
    %c0_6 = arith.constant 0 : index
    %c32 = arith.constant 32 : index
    %6 = vector.load %arg4[%c0_6, %c32] : memref<80x64xf32, #tpu.memory_space<vmem>>, vector<8x8xf32>
    %c0_7 = arith.constant 0 : index
    %c0_8 = arith.constant 0 : index
    %c0_9 = arith.constant 0 : index
    %c0_10 = arith.constant 0 : index
    %7 = vector.load %arg2[%c0_7, %c0_8, %c0_9, %c0_10] : memref<1x1x1x256xbf16, #tpu.memory_space<vmem>>, vector<1x1x1x256xbf16>
    %8 = vector.shape_cast %7 : vector<1x1x1x256xbf16> to vector<1x256xbf16>
    %9 = arith.extf %8 : vector<1x256xbf16> to vector<1x256xf32>
    %10 = vector.broadcast %0 : vector<16x1xf32> to vector<16x256xf32>
    %11 = vector.broadcast %9 : vector<1x256xf32> to vector<16x256xf32>
    %12 = arith.mulf %10, %11 : vector<16x256xf32>
    %13 = vector.broadcast %1 : vector<16x1xf32> to vector<16x256xf32>
    %14 = arith.addf %12, %13 : vector<16x256xf32>
    %cst = arith.constant 0.000000e+00 : f32
    %15 = vector.broadcast %cst : f32 to vector<16x256xf32>
    %16 = arith.maximumf %14, %15 : vector<16x256xf32>
    %cst_11 = arith.constant dense<0.000000e+00> : vector<8x256xf32>
    %17 = tpu.matmul %5, %16, %cst_11 {dimension_numbers = #tpu.dot_dimension_numbers<[1], [0], [0], [1], [0, 0, 1, 1], [], []>} : vector<8x16xf32>, vector<16x256xf32>, vector<8x256xf32> -> vector<8x256xf32>
    %18 = vector.broadcast %2 : vector<8x1xf32> to vector<8x256xf32>
    %19 = arith.mulf %18, %17 : vector<8x256xf32>
    %20 = vector.broadcast %3 : vector<8x1xf32> to vector<8x256xf32>
    %21 = arith.addf %19, %20 : vector<8x256xf32>
    %cst_12 = arith.constant 0.000000e+00 : f32
    %22 = vector.broadcast %cst_12 : f32 to vector<8x256xf32>
    %23 = arith.maximumf %21, %22 : vector<8x256xf32>
    %cst_13 = arith.constant dense<0.000000e+00> : vector<8x256xf32>
    %24 = tpu.matmul %6, %23, %cst_13 {dimension_numbers = #tpu.dot_dimension_numbers<[1], [0], [0], [1], [0, 0, 1, 1], [], []>} : vector<8x8xf32>, vector<8x256xf32>, vector<8x256xf32> -> vector<8x256xf32>
    %25 = vector.broadcast %4 : vector<8x1xf32> to vector<8x256xf32>
    %26 = arith.addf %24, %25 : vector<8x256xf32>
    %c0_i32 = arith.constant 0 : i32
    %27 = arith.cmpi eq, %arg1, %c0_i32 : i32
    %28 = arith.extui %27 : i1 to i32
    %c0_i32_14 = arith.constant 0 : i32
    %29 = arith.cmpi ne, %28, %c0_i32_14 : i32
    scf.if %29 {
      %c0_18 = arith.constant 0 : index
      %c0_19 = arith.constant 0 : index
      %36 = vector.load %arg8[%c0_18, %c0_19] : memref<8x256xf32, #tpu.memory_space<vmem>>, vector<8x256xf32>
      tpu.vector_store %arg8[%c0_18, %c0_19], %26 {strides = array<i32>} : memref<8x256xf32, #tpu.memory_space<vmem>>, vector<8x256xf32>,
    } else {
    }
    %c0_i32_15 = arith.constant 0 : i32
    %30 = arith.cmpi ne, %arg1, %c0_i32_15 : i32
    %31 = arith.extui %30 : i1 to i32
    %c0_i32_16 = arith.constant 0 : i32
    %32 = arith.cmpi ne, %31, %c0_i32_16 : i32
    scf.if %32 {
      %c0_18 = arith.constant 0 : index
      %c0_19 = arith.constant 0 : index
      %36 = vector.load %arg8[%c0_18, %c0_19] : memref<8x256xf32, #tpu.memory_space<vmem>>, vector<8x256xf32>
      %37 = arith.maximumf %36, %26 : vector<8x256xf32>
      %c0_20 = arith.constant 0 : index
      %c0_21 = arith.constant 0 : index
      %38 = vector.load %arg8[%c0_20, %c0_21] : memref<8x256xf32, #tpu.memory_space<vmem>>, vector<8x256xf32>
      tpu.vector_store %arg8[%c0_20, %c0_21], %37 {strides = array<i32>} : memref<8x256xf32, #tpu.memory_space<vmem>>, vector<8x256xf32>,
    } else {
    }
    %c7_i32 = arith.constant 7 : i32
    %33 = arith.cmpi eq, %arg1, %c7_i32 : i32
    %34 = arith.extui %33 : i1 to i32
    %c0_i32_17 = arith.constant 0 : i32
    %35 = arith.cmpi ne, %34, %c0_i32_17 : i32
    scf.if %35 {
      %c0_18 = arith.constant 0 : index
      %c5 = arith.constant 5 : index
      %36 = vector.load %arg4[%c0_18, %c5] : memref<80x64xf32, #tpu.memory_space<vmem>>, vector<64x1xf32>
      %c0_19 = arith.constant 0 : index
      %c6 = arith.constant 6 : index
      %37 = vector.load %arg4[%c0_19, %c6] : memref<80x64xf32, #tpu.memory_space<vmem>>, vector<64x1xf32>
      %c0_20 = arith.constant 0 : index
      %c7 = arith.constant 7 : index
      %38 = vector.load %arg4[%c0_20, %c7] : memref<80x64xf32, #tpu.memory_space<vmem>>, vector<64x1xf32>
      %c0_21 = arith.constant 0 : index
      %c8 = arith.constant 8 : index
      %39 = vector.load %arg4[%c0_21, %c8] : memref<80x64xf32, #tpu.memory_space<vmem>>, vector<64x1xf32>
      %c0_22 = arith.constant 0 : index
      %c9 = arith.constant 9 : index
      %40 = vector.load %arg4[%c0_22, %c9] : memref<80x64xf32, #tpu.memory_space<vmem>>, vector<1x1xf32>
      %c0_23 = arith.constant 0 : index
      %c10 = arith.constant 10 : index
      %41 = vector.load %arg4[%c0_23, %c10] : memref<80x64xf32, #tpu.memory_space<vmem>>, vector<1x1xf32>
      %c64 = arith.constant 64 : index
      %c0_24 = arith.constant 0 : index
      %42 = vector.load %arg4[%c64, %c0_24] : memref<80x64xf32, #tpu.memory_space<vmem>>, vector<16x64xf32>
      %43 = tpu.iota {dimensions = array<i32: 1>} : vector<1x256xi32>
      %c16_i32 = arith.constant 16 : i32
      %c0_i32_25 = arith.constant 0 : i32
      %44 = arith.cmpi eq, %c16_i32, %c0_i32_25 : i32
      %c1_i32 = arith.constant 1 : i32
      %45 = arith.select %44, %c1_i32, %c16_i32 : i32
      %46 = vector.broadcast %45 : i32 to vector<1x256xi32>
      %47 = arith.remsi %43, %46 : vector<1x256xi32>
      %c0_i32_26 = arith.constant 0 : i32
      %48 = vector.broadcast %c0_i32_26 : i32 to vector<1x256xi32>
      %49 = arith.cmpi ne, %47, %48 : vector<1x256xi32>
      %c0_i32_27 = arith.constant 0 : i32
      %50 = vector.broadcast %c0_i32_27 : i32 to vector<1x256xi32>
      %51 = arith.cmpi slt, %47, %50 : vector<1x256xi32>
      %c0_i32_28 = arith.constant 0 : i32
      %52 = arith.cmpi slt, %45, %c0_i32_28 : i32
      %53 = vector.broadcast %52 : i1 to vector<1x256xi1>
      %54 = vector.broadcast %53 : vector<1x256xi1> to vector<1x256xi1>
      %55 = arith.xori %51, %54 : vector<1x256xi1>
      %56 = arith.andi %55, %49 : vector<1x256xi1>
      %57 = vector.broadcast %45 : i32 to vector<1x256xi32>
      %58 = arith.addi %47, %57 : vector<1x256xi32>
      %59 = arith.select %56, %58, %47 : vector<1x256xi1>, vector<1x256xi32>
      %c0_i32_29 = arith.constant 0 : i32
      %60 = vector.broadcast %c0_i32_29 : i32 to vector<1x256xi32>
      %61 = arith.cmpi ne, %59, %60 : vector<1x256xi32>
      %c15_i32 = arith.constant 15 : i32
      %62 = vector.broadcast %c15_i32 : i32 to vector<1x256xi32>
      %63 = arith.cmpi ne, %59, %62 : vector<1x256xi32>
      %cst_30 = arith.constant 0.000000e+00 : bf16
      %64 = vector.broadcast %cst_30 : bf16 to vector<192x32xbf16>
      %c0_31 = arith.constant 0 : index
      %c0_32 = arith.constant 0 : index
      %65 = vector.load %arg9[%c0_31, %c0_32] : memref<192x320xbf16, #tpu.memory_space<vmem>>, vector<192x32xbf16>
      tpu.vector_store %arg9[%c0_31, %c0_32], %64 {strides = array<i32>} : memref<192x320xbf16, #tpu.memory_space<vmem>>, vector<192x32xbf16>,
      %cst_33 = arith.constant 0.000000e+00 : bf16
      %66 = vector.broadcast %cst_33 : bf16 to vector<192x32xbf16>
      %c0_34 = arith.constant 0 : index
      %c288 = arith.constant 288 : index
      %67 = vector.load %arg9[%c0_34, %c288] : memref<192x320xbf16, #tpu.memory_space<vmem>>, vector<192x32xbf16>
      tpu.vector_store %arg9[%c0_34, %c288], %66 {strides = array<i32>} : memref<192x320xbf16, #tpu.memory_space<vmem>>, vector<192x32xbf16>,
      %cst_35 = arith.constant 0.000000e+00 : f32
      %68 = vector.broadcast %cst_35 : f32 to vector<16x32xf32>
      %c0_36 = arith.constant 0 : index
      %c0_37 = arith.constant 0 : index
      %69 = vector.load %arg10[%c0_36, %c0_37] : memref<16x320xf32, #tpu.memory_space<vmem>>, vector<16x32xf32>
      tpu.vector_store %arg10[%c0_36, %c0_37], %68 {strides = array<i32>} : memref<16x320xf32, #tpu.memory_space<vmem>>, vector<16x32xf32>,
      %cst_38 = arith.constant 0.000000e+00 : f32
      %70 = vector.broadcast %cst_38 : f32 to vector<16x32xf32>
      %c0_39 = arith.constant 0 : index
      %c288_40 = arith.constant 288 : index
      %71 = vector.load %arg10[%c0_39, %c288_40] : memref<16x320xf32, #tpu.memory_space<vmem>>, vector<16x32xf32>
      tpu.vector_store %arg10[%c0_39, %c288_40], %70 {strides = array<i32>} : memref<16x320xf32, #tpu.memory_space<vmem>>, vector<16x32xf32>,
      %c0_41 = arith.constant 0 : index
      %c0_42 = arith.constant 0 : index
      %c0_43 = arith.constant 0 : index
      %72 = vector.load %arg3[%c0_41, %c0_42, %c0_43] : memref<1x32x256xbf16, #tpu.memory_space<vmem>>, vector<1x32x256xbf16>
      %73 = vector.shape_cast %72 : vector<1x32x256xbf16> to vector<32x256xbf16>
      %c0_44 = arith.constant 0 : index
      %c32_45 = arith.constant 32 : index
      %74 = vector.load %arg9[%c0_44, %c32_45] : memref<192x320xbf16, #tpu.memory_space<vmem>>, vector<32x256xbf16>
      tpu.vector_store %arg9[%c0_44, %c32_45], %73 {strides = array<i32>} : memref<192x320xbf16, #tpu.memory_space<vmem>>, vector<32x256xbf16>,
      %c0_46 = arith.constant 0 : index
      %c0_47 = arith.constant 0 : index
      %75 = vector.load %arg8[%c0_46, %c0_47] : memref<8x256xf32, #tpu.memory_space<vmem>>, vector<8x256xf32>
      %76 = arith.truncf %75 : vector<8x256xf32> to vector<8x256xbf16>
      %c32_48 = arith.constant 32 : index
      %c32_49 = arith.constant 32 : index
      %77 = vector.load %arg9[%c32_48, %c32_49] : memref<192x320xbf16, #tpu.memory_space<vmem>>, vector<8x256xbf16>
      tpu.vector_store %arg9[%c32_48, %c32_49], %76 {strides = array<i32>} : memref<192x320xbf16, #tpu.memory_space<vmem>>, vector<8x256xbf16>,
      %c0_50 = arith.constant 0 : index
      %c32_51 = arith.constant 32 : index
      %78 = vector.load %arg9[%c0_50, %c32_51] : memref<192x320xbf16, #tpu.memory_space<vmem>>, vector<40x256xbf16>
      %cst_52 = arith.constant 0.000000e+00 : bf16
      %79 = vector.broadcast %cst_52 : bf16 to vector<40x256xbf16>
      %80 = vector.shape_cast %63 : vector<1x256xi1> to vector<1x256xi1>
      %81 = vector.broadcast %80 : vector<1x256xi1> to vector<40x256xi1>
      %82 = arith.select %81, %78, %79 : vector<40x256xi1>, vector<40x256xbf16>
      %c64_53 = arith.constant 64 : index
      %c32_54 = arith.constant 32 : index
      %83 = vector.load %arg9[%c64_53, %c32_54] : memref<192x320xbf16, #tpu.memory_space<vmem>>, vector<40x256xbf16>
      tpu.vector_store %arg9[%c64_53, %c32_54], %82 {strides = array<i32>} : memref<192x320xbf16, #tpu.memory_space<vmem>>, vector<40x256xbf16>,
      %cst_55 = arith.constant 0.000000e+00 : bf16
      %84 = vector.broadcast %cst_55 : bf16 to vector<40x256xbf16>
      %85 = vector.shape_cast %61 : vector<1x256xi1> to vector<1x256xi1>
      %86 = vector.broadcast %85 : vector<1x256xi1> to vector<40x256xi1>
      %87 = arith.select %86, %78, %84 : vector<40x256xi1>, vector<40x256xbf16>
      %c128 = arith.constant 128 : index
      %c32_56 = arith.constant 32 : index
      %88 = vector.load %arg9[%c128, %c32_56] : memref<192x320xbf16, #tpu.memory_space<vmem>>, vector<40x256xbf16>
      tpu.vector_store %arg9[%c128, %c32_56], %87 {strides = array<i32>} : memref<192x320xbf16, #tpu.memory_space<vmem>>, vector<40x256xbf16>,
      %c64_57 = arith.constant 64 : index
      %c15 = arith.constant 15 : index
      %89 = vector.load %arg9[%c64_57, %c15] : memref<192x320xbf16, #tpu.memory_space<vmem>>, vector<40x256xbf16>
      %c0_58 = arith.constant 0 : index
      %c0_59 = arith.constant 0 : index
      %c0_60 = arith.constant 0 : index
      %90 = vector.load %arg5[%c0_58, %c0_59, %c0_60] : memref<9x64x40xbf16, #tpu.memory_space<vmem>>, vector<1x64x40xbf16>
      %91 = vector.shape_cast %90 : vector<1x64x40xbf16> to vector<64x40xbf16>
      %cst_61 = arith.constant dense<0.000000e+00> : vector<64x256xf32>
      %92 = tpu.matmul %91, %89, %cst_61 {dimension_numbers = #tpu.dot_dimension_numbers<[1], [0], [0], [1], [0, 0, 1, 1], [], []>} : vector<64x40xbf16>, vector<40x256xbf16>, vector<64x256xf32> -> vector<64x256xf32>
      %c0_62 = arith.constant 0 : index
      %c16_63 = arith.constant 16 : index
      %93 = vector.load %arg9[%c0_62, %c16_63] : memref<192x320xbf16, #tpu.memory_space<vmem>>, vector<40x256xbf16>
      %c1_64 = arith.constant 1 : index
      %c0_65 = arith.constant 0 : index
      %c0_66 = arith.constant 0 : index
      %94 = vector.load %arg5[%c1_64, %c0_65, %c0_66] : memref<9x64x40xbf16, #tpu.memory_space<vmem>>, vector<1x64x40xbf16>
      %95 = vector.shape_cast %94 : vector<1x64x40xbf16> to vector<64x40xbf16>
      %cst_67 = arith.constant dense<0.000000e+00> : vector<64x256xf32>
      %96 = tpu.matmul %95, %93, %cst_67 {dimension_numbers = #tpu.dot_dimension_numbers<[1], [0], [0], [1], [0, 0, 1, 1], [], []>} : vector<64x40xbf16>, vector<40x256xbf16>, vector<64x256xf32> -> vector<64x256xf32>
      %97 = arith.addf %92, %96 : vector<64x256xf32>
      %c128_68 = arith.constant 128 : index
      %c17 = arith.constant 17 : index
      %98 = vector.load %arg9[%c128_68, %c17] : memref<192x320xbf16, #tpu.memory_space<vmem>>, vector<40x256xbf16>
      %c2_69 = arith.constant 2 : index
      %c0_70 = arith.constant 0 : index
      %c0_71 = arith.constant 0 : index
      %99 = vector.load %arg5[%c2_69, %c0_70, %c0_71] : memref<9x64x40xbf16, #tpu.memory_space<vmem>>, vector<1x64x40xbf16>
      %100 = vector.shape_cast %99 : vector<1x64x40xbf16> to vector<64x40xbf16>
      %cst_72 = arith.constant dense<0.000000e+00> : vector<64x256xf32>
      %101 = tpu.matmul %100, %98, %cst_72 {dimension_numbers = #tpu.dot_dimension_numbers<[1], [0], [0], [1], [0, 0, 1, 1], [], []>} : vector<64x40xbf16>, vector<40x256xbf16>, vector<64x256xf32> -> vector<64x256xf32>
      %102 = arith.addf %97, %101 : vector<64x256xf32>
      %c64_73 = arith.constant 64 : index
      %c31 = arith.constant 31 : index
      %103 = vector.load %arg9[%c64_73, %c31] : memref<192x320xbf16, #tpu.memory_space<vmem>>, vector<40x256xbf16>
      %c3_74 = arith.constant 3 : index
      %c0_75 = arith.constant 0 : index
      %c0_76 = arith.constant 0 : index
      %104 = vector.load %arg5[%c3_74, %c0_75, %c0_76] : memref<9x64x40xbf16, #tpu.memory_space<vmem>>, vector<1x64x40xbf16>
      %105 = vector.shape_cast %104 : vector<1x64x40xbf16> to vector<64x40xbf16>
      %cst_77 = arith.constant dense<0.000000e+00> : vector<64x256xf32>
      %106 = tpu.matmul %105, %103, %cst_77 {dimension_numbers = #tpu.dot_dimension_numbers<[1], [0], [0], [1], [0, 0, 1, 1], [], []>} : vector<64x40xbf16>, vector<40x256xbf16>, vector<64x256xf32> -> vector<64x256xf32>
      %107 = arith.addf %102, %106 : vector<64x256xf32>
      %c0_78 = arith.constant 0 : index
      %c32_79 = arith.constant 32 : index
      %108 = vector.load %arg9[%c0_78, %c32_79] : memref<192x320xbf16, #tpu.memory_space<vmem>>, vector<40x256xbf16>
      %c4_80 = arith.constant 4 : index
      %c0_81 = arith.constant 0 : index
      %c0_82 = arith.constant 0 : index
      %109 = vector.load %arg5[%c4_80, %c0_81, %c0_82] : memref<9x64x40xbf16, #tpu.memory_space<vmem>>, vector<1x64x40xbf16>
      %110 = vector.shape_cast %109 : vector<1x64x40xbf16> to vector<64x40xbf16>
      %cst_83 = arith.constant dense<0.000000e+00> : vector<64x256xf32>
      %111 = tpu.matmul %110, %108, %cst_83 {dimension_numbers = #tpu.dot_dimension_numbers<[1], [0], [0], [1], [0, 0, 1, 1], [], []>} : vector<64x40xbf16>, vector<40x256xbf16>, vector<64x256xf32> -> vector<64x256xf32>
      %112 = arith.addf %107, %111 : vector<64x256xf32>
      %c128_84 = arith.constant 128 : index
      %c33 = arith.constant 33 : index
      %113 = vector.load %arg9[%c128_84, %c33] : memref<192x320xbf16, #tpu.memory_space<vmem>>, vector<40x256xbf16>
      %c5_85 = arith.constant 5 : index
      %c0_86 = arith.constant 0 : index
      %c0_87 = arith.constant 0 : index
      %114 = vector.load %arg5[%c5_85, %c0_86, %c0_87] : memref<9x64x40xbf16, #tpu.memory_space<vmem>>, vector<1x64x40xbf16>
      %115 = vector.shape_cast %114 : vector<1x64x40xbf16> to vector<64x40xbf16>
      %cst_88 = arith.constant dense<0.000000e+00> : vector<64x256xf32>
      %116 = tpu.matmul %115, %113, %cst_88 {dimension_numbers = #tpu.dot_dimension_numbers<[1], [0], [0], [1], [0, 0, 1, 1], [], []>} : vector<64x40xbf16>, vector<40x256xbf16>, vector<64x256xf32> -> vector<64x256xf32>
      %117 = arith.addf %112, %116 : vector<64x256xf32>
      %c64_89 = arith.constant 64 : index
      %c47 = arith.constant 47 : index
      %118 = vector.load %arg9[%c64_89, %c47] : memref<192x320xbf16, #tpu.memory_space<vmem>>, vector<40x256xbf16>
      %c6_90 = arith.constant 6 : index
      %c0_91 = arith.constant 0 : index
      %c0_92 = arith.constant 0 : index
      %119 = vector.load %arg5[%c6_90, %c0_91, %c0_92] : memref<9x64x40xbf16, #tpu.memory_space<vmem>>, vector<1x64x40xbf16>
      %120 = vector.shape_cast %119 : vector<1x64x40xbf16> to vector<64x40xbf16>
      %cst_93 = arith.constant dense<0.000000e+00> : vector<64x256xf32>
      %121 = tpu.matmul %120, %118, %cst_93 {dimension_numbers = #tpu.dot_dimension_numbers<[1], [0], [0], [1], [0, 0, 1, 1], [], []>} : vector<64x40xbf16>, vector<40x256xbf16>, vector<64x256xf32> -> vector<64x256xf32>
      %122 = arith.addf %117, %121 : vector<64x256xf32>
      %c0_94 = arith.constant 0 : index
      %c48 = arith.constant 48 : index
      %123 = vector.load %arg9[%c0_94, %c48] : memref<192x320xbf16, #tpu.memory_space<vmem>>, vector<40x256xbf16>
      %c7_95 = arith.constant 7 : index
      %c0_96 = arith.constant 0 : index
      %c0_97 = arith.constant 0 : index
      %124 = vector.load %arg5[%c7_95, %c0_96, %c0_97] : memref<9x64x40xbf16, #tpu.memory_space<vmem>>, vector<1x64x40xbf16>
      %125 = vector.shape_cast %124 : vector<1x64x40xbf16> to vector<64x40xbf16>
      %cst_98 = arith.constant dense<0.000000e+00> : vector<64x256xf32>
      %126 = tpu.matmul %125, %123, %cst_98 {dimension_numbers = #tpu.dot_dimension_numbers<[1], [0], [0], [1], [0, 0, 1, 1], [], []>} : vector<64x40xbf16>, vector<40x256xbf16>, vector<64x256xf32> -> vector<64x256xf32>
      %127 = arith.addf %122, %126 : vector<64x256xf32>
      %c128_99 = arith.constant 128 : index
      %c49 = arith.constant 49 : index
      %128 = vector.load %arg9[%c128_99, %c49] : memref<192x320xbf16, #tpu.memory_space<vmem>>, vector<40x256xbf16>
      %c8_100 = arith.constant 8 : index
      %c0_101 = arith.constant 0 : index
      %c0_102 = arith.constant 0 : index
      %129 = vector.load %arg5[%c8_100, %c0_101, %c0_102] : memref<9x64x40xbf16, #tpu.memory_space<vmem>>, vector<1x64x40xbf16>
      %130 = vector.shape_cast %129 : vector<1x64x40xbf16> to vector<64x40xbf16>
      %cst_103 = arith.constant dense<0.000000e+00> : vector<64x256xf32>
      %131 = tpu.matmul %130, %128, %cst_103 {dimension_numbers = #tpu.dot_dimension_numbers<[1], [0], [0], [1], [0, 0, 1, 1], [], []>} : vector<64x40xbf16>, vector<40x256xbf16>, vector<64x256xf32> -> vector<64x256xf32>
      %132 = arith.addf %127, %131 : vector<64x256xf32>
      %133 = vector.broadcast %36 : vector<64x1xf32> to vector<64x256xf32>
      %134 = arith.mulf %132, %133 : vector<64x256xf32>
      %135 = vector.broadcast %37 : vector<64x1xf32> to vector<64x256xf32>
      %136 = arith.addf %134, %135 : vector<64x256xf32>
      %cst_104 = arith.constant 0.000000e+00 : f32
      %137 = vector.broadcast %cst_104 : f32 to vector<64x256xf32>
      %138 = arith.maximumf %136, %137 : vector<64x256xf32>
      %139 = arith.truncf %138 : vector<64x256xf32> to vector<64x256xbf16>
      %c0_105 = arith.constant 0 : index
      %c32_106 = arith.constant 32 : index
      %140 = vector.load %arg9[%c0_105, %c32_106] : memref<192x320xbf16, #tpu.memory_space<vmem>>, vector<64x256xbf16>
      tpu.vector_store %arg9[%c0_105, %c32_106], %139 {strides = array<i32>} : memref<192x320xbf16, #tpu.memory_space<vmem>>, vector<64x256xbf16>,
      %cst_107 = arith.constant 0.000000e+00 : bf16
      %141 = vector.broadcast %cst_107 : bf16 to vector<64x256xbf16>
      %142 = vector.shape_cast %63 : vector<1x256xi1> to vector<1x256xi1>
      %143 = vector.broadcast %142 : vector<1x256xi1> to vector<64x256xi1>
      %144 = arith.select %143, %139, %141 : vector<64x256xi1>, vector<64x256xbf16>
      %c64_108 = arith.constant 64 : index
      %c32_109 = arith.constant 32 : index
      %145 = vector.load %arg9[%c64_108, %c32_109] : memref<192x320xbf16, #tpu.memory_space<vmem>>, vector<64x256xbf16>
      tpu.vector_store %arg9[%c64_108, %c32_109], %144 {strides = array<i32>} : memref<192x320xbf16, #tpu.memory_space<vmem>>, vector<64x256xbf16>,
      %cst_110 = arith.constant 0.000000e+00 : bf16
      %146 = vector.broadcast %cst_110 : bf16 to vector<64x256xbf16>
      %147 = vector.shape_cast %61 : vector<1x256xi1> to vector<1x256xi1>
      %148 = vector.broadcast %147 : vector<1x256xi1> to vector<64x256xi1>
      %149 = arith.select %148, %139, %146 : vector<64x256xi1>, vector<64x256xbf16>
      %c128_111 = arith.constant 128 : index
      %c32_112 = arith.constant 32 : index
      %150 = vector.load %arg9[%c128_111, %c32_112] : memref<192x320xbf16, #tpu.memory_space<vmem>>, vector<64x256xbf16>
      tpu.vector_store %arg9[%c128_111, %c32_112], %149 {strides = array<i32>} : memref<192x320xbf16, #tpu.memory_space<vmem>>, vector<64x256xbf16>,
      %c64_113 = arith.constant 64 : index
      %c15_114 = arith.constant 15 : index
      %151 = vector.load %arg9[%c64_113, %c15_114] : memref<192x320xbf16, #tpu.memory_space<vmem>>, vector<64x256xbf16>
      %c0_115 = arith.constant 0 : index
      %c0_116 = arith.constant 0 : index
      %c0_117 = arith.constant 0 : index
      %152 = vector.load %arg6[%c0_115, %c0_116, %c0_117] : memref<9x64x64xbf16, #tpu.memory_space<vmem>>, vector<1x64x64xbf16>
      %153 = vector.shape_cast %152 : vector<1x64x64xbf16> to vector<64x64xbf16>
      %cst_118 = arith.constant dense<0.000000e+00> : vector<64x256xf32>
      %154 = tpu.matmul %153, %151, %cst_118 {dimension_numbers = #tpu.dot_dimension_numbers<[1], [0], [0], [1], [0, 0, 1, 1], [], []>} : vector<64x64xbf16>, vector<64x256xbf16>, vector<64x256xf32> -> vector<64x256xf32>
      %c0_119 = arith.constant 0 : index
      %c16_120 = arith.constant 16 : index
      %155 = vector.load %arg9[%c0_119, %c16_120] : memref<192x320xbf16, #tpu.memory_space<vmem>>, vector<64x256xbf16>
      %c1_121 = arith.constant 1 : index
      %c0_122 = arith.constant 0 : index
      %c0_123 = arith.constant 0 : index
      %156 = vector.load %arg6[%c1_121, %c0_122, %c0_123] : memref<9x64x64xbf16, #tpu.memory_space<vmem>>, vector<1x64x64xbf16>
      %157 = vector.shape_cast %156 : vector<1x64x64xbf16> to vector<64x64xbf16>
      %cst_124 = arith.constant dense<0.000000e+00> : vector<64x256xf32>
      %158 = tpu.matmul %157, %155, %cst_124 {dimension_numbers = #tpu.dot_dimension_numbers<[1], [0], [0], [1], [0, 0, 1, 1], [], []>} : vector<64x64xbf16>, vector<64x256xbf16>, vector<64x256xf32> -> vector<64x256xf32>
      %159 = arith.addf %154, %158 : vector<64x256xf32>
      %c128_125 = arith.constant 128 : index
      %c17_126 = arith.constant 17 : index
      %160 = vector.load %arg9[%c128_125, %c17_126] : memref<192x320xbf16, #tpu.memory_space<vmem>>, vector<64x256xbf16>
      %c2_127 = arith.constant 2 : index
      %c0_128 = arith.constant 0 : index
      %c0_129 = arith.constant 0 : index
      %161 = vector.load %arg6[%c2_127, %c0_128, %c0_129] : memref<9x64x64xbf16, #tpu.memory_space<vmem>>, vector<1x64x64xbf16>
      %162 = vector.shape_cast %161 : vector<1x64x64xbf16> to vector<64x64xbf16>
      %cst_130 = arith.constant dense<0.000000e+00> : vector<64x256xf32>
      %163 = tpu.matmul %162, %160, %cst_130 {dimension_numbers = #tpu.dot_dimension_numbers<[1], [0], [0], [1], [0, 0, 1, 1], [], []>} : vector<64x64xbf16>, vector<64x256xbf16>, vector<64x256xf32> -> vector<64x256xf32>
      %164 = arith.addf %159, %163 : vector<64x256xf32>
      %c64_131 = arith.constant 64 : index
      %c31_132 = arith.constant 31 : index
      %165 = vector.load %arg9[%c64_131, %c31_132] : memref<192x320xbf16, #tpu.memory_space<vmem>>, vector<64x256xbf16>
      %c3_133 = arith.constant 3 : index
      %c0_134 = arith.constant 0 : index
      %c0_135 = arith.constant 0 : index
      %166 = vector.load %arg6[%c3_133, %c0_134, %c0_135] : memref<9x64x64xbf16, #tpu.memory_space<vmem>>, vector<1x64x64xbf16>
      %167 = vector.shape_cast %166 : vector<1x64x64xbf16> to vector<64x64xbf16>
      %cst_136 = arith.constant dense<0.000000e+00> : vector<64x256xf32>
      %168 = tpu.matmul %167, %165, %cst_136 {dimension_numbers = #tpu.dot_dimension_numbers<[1], [0], [0], [1], [0, 0, 1, 1], [], []>} : vector<64x64xbf16>, vector<64x256xbf16>, vector<64x256xf32> -> vector<64x256xf32>
      %169 = arith.addf %164, %168 : vector<64x256xf32>
      %c0_137 = arith.constant 0 : index
      %c32_138 = arith.constant 32 : index
      %170 = vector.load %arg9[%c0_137, %c32_138] : memref<192x320xbf16, #tpu.memory_space<vmem>>, vector<64x256xbf16>
      %c4_139 = arith.constant 4 : index
      %c0_140 = arith.constant 0 : index
      %c0_141 = arith.constant 0 : index
      %171 = vector.load %arg6[%c4_139, %c0_140, %c0_141] : memref<9x64x64xbf16, #tpu.memory_space<vmem>>, vector<1x64x64xbf16>
      %172 = vector.shape_cast %171 : vector<1x64x64xbf16> to vector<64x64xbf16>
      %cst_142 = arith.constant dense<0.000000e+00> : vector<64x256xf32>
      %173 = tpu.matmul %172, %170, %cst_142 {dimension_numbers = #tpu.dot_dimension_numbers<[1], [0], [0], [1], [0, 0, 1, 1], [], []>} : vector<64x64xbf16>, vector<64x256xbf16>, vector<64x256xf32> -> vector<64x256xf32>
      %174 = arith.addf %169, %173 : vector<64x256xf32>
      %c128_143 = arith.constant 128 : index
      %c33_144 = arith.constant 33 : index
      %175 = vector.load %arg9[%c128_143, %c33_144] : memref<192x320xbf16, #tpu.memory_space<vmem>>, vector<64x256xbf16>
      %c5_145 = arith.constant 5 : index
      %c0_146 = arith.constant 0 : index
      %c0_147 = arith.constant 0 : index
      %176 = vector.load %arg6[%c5_145, %c0_146, %c0_147] : memref<9x64x64xbf16, #tpu.memory_space<vmem>>, vector<1x64x64xbf16>
      %177 = vector.shape_cast %176 : vector<1x64x64xbf16> to vector<64x64xbf16>
      %cst_148 = arith.constant dense<0.000000e+00> : vector<64x256xf32>
      %178 = tpu.matmul %177, %175, %cst_148 {dimension_numbers = #tpu.dot_dimension_numbers<[1], [0], [0], [1], [0, 0, 1, 1], [], []>} : vector<64x64xbf16>, vector<64x256xbf16>, vector<64x256xf32> -> vector<64x256xf32>
      %179 = arith.addf %174, %178 : vector<64x256xf32>
      %c64_149 = arith.constant 64 : index
      %c47_150 = arith.constant 47 : index
      %180 = vector.load %arg9[%c64_149, %c47_150] : memref<192x320xbf16, #tpu.memory_space<vmem>>, vector<64x256xbf16>
      %c6_151 = arith.constant 6 : index
      %c0_152 = arith.constant 0 : index
      %c0_153 = arith.constant 0 : index
      %181 = vector.load %arg6[%c6_151, %c0_152, %c0_153] : memref<9x64x64xbf16, #tpu.memory_space<vmem>>, vector<1x64x64xbf16>
      %182 = vector.shape_cast %181 : vector<1x64x64xbf16> to vector<64x64xbf16>
      %cst_154 = arith.constant dense<0.000000e+00> : vector<64x256xf32>
      %183 = tpu.matmul %182, %180, %cst_154 {dimension_numbers = #tpu.dot_dimension_numbers<[1], [0], [0], [1], [0, 0, 1, 1], [], []>} : vector<64x64xbf16>, vector<64x256xbf16>, vector<64x256xf32> -> vector<64x256xf32>
      %184 = arith.addf %179, %183 : vector<64x256xf32>
      %c0_155 = arith.constant 0 : index
      %c48_156 = arith.constant 48 : index
      %185 = vector.load %arg9[%c0_155, %c48_156] : memref<192x320xbf16, #tpu.memory_space<vmem>>, vector<64x256xbf16>
      %c7_157 = arith.constant 7 : index
      %c0_158 = arith.constant 0 : index
      %c0_159 = arith.constant 0 : index
      %186 = vector.load %arg6[%c7_157, %c0_158, %c0_159] : memref<9x64x64xbf16, #tpu.memory_space<vmem>>, vector<1x64x64xbf16>
      %187 = vector.shape_cast %186 : vector<1x64x64xbf16> to vector<64x64xbf16>
      %cst_160 = arith.constant dense<0.000000e+00> : vector<64x256xf32>
      %188 = tpu.matmul %187, %185, %cst_160 {dimension_numbers = #tpu.dot_dimension_numbers<[1], [0], [0], [1], [0, 0, 1, 1], [], []>} : vector<64x64xbf16>, vector<64x256xbf16>, vector<64x256xf32> -> vector<64x256xf32>
      %189 = arith.addf %184, %188 : vector<64x256xf32>
      %c128_161 = arith.constant 128 : index
      %c49_162 = arith.constant 49 : index
      %190 = vector.load %arg9[%c128_161, %c49_162] : memref<192x320xbf16, #tpu.memory_space<vmem>>, vector<64x256xbf16>
      %c8_163 = arith.constant 8 : index
      %c0_164 = arith.constant 0 : index
      %c0_165 = arith.constant 0 : index
      %191 = vector.load %arg6[%c8_163, %c0_164, %c0_165] : memref<9x64x64xbf16, #tpu.memory_space<vmem>>, vector<1x64x64xbf16>
      %192 = vector.shape_cast %191 : vector<1x64x64xbf16> to vector<64x64xbf16>
      %cst_166 = arith.constant dense<0.000000e+00> : vector<64x256xf32>
      %193 = tpu.matmul %192, %190, %cst_166 {dimension_numbers = #tpu.dot_dimension_numbers<[1], [0], [0], [1], [0, 0, 1, 1], [], []>} : vector<64x64xbf16>, vector<64x256xbf16>, vector<64x256xf32> -> vector<64x256xf32>
      %194 = arith.addf %189, %193 : vector<64x256xf32>
      %195 = vector.broadcast %38 : vector<64x1xf32> to vector<64x256xf32>
      %196 = arith.mulf %194, %195 : vector<64x256xf32>
      %197 = vector.broadcast %39 : vector<64x1xf32> to vector<64x256xf32>
      %198 = arith.addf %196, %197 : vector<64x256xf32>
      %cst_167 = arith.constant 0.000000e+00 : f32
      %199 = vector.broadcast %cst_167 : f32 to vector<64x256xf32>
      %200 = arith.maximumf %198, %199 : vector<64x256xf32>
      %cst_168 = arith.constant dense<0.000000e+00> : vector<16x256xf32>
      %201 = tpu.matmul %42, %200, %cst_168 {dimension_numbers = #tpu.dot_dimension_numbers<[1], [0], [0], [1], [0, 0, 1, 1], [], []>} : vector<16x64xf32>, vector<64x256xf32>, vector<16x256xf32> -> vector<16x256xf32>
      %c0_169 = arith.constant 0 : index
      %c32_170 = arith.constant 32 : index
      %202 = vector.load %arg10[%c0_169, %c32_170] : memref<16x320xf32, #tpu.memory_space<vmem>>, vector<16x256xf32>
      tpu.vector_store %arg10[%c0_169, %c32_170], %201 {strides = array<i32>} : memref<16x320xf32, #tpu.memory_space<vmem>>, vector<16x256xf32>,
      %c0_171 = arith.constant 0 : index
      %c15_172 = arith.constant 15 : index
      %203 = vector.load %arg10[%c0_171, %c15_172] : memref<16x320xf32, #tpu.memory_space<vmem>>, vector<1x256xf32>
      %cst_173 = arith.constant 0.000000e+00 : f32
      %204 = vector.broadcast %cst_173 : f32 to vector<1x256xf32>
      %205 = arith.select %61, %203, %204 : vector<1x256xi1>, vector<1x256xf32>
      %c1_174 = arith.constant 1 : index
      %c16_175 = arith.constant 16 : index
      %206 = vector.load %arg10[%c1_174, %c16_175] : memref<16x320xf32, #tpu.memory_space<vmem>>, vector<1x256xf32>
      %207 = arith.addf %205, %206 : vector<1x256xf32>
      %c2_176 = arith.constant 2 : index
      %c17_177 = arith.constant 17 : index
      %208 = vector.load %arg10[%c2_176, %c17_177] : memref<16x320xf32, #tpu.memory_space<vmem>>, vector<1x256xf32>
      %cst_178 = arith.constant 0.000000e+00 : f32
      %209 = vector.broadcast %cst_178 : f32 to vector<1x256xf32>
      %210 = arith.select %63, %208, %209 : vector<1x256xi1>, vector<1x256xf32>
      %211 = arith.addf %207, %210 : vector<1x256xf32>
      %c3_179 = arith.constant 3 : index
      %c31_180 = arith.constant 31 : index
      %212 = vector.load %arg10[%c3_179, %c31_180] : memref<16x320xf32, #tpu.memory_space<vmem>>, vector<1x256xf32>
      %cst_181 = arith.constant 0.000000e+00 : f32
      %213 = vector.broadcast %cst_181 : f32 to vector<1x256xf32>
      %214 = arith.select %61, %212, %213 : vector<1x256xi1>, vector<1x256xf32>
      %215 = arith.addf %211, %214 : vector<1x256xf32>
      %c4_182 = arith.constant 4 : index
      %c32_183 = arith.constant 32 : index
      %216 = vector.load %arg10[%c4_182, %c32_183] : memref<16x320xf32, #tpu.memory_space<vmem>>, vector<1x256xf32>
      %217 = arith.addf %215, %216 : vector<1x256xf32>
      %c5_184 = arith.constant 5 : index
      %c33_185 = arith.constant 33 : index
      %218 = vector.load %arg10[%c5_184, %c33_185] : memref<16x320xf32, #tpu.memory_space<vmem>>, vector<1x256xf32>
      %cst_186 = arith.constant 0.000000e+00 : f32
      %219 = vector.broadcast %cst_186 : f32 to vector<1x256xf32>
      %220 = arith.select %63, %218, %219 : vector<1x256xi1>, vector<1x256xf32>
      %221 = arith.addf %217, %220 : vector<1x256xf32>
      %c6_187 = arith.constant 6 : index
      %c47_188 = arith.constant 47 : index
      %222 = vector.load %arg10[%c6_187, %c47_188] : memref<16x320xf32, #tpu.memory_space<vmem>>, vector<1x256xf32>
      %cst_189 = arith.constant 0.000000e+00 : f32
      %223 = vector.broadcast %cst_189 : f32 to vector<1x256xf32>
      %224 = arith.select %61, %222, %223 : vector<1x256xi1>, vector<1x256xf32>
      %225 = arith.addf %221, %224 : vector<1x256xf32>
      %c7_190 = arith.constant 7 : index
      %c48_191 = arith.constant 48 : index
      %226 = vector.load %arg10[%c7_190, %c48_191] : memref<16x320xf32, #tpu.memory_space<vmem>>, vector<1x256xf32>
      %227 = arith.addf %225, %226 : vector<1x256xf32>
      %c8_192 = arith.constant 8 : index
      %c49_193 = arith.constant 49 : index
      %228 = vector.load %arg10[%c8_192, %c49_193] : memref<16x320xf32, #tpu.memory_space<vmem>>, vector<1x256xf32>
      %cst_194 = arith.constant 0.000000e+00 : f32
      %229 = vector.broadcast %cst_194 : f32 to vector<1x256xf32>
      %230 = arith.select %63, %228, %229 : vector<1x256xi1>, vector<1x256xf32>
      %231 = arith.addf %227, %230 : vector<1x256xf32>
      %232 = vector.broadcast %40 : vector<1x1xf32> to vector<1x256xf32>
      %233 = arith.mulf %232, %231 : vector<1x256xf32>
      %234 = vector.broadcast %41 : vector<1x1xf32> to vector<1x256xf32>
      %235 = arith.addf %233, %234 : vector<1x256xf32>
      %cst_195 = arith.constant 0.000000e+00 : f32
      %236 = vector.broadcast %cst_195 : f32 to vector<1x256xf32>
      %237 = arith.maximumf %235, %236 : vector<1x256xf32>
      %cst_196 = arith.constant 0.000000e+00 : f32
      %238 = vector.broadcast %cst_196 : f32 to vector<1x256xf32>
      %239 = arith.subf %238, %237 : vector<1x256xf32>
      %240 = math.exp %239 : vector<1x256xf32>
      %cst_197 = arith.constant 1.000000e+00 : f32
      %241 = vector.broadcast %cst_197 : f32 to vector<1x256xf32>
      %242 = arith.addf %241, %240 : vector<1x256xf32>
      %cst_198 = arith.constant 1.000000e+00 : f32
      %243 = vector.broadcast %cst_198 : f32 to vector<1x256xf32>
      %244 = arith.divf %243, %242 : vector<1x256xf32>
      %c0_199 = arith.constant 0 : index
      %c0_200 = arith.constant 0 : index
      %c0_201 = arith.constant 0 : index
      %245 = vector.load %arg7[%c0_199, %c0_200, %c0_201] : memref<1x1x256xf32, #tpu.memory_space<vmem>>, vector<1x1x256xf32>
      %246 = vector.shape_cast %245 : vector<1x1x256xf32> to vector<1x256xf32>
      %247 = vector.shape_cast %244 : vector<1x256xf32> to vector<1x1x256xf32>
      tpu.vector_store %arg7[%c0_199, %c0_200, %c0_201], %247 {strides = array<i32>} : memref<1x1x256xf32, #tpu.memory_space<vmem>>, vector<1x1x256xf32>,
    } else {
    }
    return
  }
  func.func @transform_0(%arg0: i32, %arg1: i32) -> (i32, i32, i32, i32) {
    %c0_i32 = arith.constant 0 : i32
    %c0_i32_0 = arith.constant 0 : i32
    %c0_i32_1 = arith.constant 0 : i32
    return %arg0, %arg1, %c0_i32, %c0_i32_0 : i32, i32, i32, i32
  }
  func.func @transform_1(%arg0: i32, %arg1: i32) -> (i32, i32, i32) {
    %c0_i32 = arith.constant 0 : i32
    %c0_i32_0 = arith.constant 0 : i32
    %c0_i32_1 = arith.constant 0 : i32
    return %arg0, %c0_i32, %c0_i32_0 : i32, i32, i32
  }
  func.func @transform_2(%arg0: i32, %arg1: i32) -> (i32, i32) {
    %c0_i32 = arith.constant 0 : i32
    %c0_i32_0 = arith.constant 0 : i32
    %c0_i32_1 = arith.constant 0 : i32
    return %c0_i32, %c0_i32_0 : i32, i32
  }
  func.func @transform_3(%arg0: i32, %arg1: i32) -> (i32, i32, i32) {
    %c0_i32 = arith.constant 0 : i32
    %c0_i32_0 = arith.constant 0 : i32
    %c0_i32_1 = arith.constant 0 : i32
    %c0_i32_2 = arith.constant 0 : i32
    return %c0_i32, %c0_i32_0, %c0_i32_1 : i32, i32, i32
  }
  func.func @transform_4(%arg0: i32, %arg1: i32) -> (i32, i32, i32) {
    %c0_i32 = arith.constant 0 : i32
    %c0_i32_0 = arith.constant 0 : i32
    %c0_i32_1 = arith.constant 0 : i32
    %c0_i32_2 = arith.constant 0 : i32
    return %c0_i32, %c0_i32_0, %c0_i32_1 : i32, i32, i32
  }
  func.func @transform_5(%arg0: i32, %arg1: i32) -> (i32, i32, i32) {
    %c0_i32 = arith.constant 0 : i32
    %c0_i32_0 = arith.constant 0 : i32
    %c0_i32_1 = arith.constant 0 : i32
    return %arg0, %c0_i32, %c0_i32_0 : i32, i32, i32
  }
}

</mosaic_0001>

<bundles_post_ra>
// kernel: tpu_custom_call.1
= control target key start
LH: loop header
LB: loop body
LE: loop exit
PB: predicated region body
PF: predicated region fallthrough
CT: control target
= control target key end

     0   :  { %10 = vsyncpa [#allocation6], 0  ;;  %s8379_s0 = inlined_call_operand.vmem [shape: bf16[2,8,1,256], index: 0, kind: input, shape index: {}]   ;;  %s8380_s1 = inlined_call_operand.vmem [shape: bf16[2,32,256], index: 1, kind: input, shape index: {}]   ;;  %s8381_s2 = inlined_call_operand.vmem [shape: f32[80,64], index: 2, kind: input, shape index: {}]   ;;  %s8382_s3 = inlined_call_operand.vmem [shape: bf16[9,64,40], index: 3, kind: input, shape index: {}]   ;;  %s8383_s4 = inlined_call_operand.vmem [shape: bf16[9,64,64], index: 4, kind: input, shape index: {}]   ;;  %s8384_s5 = inlined_call_operand.hbm [shape: f32[2,1,256], index: 5, kind: output, shape index: {}]  }
   0x1   :  { %12 = vsyncpa [#allocation6 + $0x1], 0  ;;  %s5968_s18 = smov 0   ;;  %s5970_s19 = smov 0  }
   0x2   :  { %s5972_s20 = smov 0   ;;  %s5974_s21 = smov 0  }
   0x3   :  { %s5976_s22 = smov 0   ;;  %s5978_s23 = smov 0  }
   0x4   :  { %s5980_s24 = smov 0   ;;  %s5982_s25 = smov 0  }
   0x5 LB: > { %s5121_s26 = sadd.s32 4294967295, %s5908_s25   ;;  %s5122_s27 = sadd.s32 4294967294, %s5908_s25   ;;  %s5908_s25 = sphi %s5982_s25, %s18_s25   ;;  %s5904_s24 = sphi %s5980_s24, %s8612_s24   ;;  %s5900_s23 = sphi %s5978_s23, %s8611_s23   ;;  %s5896_s22 = sphi %s5976_s22, %s8610_s22   ;;  %s5892_s21 = sphi %s5974_s21, %s8609_s21   ;;  %s5888_s20 = sphi %s5972_s20, %s8608_s20   ;;  %s5884_s19 = sphi %s5970_s19, %s8607_s19   ;;  %s5880_s18 = sphi %s5968_s18, %s8606_s18  }
   0x6   : > { %s27_s28 = sadd.s32 1, %s5900_s23  ;;  %s30_s29 = sadd.s32 1, %s5904_s24 }
   0x7   : > { %p28_p0 = scmp.ge.s32.totalorder %s27_s28, 8  ;;  %p164_p1 = scmp.ne.s32.totalorder %s5888_s20, %s5884_s19 }
   0x8   : > { %p165_p2 = scmp.eq.s32.totalorder %s5121_s26, 15  ;;  %p170_p4 = scmp.ne.s32.totalorder %s5884_s19, %s5880_s18 }
   0x9   : > { %s8614_s28 = smov (%p28_p0, %s27_s28), 0  ;;  %s8616_s29 = smov (!%p28_p0, %s30_s29), %s5904_s24 }
   0xa   : > { %p6017_p3 = por %p165_p2, %p164_p1  ;;  %p32_p5 = scmp.ge.s32.totalorder %s8616_s29, 2 }
   0xb   : > { %p171_p6 = scmp.eq.s32.totalorder %s5122_s27, 15  ;;  %p5125_p7 = scmp.ge.s32.totalorder %s5908_s25, 1 }
   0xc   : > { %p217_p8 = scmp.lt.s32.totalorder %s5908_s25, 17  ;;  %s8618_s29 = smov (%p32_p5, %s8616_s29), 0 }
   0xd   : > { %p6027_p9 = por %p171_p6, %p170_p4  ;;  %s151_s7 = ssub.s32 %s5904_s24, %s8618_s29 }
   0xe   : > { %p218_p10 = pnand %p5125_p7, %p217_p8  ;;  %s154_s8 = sadd.s32 1, %s5888_s20 }
   0xf   : > { %p152_p11 = scmp.eq.s32.totalorder %s151_s7, 0 }
  0x10   : > { %221 = sbr.rel (%p218_p10) target bundleno = 2495 (0x9bf), region = 40 }
  0x11   : > { %s6035_s9 = scalar_select %p152_p11, %s5888_s20, %s154_s8  }
  0x15   : > { %v270_v0 = vld [vmem:[%s8381_s2 + $0x8] sm:$0xff]  ;;  %p253_p12 = scmp.lt.s32.totalorder %s5896_s22, 1  ;;  %v5910_v1 = vmov 1   ;;  %v5911_v2 = vmov 0   ;;  %v269_v3 = vld [vmem:[%s8381_s2] sm:$0xff]  ;;  %s8385_s27 = sand.u32 1, %s5884_s19   ;;  %v8396_v7 = vlaneseq }
  0x16   : > { %5638 = vset.pattern.permute.xlu1 %v5910_v1  ;;  %5637 = vset.pattern.permute.xlu0 %v5911_v2  ;;  %s6053_s7 = sshll.u32 %s8385_s27, 1  ;;  %v5912_v4 = vmov 0.0   ;;  %s5913_s8 = smov 112   ;;  %v5914_v5 = vmov 2   ;;  %v5915_v6 = vmov 3   ;;  %vm324_vm0 = vcmask 130048  }
  0x17   : > { %311 = vperm.xlu1 %5638, %v270_v0   ;;  %280 = vperm.xlu0 %5637, %v270_v0   ;;  %s254_s12 = scalar_select %p253_p12, %s5896_s22, 1  ;;  %v6061_v8 = vshrl.u32 %v8396_v7, 7  ;;  %v5917_v34 = vmov 4   ;;  %vm418_vm1 = vcmask 64512  }
  0x18   : > { %391 = vmatprep.mubr.f32.mxu0 %v5912_v4  ;;  %485 = vmatprep.mubr.f32.mxu1 %v5912_v4  ;;  %s5916_s10 = smov 96   ;;  %p255_p13 = scmp.lt.s32.totalorder %s5892_s21, 7 }
  0x19   : > { %s5512_s15 = sshll.u32 %s254_s12, 5  ;;  %s5128_s14 = sshll.u32 %s254_s12, 4  ;;  %8442 = vst [vmem:[#allocation8_spill] sm:$0xff] %v6061_v8  ;;  %v6064_v10 = vsub.s32 0, %v6061_v8  ;;  %v6067_v11 = vsub.s32 2, %v6061_v8 }
  0x1a   : > { %s6048_s26 = scalar_lea.vmem %s8380_s1, %s5512_s15  ;;  %p5133_p0 = scmp.ne.s32.totalorder %s5892_s21, 0 }
  0x1b   : > { %307 = vperm.xlu1 %5638, %v269_v3   ;;  %275 = vperm.xlu0 %5637, %v269_v3   ;;  %s256_s11 = scalar_select %p255_p13, %s5892_s21, 7  ;;  %8443 = vst [vmem:[#allocation9_spill] sm:$0xff] %v6064_v10  ;;  %8444 = vst [vmem:[#allocation10_spill] sm:$0xff] %v6067_v11 }
  0x1d   : > { %s5127_s13 = sshll.u32 %s256_s11, 1 }
  0x1e   : > { %s259_s15 = sadd.s32 %s5128_s14, %s5127_s13 }
  0x1f   : > { %322 = vrot.lane.b32.xlu0 %v269_v3, %s5913_s8  ;;  %5639 = vset.pattern.permute.xlu1 %v5914_v5  ;;  %s260_s27 = scalar_lea.vmem %s8379_s0, %s259_s15 }
  0x20   : > { %5640 = vset.pattern.permute.xlu0 %v5915_v6  ;;  %399 = vperm.xlu1 %5639, %v269_v3   ;;  %v271_v9 = vld [vmem:[%s260_s27] sm:$0x3] }
  0x21   : > { %v272_v12 = vunpack.c.l.bf16 %v271_v9 }
  0x23   : > { %405 = vperm.xlu0 %5640, %v269_v3   ;;  %v287_v13 = vrot.slane %v272_v12, %v6064_v10  ;;  %v291_v14 = vrot.slane %v272_v12, %v6067_v11 }
  0x24   : > { %416 = vrot.lane.b32.xlu1 %v269_v3, %s5916_s10 }
  0x25   : > { %v297_v15 = vrot.slane %v287_v13, %v6064_v10  ;;  %v301_v16 = vrot.slane %v291_v14, %v6064_v10  ;;  %5641 = vset.pattern.permute.xlu1 %v5917_v34 }
  0x27   : > { %5642 = vset.pattern.permute.xlu0 %v5917_v34 }
  0x28   : > { %413 = vperm.xlu1 %5641, %v269_v3  }
  0x92   : > { %v312_v17 = vpop.permute.xlu1 %311  ;;  %v281_v18 = vpop.permute.xlu0 %280 }
  0x93   : > { %v304_v19 = vmul.f32 %v297_v15, %v281_v18  ;;  %v305_v20 = vmul.f32 %v301_v16, %v281_v18 }
  0x95   : > { %v317_v21 = vadd.f32 %v312_v17, %v305_v20  ;;  %v316_v22 = vadd.f32 %v312_v17, %v304_v19 }
  0x96   : > { %v276_v23 = vpop.permute.xlu0 %275  ;;  %v308_v28 = vpop.permute.xlu1 %307 }
  0x97   : > { %v302_v24 = vmul.f32 %v297_v15, %v276_v23  ;;  %v303_v25 = vmul.f32 %v301_v16, %v276_v23  ;;  %v321_v26 = vmax.f32 %v317_v21, 0.0  ;;  %v320_v27 = vmax.f32 %v316_v22, 0.0 }
  0x99   : > { %v314_v29 = vadd.f32 %v308_v28, %v302_v24  ;;  %v315_v30 = vadd.f32 %v308_v28, %v303_v25  ;;  %355 = vmatprep.subr.mxu0 %v321_v26 }
  0x9a   : > { %356 = vmatpush1.msra.mxu0 %v320_v27  ;;  %v323_v33 = vpop.permute.xlu0 %322 }
  0x9b   : > { %v319_v31 = vmax.f32 %v315_v30, 0.0  ;;  %v318_v32 = vmax.f32 %v314_v29, 0.0  ;;  %v400_v35 = vpop.permute.xlu1 %399 }
  0x9d   : > { %357 = vmatprep.subr.mxu0 %v319_v31 }
  0x9e   : > { %358 = vmatpush1.msra.mxu0 %v318_v32  ;;  %v406_v38 = vpop.permute.xlu0 %405 }
  0x9f   : > { %5131 = vmatmul.mubr.msk.f32.vlgmr.msra.gmra.mxu0 %vm324_vm0, %v323_v33  ;;  %v417_v45 = vpop.permute.xlu1 %416 }
  0xa3   : > { %v414_v46 = vpop.permute.xlu1 %413 }
 0x15f   : > { %v393_v36 = vpop.f32.mrf.mxu0 }
 0x160   : > { %v402_v37 = vmul.f32 %v400_v35, %v393_v36 }
 0x161   : > { %v395_v39 = vpop.f32.mrf.mxu0 }
 0x162   : > { %v403_v40 = vmul.f32 %v400_v35, %v395_v39  ;;  %v408_v41 = vadd.f32 %v406_v38, %v402_v37 }
 0x164   : > { %v409_v42 = vadd.f32 %v406_v38, %v403_v40  ;;  %v410_v44 = vmax.f32 %v408_v41, 0.0 }
 0x166   : > { %v411_v43 = vmax.f32 %v409_v42, 0.0 }
 0x168   : > { %451 = vmatprep.subr.mxu1 %v411_v43 }
 0x169   : > { %452 = vmatpush1.msra.mxu1 %v410_v44 }
 0x16a   : > { %5132 = vmatmul.mubr.msk.f32.vlgmr.msra.gmra.mxu1 %vm418_vm1, %v417_v45 }
 0x229   : > { %495 = sbr.rel (%p5133_p0) target bundleno = 560 (0x230), region = 44 }
 0x22a   : > { %v487_v47 = vpop.f32.mrf.mxu1 }
 0x22b   : > { %v488_v48 = vadd.f32 %v487_v47, %v414_v46 }
 0x22c   : > { %v489_v49 = vpop.f32.mrf.mxu1 }
 0x22d   : > { %v490_v50 = vadd.f32 %v489_v49, %v414_v46 }
 0x22e   : > { %496 = vst [vmem:[#allocation2] sm:$0xff] %v488_v48 }
 0x22f   : > { %497 = vst [vmem:[#allocation2 + $0x8] sm:$0xff] %v490_v50 }
 0x230 PF: > { %p5134_p1 = scmp.eq.s32.totalorder %s5892_s21, 0 }
 0x232   : > { %501 = sbr.rel (%p5134_p1) target bundleno = 571 (0x23b), region = 48 }
 0x237   : > { %v502_v51 = vld [vmem:[#allocation2] sm:$0xff]  ;;  %v503_v52 = vld [vmem:[#allocation2 + $0x8] sm:$0xff] }
 0x238   : > { %v504_v53 = vmax.f32 %v502_v51, %v488_v48  ;;  %v505_v54 = vmax.f32 %v503_v52, %v490_v50 }
 0x23a   : > { %506 = vst [vmem:[#allocation2] sm:$0xff] %v504_v53  ;;  %507 = vst [vmem:[#allocation2 + $0x8] sm:$0xff] %v505_v54 }
 0x23b PF: > { %p5135_p2 = scmp.ne.s32.totalorder %s5892_s21, 7 }
 0x23d   : > { %511 = sbr.rel (%p5135_p2) target bundleno = 2470 (0x9a6), region = 52 }
 0x242   : > { %v613_v55 = vld [vmem:[%s6048_s26 + $0x18] sm:$0xff]  ;;  %v654_v56 = vld [vmem:[#allocation2] sm:$0xff]  ;;  %v655_v57 = vld [vmem:[#allocation2 + $0x8] sm:$0xff]  ;;  %v6079_v58 = vand.u32 127, %v8396_v7  ;;  %s5918_s27 = smov 32   ;;  %v8397_v61 = vmov 0  }
 0x243   : > { %624 = vrot.lane.b32.xlu1 %v613_v55, %s5918_s27  ;;  %v5513_v59 = vpack.c.bf16 %v655_v57, %v654_v56  ;;  %v610_v60 = vld [vmem:[%s6048_s26] sm:$0xff]  ;;  %917 = vmatprep.mubr.bf16.mxu0 %v8397_v61  ;;  %vm554_vm2 = vcmask 257024   ;;  %vm579_vm3 = vcmask 519424   ;;  %v612_v0 = vld [vmem:[%s6048_s26 + $0x10] sm:$0xff]  ;;  %v8445_v2 = vmov 0  ;;  %v611_v9 = vld [vmem:[%s6048_s26 + $0x8] sm:$0xff] }
 0x244   : > { %v525_v62 = vadd.s32 128, %v6079_v58  ;;  %v530_v63 = vand.u32 15, %v6079_v58  ;;  %1091 = vmatprep.mubr.bf16.mxu1 %v8397_v61  ;;  %558 = vst.msk [vmem:[#allocation3 + $0x24] sm:$0xf] %vm554_vm2, %v8397_v61  ;;  %555 = vst.msk [vmem:[#allocation3] sm:$0xf] %vm554_vm2, %v8397_v61 }
 0x245   : > { %663 = vrot.lane.b32.xlu0 %v5513_v59, %s5918_s27  ;;  %583 = vst.msk [vmem:[#allocation3 + $0x2c] sm:$0xf] %vm579_vm3, %v8397_v61  ;;  %580 = vst.msk [vmem:[#allocation3 + $0x8] sm:$0xf] %vm579_vm3, %v8397_v61  ;;  %v8448_v3 = vmov 0  ;;  %v8451_v4 = vmov 0 }
 0x246   : > { %556 = vst.msk [vmem:[#allocation3 + $0xc] sm:$0xf] %vm554_vm2, %v8397_v61  ;;  %557 = vst.msk [vmem:[#allocation3 + $0x18] sm:$0xf] %vm554_vm2, %v8397_v61  ;;  %v537_v1 = vand.u32 15, %v525_v62  ;;  %vm6185_vm4 = vcmp.ne.s32.totalorder %v530_v63, 15 }
 0x247   : > { %559 = vst.msk [vmem:[#allocation3 + $0x30] sm:$0xf] %vm554_vm2, %v8397_v61  ;;  %560 = vst.msk [vmem:[#allocation3 + $0x3c] sm:$0xf] %vm554_vm2, %v8397_v61  ;;  %v8446_v2 = vsel %vm6185_vm4, 4294967295, %v8445_v2  ;;  %618 = vrot.lane.b32.xlu1 %v610_v60, %s5918_s27  ;;  %vm6194_vm6 = vcmp.ne.s32.totalorder %v530_v63, 0 }
 0x248   : > { %561 = vst.msk [vmem:[#allocation3 + $0x48] sm:$0xf] %vm554_vm2, %v8397_v61  ;;  %562 = vst.msk [vmem:[#allocation3 + $0x54] sm:$0xf] %vm554_vm2, %v8397_v61  ;;  %vm6190_vm5 = vcmp.ne.s32.totalorder %v537_v1, 15  ;;  %v8452_v4 = vsel %vm6194_vm6, 4294967295, %v8451_v4 }
 0x249   : > { %563 = vst.msk [vmem:[#allocation3 + $0x60] sm:$0xf] %vm554_vm2, %v8397_v61  ;;  %564 = vst.msk [vmem:[#allocation3 + $0x6c] sm:$0xf] %vm554_vm2, %v8397_v61  ;;  %v8449_v3 = vsel %vm6190_vm5, 4294967295, %v8448_v3  ;;  %vm6198_vm7 = vcmp.ne.s32.totalorder %v537_v1, 0  ;;  %622 = vrot.lane.b32.xlu0 %v612_v0, %s5918_s27 }
 0x24a   : > { %565 = vst.msk [vmem:[#allocation3 + $0x78] sm:$0xf] %vm554_vm2, %v8397_v61  ;;  %566 = vst.msk [vmem:[#allocation3 + $0x84] sm:$0xf] %vm554_vm2, %v8397_v61  ;;  %v8454_v5 = vmov 0  ;;  %vm643_vm10 = vcmask 1043712  }
 0x24b   : > { %567 = vst.msk [vmem:[#allocation3 + $0x90] sm:$0xf] %vm554_vm2, %v8397_v61  ;;  %568 = vst.msk [vmem:[#allocation3 + $0x9c] sm:$0xf] %vm554_vm2, %v8397_v61  ;;  %v8455_v5 = vsel %vm6198_vm7, 4294967295, %v8454_v5  ;;  %vm644_vm11 = vcmask 1047556  }
 0x24c   : > { %569 = vst.msk [vmem:[#allocation3 + $0xa8] sm:$0xf] %vm554_vm2, %v8397_v61  ;;  %570 = vst.msk [vmem:[#allocation3 + $0xb4] sm:$0xf] %vm554_vm2, %v8397_v61  ;;  %vm604_vm12 = vcmask 261120   ;;  %v8457_v16 = vmov 0 }
 0x24d   : > { %571 = vst.msk [vmem:[#allocation3 + $0xc0] sm:$0xf] %vm554_vm2, %v8397_v61  ;;  %572 = vst.msk [vmem:[#allocation3 + $0xcc] sm:$0xf] %vm554_vm2, %v8397_v61  ;;  %620 = vrot.lane.b32.xlu0 %v611_v9, %s5918_s27  ;;  %s8428_s21 = smov 112   ;;  %s8426_s26 = smov 111  }
 0x24e   : > { %573 = vst.msk [vmem:[#allocation3 + $0xd8] sm:$0xf] %vm554_vm2, %v8397_v61  ;;  %574 = vst.msk [vmem:[#allocation3 + $0xe4] sm:$0xf] %vm554_vm2, %v8397_v61  ;;  %s5922_s8 = smov 113   ;;  %s8424_s10 = smov 97  }
 0x24f   : > { %575 = vst.msk [vmem:[#allocation3 + $0xf0] sm:$0xf] %vm554_vm2, %v8397_v61  ;;  %576 = vst.msk [vmem:[#allocation3 + $0xfc] sm:$0xf] %vm554_vm2, %v8397_v61  ;;  %s8422_s11 = smov 96   ;;  %s8390_s13 = smov 95  }
 0x250   : > { %577 = vst.msk [vmem:[#allocation3 + $0x108] sm:$0xf] %vm554_vm2, %v8397_v61  ;;  %578 = vst.msk [vmem:[#allocation3 + $0x114] sm:$0xf] %vm554_vm2, %v8397_v61  ;;  %s8392_s14 = smov 81   ;;  %s8388_s15 = smov 80  }
 0x251   : > { %581 = vst.msk [vmem:[#allocation3 + $0x14] sm:$0xf] %vm579_vm3, %v8397_v61  ;;  %582 = vst.msk [vmem:[#allocation3 + $0x20] sm:$0xf] %vm579_vm3, %v8397_v61  ;;  %s8386_s16 = smov 79   ;;  %s8512_s12 = smov 79  }
 0x252   : > { %584 = vst.msk [vmem:[#allocation3 + $0x38] sm:$0xf] %vm579_vm3, %v8397_v61  ;;  %585 = vst.msk [vmem:[#allocation3 + $0x44] sm:$0xf] %vm579_vm3, %v8397_v61 }
 0x253   : > { %586 = vst.msk [vmem:[#allocation3 + $0x50] sm:$0xf] %vm579_vm3, %v8397_v61  ;;  %587 = vst.msk [vmem:[#allocation3 + $0x5c] sm:$0xf] %vm579_vm3, %v8397_v61 }
 0x254   : > { %588 = vst.msk [vmem:[#allocation3 + $0x68] sm:$0xf] %vm579_vm3, %v8397_v61  ;;  %589 = vst.msk [vmem:[#allocation3 + $0x74] sm:$0xf] %vm579_vm3, %v8397_v61 }
 0x255   : > { %590 = vst.msk [vmem:[#allocation3 + $0x80] sm:$0xf] %vm579_vm3, %v8397_v61  ;;  %591 = vst.msk [vmem:[#allocation3 + $0x8c] sm:$0xf] %vm579_vm3, %v8397_v61 }
 0x256   : > { %592 = vst.msk [vmem:[#allocation3 + $0x98] sm:$0xf] %vm579_vm3, %v8397_v61  ;;  %593 = vst.msk [vmem:[#allocation3 + $0xa4] sm:$0xf] %vm579_vm3, %v8397_v61 }
 0x257   : > { %594 = vst.msk [vmem:[#allocation3 + $0xb0] sm:$0xf] %vm579_vm3, %v8397_v61  ;;  %595 = vst.msk [vmem:[#allocation3 + $0xbc] sm:$0xf] %vm579_vm3, %v8397_v61 }
 0x258   : > { %596 = vst.msk [vmem:[#allocation3 + $0xc8] sm:$0xf] %vm579_vm3, %v8397_v61  ;;  %597 = vst.msk [vmem:[#allocation3 + $0xd4] sm:$0xf] %vm579_vm3, %v8397_v61 }
 0x259   : > { %598 = vst.msk [vmem:[#allocation3 + $0xe0] sm:$0xf] %vm579_vm3, %v8397_v61  ;;  %599 = vst.msk [vmem:[#allocation3 + $0xec] sm:$0xf] %vm579_vm3, %v8397_v61 }
 0x25a   : > { %600 = vst.msk [vmem:[#allocation3 + $0xf8] sm:$0xf] %vm579_vm3, %v8397_v61  ;;  %601 = vst.msk [vmem:[#allocation3 + $0x104] sm:$0xf] %vm579_vm3, %v8397_v61 }
 0x25b   : > { %602 = vst.msk [vmem:[#allocation3 + $0x110] sm:$0xf] %vm579_vm3, %v8397_v61  ;;  %603 = vst.msk [vmem:[#allocation3 + $0x11c] sm:$0xf] %vm579_vm3, %v8397_v61  ;;  %vm878_vm3 = vcmask 1043456  }
 0x25c   : > { %8447 = vst [vmem:[#allocation11_spill] sm:$0xff] %v8446_v2  ;;  %8450 = vst [vmem:[#allocation12_spill] sm:$0xff] %v8449_v3 }
 0x25d   : > { %8453 = vst [vmem:[#allocation13_spill] sm:$0xff] %v8452_v4  ;;  %8456 = vst [vmem:[#allocation14_spill] sm:$0xff] %v8455_v5 }
 0x25e   : > { %vm685_vm8 = vmpackc.low %vm6190_vm5, %vm6185_vm4 }
 0x25f   : > { %v6208_v6 = vsel %vm685_vm8, 65537, %v8397_v61  ;;  %vm717_vm9 = vmpackc.low %vm6198_vm7, %vm6194_vm6  ;;  %vm854_vm8 = vcmask 916480  }
 0x260   : > { %687 = vrot.lane.b32.xlu1 %v6208_v6, %s5918_s27  ;;  %v6219_v12 = vsel %vm717_vm9, 65537, %v8397_v61  ;;  %vm6223_vm13 = vmor %vm644_vm11, %vm643_vm10  ;;  %vm865_vm9 = vcmask 326656   ;;  %vm1030_vm10 = vcmask 924672   ;;  %vm1223_vm11 = vcmask 908288  }
 0x261   : > { %719 = vrot.lane.b32.xlu0 %v6219_v12, %s5918_s27  ;;  %v8458_v16 = vsel %vm6223_vm13, 4294967295, %v8457_v16 }
 0x262   : > { %8459 = vst [vmem:[#allocation15_spill] sm:$0xff] %v8458_v16 }
 0x2b5   : > { %v625_v13 = vpop.permute.xlu1 %624 }
 0x2b6   : > { %v629_v14 = vrot.slane %v625_v13, 4 }
 0x2b7   : > { %v664_v15 = vpop.permute.xlu0 %663 }
 0x2b8   : > { %v634_v17 = vsel %vm604_vm12, %v629_v14, %v625_v13  ;;  %653 = vst.msk [vmem:[#allocation3 + $0x2c] sm:$0xf] %vm554_vm2, %v629_v14  ;;  %v665_v18 = vrot.slane %v664_v15, 4 }
 0x2b9   : > { %652 = vst.msk [vmem:[#allocation3 + $0x24] sm:$0xff] %vm6223_vm13, %v634_v17  ;;  %v619_v19 = vpop.permute.xlu1 %618 }
 0x2ba   : > { %v666_v20 = vsel %vm604_vm12, %v665_v18, %v664_v15  ;;  %670 = vst.msk [vmem:[#allocation3 + $0x38] sm:$0xf] %vm554_vm2, %v665_v18  ;;  %v626_v21 = vrot.slane %v619_v19, 4 }
 0x2bb   : > { %669 = vst.msk [vmem:[#allocation3 + $0x30] sm:$0xff] %vm6223_vm13, %v666_v20  ;;  %v623_v22 = vpop.permute.xlu0 %622 }
 0x2bc   : > { %v631_v23 = vsel %vm604_vm12, %v626_v21, %v619_v19  ;;  %647 = vst.msk [vmem:[#allocation3 + $0x8] sm:$0xf] %vm554_vm2, %v626_v21  ;;  %v628_v24 = vrot.slane %v623_v22, 4 }
 0x2bd   : > { %646 = vst.msk [vmem:[#allocation3] sm:$0xff] %vm6223_vm13, %v631_v23 }
 0x2be   : > { %v633_v26 = vsel %vm604_vm12, %v628_v24, %v623_v22  ;;  %651 = vst.msk [vmem:[#allocation3 + $0x20] sm:$0xf] %vm554_vm2, %v628_v24 }
 0x2bf   : > { %650 = vst.msk [vmem:[#allocation3 + $0x18] sm:$0xff] %vm6223_vm13, %v633_v26  ;;  %v678_v28 = vld [vmem:[#allocation3 + $0x2c] sm:$0xf]  ;;  %v621_v29 = vpop.permute.xlu0 %620 }
 0x2c0   : > { %v6243_v30 = vld [vmem:[#allocation3 + $0x24] sm:$0xff]  ;;  %v627_v33 = vrot.slane %v621_v29, 4 }
 0x2c1   : > { %v680_v34 = vld [vmem:[#allocation3 + $0x38] sm:$0xf] }
 0x2c2   : > { %v6252_v36 = vld [vmem:[#allocation3 + $0x30] sm:$0xff]  ;;  %v632_v39 = vsel %vm604_vm12, %v627_v33, %v621_v29  ;;  %649 = vst.msk [vmem:[#allocation3 + $0x14] sm:$0xf] %vm554_vm2, %v627_v33  ;;  %v6349_v21 = vld [vmem:[#allocation3 + $0x38] ss:$0 sps:$4 sm:$0xff]  }
 0x2c3   : > { %v672_v40 = vld [vmem:[#allocation3 + $0x8] sm:$0xf]  ;;  %648 = vst.msk [vmem:[#allocation3 + $0xc] sm:$0xff] %vm6223_vm13, %v632_v39  ;;  %v6357_v22 = vcombine.high %v6252_v36, %v6252_v36  ;;  %v6361_v23 = vcombine.low %v6252_v36, %v6252_v36 }
 0x2c4   : > { %v671_v43 = vld [vmem:[#allocation3] sm:$0xff] }
 0x2c5   : > { %v676_v46 = vld [vmem:[#allocation3 + $0x20] sm:$0xf] }
 0x2c6   : > { %v675_v48 = vld [vmem:[#allocation3 + $0x18] sm:$0xff]  ;;  %v6283_v52 = vld [vmem:[#allocation3 + $0x20] ss:$12 sps:$4 sm:$0xff]  }
 0x2c7   : > { %846 = vrot.lane.b32.xlu1 %v6283_v52, %s8428_s21  ;;  %v6338_v18 = vcombine.high %v675_v48, %v6243_v30  ;;  %v6347_v20 = vcombine.low %v675_v48, %v6243_v30 }
 0x2c9   : > { %v674_v60 = vld [vmem:[#allocation3 + $0x14] sm:$0xf] }
 0x2ca   : > { %v673_v0 = vld [vmem:[#allocation3 + $0xc] sm:$0xff]  ;;  %v6321_v13 = vld [vmem:[#allocation3 + $0x8] ss:$12 sps:$4 sm:$0xff]  }
 0x2cb   : > { %v6327_v17 = vcombine.high %v671_v43, %v673_v0  ;;  %840 = vrot.lane.b32.xlu0 %v6321_v13, %s8428_s21  ;;  %v6340_v19 = vcombine.low %v671_v43, %v673_v0 }
 0x2cd   : > { %838 = vrot.lane.b32.xlu1 %v6327_v17, %s8428_s21 }
 0x2cf   : > { %844 = vrot.lane.b32.xlu0 %v6338_v18, %s8428_s21 }
 0x2d1   : > { %836 = vrot.lane.b32.xlu1 %v6340_v19, %s8428_s21 }
 0x2d2   : > { %v688_v25 = vpop.permute.xlu1 %687 }
 0x2d3   : > { %v689_v27 = vrot.slane %v688_v25, 4  ;;  %v720_v42 = vpop.permute.xlu0 %719  ;;  %842 = vrot.lane.b32.xlu0 %v6347_v20, %s8428_s21 }
 0x2d4   : > { %v721_v45 = vrot.slane %v720_v42, 4 }
 0x2d5   : > { %v690_v31 = vsel %vm604_vm12, %v689_v27, %v688_v25  ;;  %vm6246_vm14 = vcmp.ne.s16.totalorder %v689_v27, 0  ;;  %852 = vrot.lane.b32.xlu1 %v6349_v21, %s8428_s21 }
 0x2d6   : > { %vm691_vm15 = vcmp.ne.s16.totalorder %v690_v31, 0  ;;  %v700_v35 = vsel %vm6246_vm14, %v678_v28, 0  ;;  %v702_v38 = vsel %vm6246_vm14, %v680_v34, 0  ;;  %v694_v44 = vsel %vm6246_vm14, %v672_v40, 0 }
 0x2d7   : > { %v699_v37 = vsel %vm691_vm15, %v6243_v30, 0  ;;  %710 = vst.msk [vmem:[#allocation3 + $0x8c] sm:$0xf] %vm554_vm2, %v700_v35  ;;  %v701_v41 = vsel %vm691_vm15, %v6252_v36, 0  ;;  %712 = vst.msk [vmem:[#allocation3 + $0x98] sm:$0xf] %vm554_vm2, %v702_v38  ;;  %v722_v50 = vsel %vm604_vm12, %v721_v45, %v720_v42  ;;  %850 = vrot.lane.b32.xlu0 %v6357_v22, %s8428_s21 }
 0x2d8   : > { %709 = vst.msk [vmem:[#allocation3 + $0x84] sm:$0xff] %vm6223_vm13, %v699_v37  ;;  %711 = vst.msk [vmem:[#allocation3 + $0x90] sm:$0xff] %vm6223_vm13, %v701_v41  ;;  %v693_v47 = vsel %vm691_vm15, %v671_v43, 0  ;;  %v698_v49 = vsel %vm6246_vm14, %v676_v46, 0  ;;  %vm6279_vm0 = vcmp.ne.s16.totalorder %v721_v45, 0  ;;  %v697_v53 = vsel %vm691_vm15, %v675_v48, 0 }
 0x2d9   : > { %704 = vst.msk [vmem:[#allocation3 + $0x68] sm:$0xf] %vm554_vm2, %v694_v44  ;;  %708 = vst.msk [vmem:[#allocation3 + $0x80] sm:$0xf] %vm554_vm2, %v698_v49  ;;  %vm723_vm1 = vcmp.ne.s16.totalorder %v722_v50, 0  ;;  %v726_v54 = vsel %vm6279_vm0, %v672_v40, 0  ;;  %848 = vrot.lane.b32.xlu1 %v6361_v23, %s8428_s21 }
 0x2da   : > { %703 = vst.msk [vmem:[#allocation3 + $0x60] sm:$0xff] %vm6223_vm13, %v693_v47  ;;  %v730_v55 = vsel %vm6279_vm0, %v676_v46, 0  ;;  %707 = vst.msk [vmem:[#allocation3 + $0x78] sm:$0xff] %vm6223_vm13, %v697_v53  ;;  %v725_v56 = vsel %vm723_vm1, %v671_v43, 0  ;;  %v729_v57 = vsel %vm723_vm1, %v675_v48, 0  ;;  %v731_v58 = vsel %vm723_vm1, %v6243_v30, 0 }
 0x2db   : > { %v732_v59 = vsel %vm6279_vm0, %v678_v28, 0  ;;  %736 = vst.msk [vmem:[#allocation3 + $0xc8] sm:$0xf] %vm554_vm2, %v726_v54  ;;  %740 = vst.msk [vmem:[#allocation3 + $0xe0] sm:$0xf] %vm554_vm2, %v730_v55  ;;  %v733_v62 = vsel %vm723_vm1, %v6252_v36, 0 }
 0x2dc   : > { %v734_v63 = vsel %vm6279_vm0, %v680_v34, 0  ;;  %735 = vst.msk [vmem:[#allocation3 + $0xc0] sm:$0xff] %vm6223_vm13, %v725_v56  ;;  %739 = vst.msk [vmem:[#allocation3 + $0xd8] sm:$0xff] %vm6223_vm13, %v729_v57  ;;  %v696_v1 = vsel %vm6246_vm14, %v674_v60, 0  ;;  %v728_v9 = vsel %vm6279_vm0, %v674_v60, 0  ;;  %v695_v14 = vsel %vm691_vm15, %v673_v0, 0 }
 0x2dd   : > { %741 = vst.msk [vmem:[#allocation3 + $0xe4] sm:$0xff] %vm6223_vm13, %v731_v58  ;;  %743 = vst.msk [vmem:[#allocation3 + $0xf0] sm:$0xff] %vm6223_vm13, %v733_v62  ;;  %v727_v15 = vsel %vm723_vm1, %v673_v0, 0  ;;  %vm1553_vm14 = vcmask 785408   ;;  %vm8394_vm15 = vcmask 793600   ;;  %vm1718_vm0 = vcmask 777216  }
 0x2de   : > { %742 = vst.msk [vmem:[#allocation3 + $0xec] sm:$0xf] %vm554_vm2, %v732_v59  ;;  %744 = vst.msk [vmem:[#allocation3 + $0xf8] sm:$0xf] %vm554_vm2, %v734_v63  ;;  %v5667_v28 = vld [vmem:[#allocation3 + $0x98] ss:$0 sps:$4 sm:$0xff]  }
 0x2df   : > { %706 = vst.msk [vmem:[#allocation3 + $0x74] sm:$0xf] %vm554_vm2, %v696_v1  ;;  %738 = vst.msk [vmem:[#allocation3 + $0xd4] sm:$0xf] %vm554_vm2, %v728_v9  ;;  %v753_v38 = vld [vmem:[#allocation3 + $0x90] sm:$0xff]  ;;  %vm8395_vm1 = vcmask 662528  }
 0x2e0   : > { %705 = vst.msk [vmem:[#allocation3 + $0x6c] sm:$0xff] %vm6223_vm13, %v695_v14  ;;  %737 = vst.msk [vmem:[#allocation3 + $0xcc] sm:$0xff] %vm6223_vm13, %v727_v15  ;;  %v6369_v25 = vld [vmem:[#allocation3 + $0x80] ss:$12 sps:$4 sm:$0xff]   ;;  %v5174_v39 = vcombine.high %v753_v38, %v753_v38  ;;  %v5173_v41 = vcombine.low %v753_v38, %v753_v38  ;;  %v5685_v9 = vld [vmem:[%s8382_s3 + $0x20] sm:$0xff]  }
 0x2e1   : > { %1022 = vrot.lane.b32.xlu1 %v6369_v25, %s5922_s8  ;;  %v5669_v30 = vld [vmem:[#allocation3 + $0x7c] ss:$12 sps:$4 sm:$0xff]   ;;  %v5673_v32 = vld [vmem:[#allocation3 + $0x78] ss:$12 sps:$4 sm:$0xff]  }
 0x2e4   : > { %v6388_v31 = vld [vmem:[#allocation3 + $0xdc] ss:$12 sps:$4 sm:$0xff]   ;;  %v6393_v33 = vld [vmem:[#allocation3 + $0xd8] ss:$12 sps:$4 sm:$0xff]   ;;  %v1140_v40 = vld [vmem:[#allocation3 + $0xf0] sm:$0xff] }
 0x2e5   : > { %v6367_v24 = vld [vmem:[#allocation3 + $0xe0] ss:$12 sps:$4 sm:$0xff]   ;;  %v6383_v29 = vld [vmem:[#allocation3 + $0xf8] ss:$0 sps:$4 sm:$0xff]   ;;  %v5199_v42 = vcombine.low %v1140_v40, %v1140_v40  ;;  %v6412_v43 = vcombine.high %v1140_v40, %v1140_v40 }
 0x2e6   : > { %1215 = vrot.lane.b32.xlu0 %v6367_v24, %s8426_s26  ;;  %v6375_v26 = vld [vmem:[#allocation3 + $0xc8] ss:$12 sps:$4 sm:$0xff]  }
 0x2e7   : > { %v6377_v27 = vld [vmem:[#allocation3 + $0x68] ss:$12 sps:$4 sm:$0xff]   ;;  %v5675_v34 = vld [vmem:[#allocation3 + $0x64] ss:$12 sps:$4 sm:$0xff]   ;;  %v5679_v36 = vld [vmem:[#allocation3 + $0x60] ss:$12 sps:$4 sm:$0xff]  }
 0x2e8   : > { %1016 = vrot.lane.b32.xlu1 %v6377_v27, %s5922_s8  ;;  %v6398_v35 = vld [vmem:[#allocation3 + $0xc4] ss:$12 sps:$4 sm:$0xff]   ;;  %v6403_v37 = vld [vmem:[#allocation3 + $0xc0] ss:$12 sps:$4 sm:$0xff]  }
 0x2ea   : > { %1209 = vrot.lane.b32.xlu0 %v6375_v26, %s8426_s26 }
 0x2ec   : > { %1221 = vrot.lane.b32.xlu1 %v6383_v29, %s8426_s26 }
 0x2ee   : > { %1028 = vrot.lane.b32.xlu0 %v5667_v28, %s5922_s8 }
 0x2f0   : > { %1213 = vrot.lane.b32.xlu1 %v6388_v31, %s8426_s26 }
 0x2f2   : > { %1020 = vrot.lane.b32.xlu0 %v5669_v30, %s5922_s8 }
 0x2f4   : > { %1211 = vrot.lane.b32.xlu1 %v6393_v33, %s8426_s26 }
 0x2f6   : > { %1018 = vrot.lane.b32.xlu0 %v5673_v32, %s5922_s8 }
 0x2f8   : > { %1207 = vrot.lane.b32.xlu1 %v6398_v35, %s8426_s26 }
 0x2fa   : > { %1014 = vrot.lane.b32.xlu0 %v5675_v34, %s5922_s8 }
 0x2fc   : > { %1205 = vrot.lane.b32.xlu1 %v6403_v37, %s8426_s26 }
 0x2fe   : > { %1012 = vrot.lane.b32.xlu0 %v5679_v36, %s5922_s8 }
 0x300   : > { %1026 = vrot.lane.b32.xlu1 %v5174_v39, %s5922_s8 }
 0x302   : > { %1386 = vrot.lane.b32.xlu0 %v5667_v28, %s8424_s10 }
 0x304   : > { %1217 = vrot.lane.b32.xlu1 %v5199_v42, %s8426_s26 }
 0x306   : > { %1024 = vrot.lane.b32.xlu0 %v5173_v41, %s5922_s8 }
 0x308   : > { %1547 = vrot.lane.b32.xlu1 %v6361_v23, %s8422_s11 }
 0x30a   : > { %1219 = vrot.lane.b32.xlu0 %v6412_v43, %s8426_s26 }
 0x30c   : > { %1551 = vrot.lane.b32.xlu1 %v6349_v21, %s8422_s11 }
 0x30e   : > { %1549 = vrot.lane.b32.xlu0 %v6357_v22, %s8422_s11 }
 0x310   : > { %1380 = vrot.lane.b32.xlu1 %v6369_v25, %s8424_s10 }
 0x312   : > { %1378 = vrot.lane.b32.xlu0 %v5669_v30, %s8424_s10 }
 0x314   : > { %1543 = vrot.lane.b32.xlu1 %v6338_v18, %s8422_s11 }
 0x316   : > { %1376 = vrot.lane.b32.xlu0 %v5673_v32, %s8424_s10 }
 0x318   : > { %1541 = vrot.lane.b32.xlu1 %v6347_v20, %s8422_s11 }
 0x31a   : > { %1545 = vrot.lane.b32.xlu0 %v6283_v52, %s8422_s11 }
 0x31c   : > { %1374 = vrot.lane.b32.xlu1 %v6377_v27, %s8424_s10 }
 0x31e   : > { %1372 = vrot.lane.b32.xlu0 %v5675_v34, %s8424_s10 }
 0x320   : > { %1537 = vrot.lane.b32.xlu1 %v6327_v17, %s8422_s11 }
 0x322   : > { %1370 = vrot.lane.b32.xlu0 %v5679_v36, %s8424_s10 }
 0x324   : > { %1384 = vrot.lane.b32.xlu1 %v5174_v39, %s8424_s10 }
 0x326   : > { %1382 = vrot.lane.b32.xlu0 %v5173_v41, %s8424_s10 }
 0x328   : > { %1535 = vrot.lane.b32.xlu1 %v6340_v19, %s8422_s11 }
 0x32a   : > { %1539 = vrot.lane.b32.xlu0 %v6321_v13, %s8422_s11 }
 0x32c   : > { %1881 = vrot.lane.b32.xlu1 %v5667_v28, %s8392_s14 }
 0x32e   : > { %1716 = vrot.lane.b32.xlu0 %v6383_v29, %s8390_s13 }
 0x330   : > { %1710 = vrot.lane.b32.xlu1 %v6367_v24, %s8390_s13 }
 0x332   : > { %1708 = vrot.lane.b32.xlu0 %v6388_v31, %s8390_s13 }
 0x334   : > { %1873 = vrot.lane.b32.xlu1 %v5669_v30, %s8392_s14 }
 0x336   : > { %1706 = vrot.lane.b32.xlu0 %v6393_v33, %s8390_s13 }
 0x338   : > { %1871 = vrot.lane.b32.xlu1 %v5673_v32, %s8392_s14 }
 0x339   : > { %v847_v44 = vpop.permute.xlu1 %846 }
 0x33a   : > { %1875 = vrot.lane.b32.xlu0 %v6369_v25, %s8392_s14  ;;  %v5687_v25 = vld [vmem:[%s8382_s3 + $0x30] sm:$0xff]  }
 0x33c   : > { %1704 = vrot.lane.b32.xlu1 %v6375_v26, %s8390_s13 }
 0x33d   : > { %v841_v45 = vpop.permute.xlu0 %840 }
 0x33e   : > { %1702 = vrot.lane.b32.xlu0 %v6398_v35, %s8390_s13 }
 0x33f   : > { %v839_v46 = vpop.permute.xlu1 %838 }
 0x340   : > { %1714 = vrot.lane.b32.xlu1 %v6412_v43, %s8390_s13  ;;  %v856_v63 = vsel %vm854_vm8, %v839_v46, %v841_v45 }
 0x341   : > { %v845_v47 = vpop.permute.xlu0 %844 }
 0x342   : > { %1700 = vrot.lane.b32.xlu0 %v6403_v37, %s8390_s13  ;;  %v858_v58 = vsel %vm854_vm8, %v845_v47, %v847_v44 }
 0x343   : > { %v837_v48 = vpop.permute.xlu1 %836 }
 0x344   : > { %1877 = vrot.lane.b32.xlu1 %v5173_v41, %s8392_s14  ;;  %v855_v1 = vsel %vm854_vm8, %v837_v48, %v839_v46  ;;  %v5689_v46 = vld [vmem:[%s8382_s3] sm:$0xff]  }
 0x345   : > { %v843_v49 = vpop.permute.xlu0 %842 }
 0x346   : > { %1712 = vrot.lane.b32.xlu0 %v5199_v42, %s8390_s13  ;;  %v857_v60 = vsel %vm854_vm8, %v843_v49, %v845_v47  ;;  %v519_v47 = vld [vmem:[%s8381_s2 + $0x38] sm:$0xff]  ;;  %s8511_s13 = smov 80  }
 0x347   : > { %v853_v50 = vpop.permute.xlu1 %852 }
 0x348   : > { %1867 = vrot.lane.b32.xlu1 %v5675_v34, %s8392_s14 }
 0x349   : > { %v851_v51 = vpop.permute.xlu0 %850 }
 0x34a   : > { %1879 = vrot.lane.b32.xlu0 %v5174_v39, %s8392_s14  ;;  %v860_v54 = vsel %vm854_vm8, %v851_v51, %v853_v50  ;;  %v5929_v50 = vmov 5  }
 0x34b   : > { %v849_v53 = vpop.permute.xlu1 %848  ;;  %5158 = vmatprep.subr.msk.bf16.mxu0 %vm878_vm3, %v860_v54  ;;  %5644 = vset.pattern.permute.xlu1 %v5929_v50 }
 0x34c   : > { %1865 = vrot.lane.b32.xlu1 %v5679_v36, %s8392_s14  ;;  %v859_v55 = vsel %vm854_vm8, %v849_v53, %v851_v51  ;;  %v518_v53 = vld [vmem:[%s8381_s2 + $0x30] sm:$0xff]  ;;  %5643 = vset.pattern.permute.xlu0 %v5929_v50 }
 0x34d   : > { %v880_v56 = vsel %vm878_vm3, %v859_v55, 0  ;;  %v5690_v55 = vld [vmem:[%s8382_s3 + $0x40] sm:$0xff]  }
 0x34e   : > { %1869 = vrot.lane.b32.xlu0 %v6377_v27, %s8392_s14  ;;  %896 = vmatpush1.bf16.msra.mxu0 %v880_v56 }
 0x34f   : > { %897 = vmatprep.subr.bf16.mxu0 %v858_v58 }
 0x350   : > { %2044 = vrot.lane.b32.xlu1 %v6357_v22, %s8388_s15 }
 0x352   : > { %2042 = vrot.lane.b32.xlu0 %v6361_v23, %s8388_s15  ;;  %898 = vmatpush1.bf16.msra.mxu0 %v857_v60  ;;  %v5930_v60 = vmov 6  }
 0x353   : > { %v1023_v59 = vpop.permute.xlu1 %1022  ;;  %899 = vmatprep.subr.bf16.mxu0 %v856_v63 }
 0x354   : > { %2207 = vrot.lane.b32.xlu1 %v5199_v42, %s8386_s16 }
 0x356   : > { %2046 = vrot.lane.b32.xlu0 %v6349_v21, %s8388_s15  ;;  %900 = vmatpush1.bf16.msra.mxu0 %v855_v1  ;;  %v5686_v21 = vld [vmem:[%s8382_s3 + $0x28] sm:$0xff]  }
 0x358   : > { %v6483_v57 = vpop.permute.xlu0 %1215  ;;  %2211 = vrot.lane.b32.xlu1 %v6383_v29, %s8386_s16  ;;  %v5688_v29 = vld [vmem:[%s8382_s3 + $0x38] sm:$0xff]  }
 0x359   : > { %5159 = vmatmul.mubr.msk.bf16.vlgmr.msra.gmra.mxu0 %vm865_vm9, %v5685_v9 }
 0x35a   : > { %2209 = vrot.lane.b32.xlu0 %v6412_v43, %s8386_s16  ;;  %v1017_v0 = vpop.permute.xlu1 %1016  ;;  %927 = vmatprep.mubr.bf16.mxu0 %v8397_v61 }
 0x35c   : > { %v6491_v62 = vpop.permute.xlu0 %1209  ;;  %2040 = vrot.lane.b32.xlu1 %v6283_v52, %s8388_s15 }
 0x35e   : > { %2038 = vrot.lane.b32.xlu0 %v6338_v18, %s8388_s15  ;;  %v1222_v15 = vpop.permute.xlu1 %1221 }
 0x360   : > { %v1029_v14 = vpop.permute.xlu0 %1028  ;;  %2203 = vrot.lane.b32.xlu1 %v6388_v31, %s8386_s16 }
 0x361   : > { %5160 = vmatmul.mubr.msk.bf16.gmra.mxu0 %vm865_vm9, %v5686_v21 }
 0x362   : > { %2036 = vrot.lane.b32.xlu0 %v6347_v20, %s8388_s15  ;;  %v1214_v52 = vpop.permute.xlu1 %1213  ;;  %937 = vmatprep.mubr.bf16.mxu0 %v8397_v61 }
 0x363   : > { %v1227_v41 = vsel %vm1223_vm11, %v1214_v52, %v6483_v57 }
 0x364   : > { %v1021_v18 = vpop.permute.xlu0 %1020  ;;  %2201 = vrot.lane.b32.xlu1 %v6393_v33, %s8386_s16 }
 0x365   : > { %v1034_v33 = vsel %vm1030_vm10, %v1021_v18, %v1023_v59 }
 0x366   : > { %2205 = vrot.lane.b32.xlu0 %v6367_v24, %s8386_s16  ;;  %v1212_v22 = vpop.permute.xlu1 %1211 }
 0x367   : > { %v1226_v44 = vsel %vm1223_vm11, %v1212_v22, %v1214_v52  ;;  %v516_v52 = vld [vmem:[%s8381_s2 + $0x20] sm:$0xff]  ;;  %v5693_v22 = vld [vmem:[%s8382_s3 + $0x10] sm:$0xff]  }
 0x368   : > { %v1019_v20 = vpop.permute.xlu0 %1018  ;;  %2034 = vrot.lane.b32.xlu1 %v6321_v13, %s8388_s15 }
 0x369   : > { %5161 = vmatmul.mubr.msk.bf16.gmra.mxu0 %vm865_vm9, %v5687_v25  ;;  %v1033_v38 = vsel %vm1030_vm10, %v1019_v20, %v1021_v18  ;;  %v5692_v18 = vld [vmem:[%s8382_s3 + $0x48] sm:$0xff]  }
 0x36a   : > { %2032 = vrot.lane.b32.xlu0 %v6327_v17, %s8388_s15  ;;  %v1208_v24 = vpop.permute.xlu1 %1207  ;;  %947 = vmatprep.mubr.bf16.mxu0 %v8397_v61 }
 0x36b   : > { %v1225_v48 = vsel %vm1223_vm11, %v1208_v24, %v6491_v62  ;;  %v6588_v62 = vld [vmem:[%s8381_s2 + $0x10] sm:$0xff] }
 0x36c   : > { %v1015_v23 = vpop.permute.xlu0 %1014  ;;  %2197 = vrot.lane.b32.xlu1 %v6398_v35, %s8386_s16 }
 0x36d   : > { %v1032_v40 = vsel %vm1030_vm10, %v1015_v23, %v1017_v0  ;;  %v5691_v0 = vld [vmem:[%s8382_s3 + $0x8] sm:$0xff]  }
 0x36e   : > { %2030 = vrot.lane.b32.xlu0 %v6340_v19, %s8388_s15  ;;  %v1206_v27 = vpop.permute.xlu1 %1205  ;;  %s8509_s15 = smov 81  }
 0x36f   : > { %v1224_v54 = vsel %vm1223_vm11, %v1206_v27, %v1208_v24 }
 0x370   : > { %v1013_v17 = vpop.permute.xlu0 %1012  ;;  %2195 = vrot.lane.b32.xlu1 %v6403_v37, %s8386_s16 }
 0x371   : > { %5162 = vmatmul.mubr.msk.bf16.gmra.mxu0 %vm865_vm9, %v5688_v29  ;;  %v1031_v45 = vsel %vm1030_vm10, %v1013_v17, %v1015_v23  ;;  %v517_v23 = vld [vmem:[%s8381_s2 + $0x28] sm:$0xff]  ;;  %v5694_v17 = vld [vmem:[%s8382_s3 + $0x50] sm:$0xff]  }
 0x372   : > { %2199 = vrot.lane.b32.xlu0 %v6375_v26, %s8386_s16  ;;  %v1027_v19 = vpop.permute.xlu1 %1026  ;;  %1284 = vmatprep.mubr.bf16.mxu0 %v8397_v61  ;;  %s8510_s16 = smov 95  }
 0x373   : > { %v1036_v28 = vsel %vm1030_vm10, %v1027_v19, %v1029_v14 }
 0x374   : > { %v6533_v13 = vpop.permute.xlu0 %1386  ;;  %5176 = vmatprep.subr.msk.bf16.mxu1 %vm878_vm3, %v1036_v28  ;;  %2368 = vperm.xlu1 %5644, %v519_v47  }
 0x376   : > { %v1218_v30 = vpop.permute.xlu1 %1217  ;;  %2363 = vperm.xlu0 %5643, %v518_v53  }
 0x378   : > { %v1025_v26 = vpop.permute.xlu0 %1024  ;;  %5645 = vset.pattern.permute.xlu1 %v5930_v60 }
 0x379   : > { %v1035_v31 = vsel %vm1030_vm10, %v1025_v26, %v1027_v19  ;;  %2412 = vperm.xlu1 %5645, %v518_v53   ;;  %v515_v19 = vld [vmem:[%s8381_s2 + $0x18] sm:$0xff] }
 0x37a   : > { %v1054_v32 = vsel %vm878_vm3, %v1035_v31, 0  ;;  %v1548_v36 = vpop.permute.xlu1 %1547  ;;  %2343 = vperm.xlu0 %5643, %v6588_v62  }
 0x37b   : > { %1070 = vmatpush1.bf16.msra.mxu1 %v1054_v32 }
 0x37c   : > { %1071 = vmatprep.subr.bf16.mxu1 %v1034_v33  ;;  %v1220_v34 = vpop.permute.xlu0 %1219 }
 0x37d   : > { %v1228_v35 = vsel %vm1223_vm11, %v1218_v30, %v1220_v34  ;;  %v1229_v37 = vsel %vm1223_vm11, %v1220_v34, %v1222_v15  ;;  %5646 = vset.pattern.permute.xlu1 %v5929_v50  ;;  %v5695_v30 = vld [vmem:[%s8382_s3 + $0x18] sm:$0xff]  }
 0x37e   : > { %5202 = vmatprep.subr.msk.bf16.mxu0 %vm878_vm3, %v1229_v37  ;;  %v1247_v39 = vsel %vm878_vm3, %v1228_v35, 0  ;;  %v1552_v43 = vpop.permute.xlu1 %1551  ;;  %5648 = vset.pattern.permute.xlu0 %v5930_v60 }
 0x37f   : > { %1072 = vmatpush1.bf16.msra.mxu1 %v1033_v38  ;;  %1263 = vmatpush1.bf16.msra.mxu0 %v1247_v39 }
 0x380   : > { %1073 = vmatprep.subr.bf16.mxu1 %v1032_v40  ;;  %1264 = vmatprep.subr.bf16.mxu0 %v1227_v41  ;;  %v1550_v42 = vpop.permute.xlu0 %1549 }
 0x381   : > { %v1558_v56 = vsel %vm1553_vm14, %v1548_v36, %v1550_v42  ;;  %v1559_v57 = vsel %vm1553_vm14, %v1550_v42, %v1552_v43  ;;  %2353 = vperm.xlu1 %5646, %v516_v52   ;;  %2416 = vperm.xlu0 %5648, %v519_v47   ;;  %v5696_v36 = vld [vmem:[%s8382_s3 + $0x58] sm:$0xff]   ;;  %v5697_v42 = vld [vmem:[%s8382_s3 + $0x60] sm:$0xff]  }
 0x382   : > { %v6567_v51 = vpop.permute.xlu1 %1380  ;;  %v1577_v63 = vsel %vm878_vm3, %v1558_v56, 0 }
 0x383   : > { %1074 = vmatpush1.bf16.msra.mxu1 %v1031_v45  ;;  %1265 = vmatpush1.bf16.msra.mxu0 %v1226_v44  ;;  %v5698_v45 = vld [vmem:[%s8382_s3 + $0x80] sm:$0xff]  }
 0x384   : > { %1266 = vmatprep.subr.bf16.mxu0 %v1225_v48  ;;  %v6564_v49 = vpop.permute.xlu0 %1378  ;;  %v512_v48 = vld [vmem:[%s8381_s2] sm:$0xff] }
 0x385   : > { %2358 = vperm.xlu1 %5646, %v517_v23   ;;  %2404 = vperm.xlu0 %5648, %v516_v52   ;;  %v1392_v33 = vsel %vm8394_vm15, %v6564_v49, %v6567_v51 }
 0x386   : > { %5177 = vmatmul.mubr.msk.bf16.vlgmr.msra.gmra.mxu1 %vm865_vm9, %v5689_v46  ;;  %v1544_v59 = vpop.permute.xlu1 %1543 }
 0x387   : > { %1267 = vmatpush1.bf16.msra.mxu0 %v1224_v54  ;;  %1101 = vmatprep.mubr.bf16.mxu1 %v8397_v61  ;;  %v513_v54 = vld [vmem:[%s8381_s2 + $0x8] sm:$0xff] }
 0x388   : > { %5236 = vmatprep.subr.msk.bf16.mxu0 %vm878_vm3, %v1559_v57  ;;  %v6582_v58 = vpop.permute.xlu0 %1376  ;;  %v5701_v57 = vld [vmem:[%s8382_s3 + $0x70] sm:$0xff]  }
 0x389   : > { %5647 = vset.pattern.permute.xlu1 %v5930_v60  ;;  %2400 = vperm.xlu0 %5648, %v515_v19   ;;  %v1391_v37 = vsel %vm8394_vm15, %v6582_v58, %v6564_v49  ;;  %v5699_v49 = vld [vmem:[%s8382_s3 + $0x68] sm:$0xff]  }
 0x38a   : > { %5203 = vmatmul.mubr.msk.bf16.vlgmr.msra.gmra.mxu0 %vm865_vm9, %v5690_v55  ;;  %v1542_v9 = vpop.permute.xlu1 %1541  ;;  %2408 = vperm.xlu1 %5647, %v517_v23   ;;  %v5700_v55 = vld [vmem:[%s8382_s3 + $0x88] sm:$0xff]   ;;  %v5704_v23 = vld [vmem:[%s8382_s3 + $0x98] sm:$0xff]  }
 0x38b   : > { %1593 = vmatpush1.bf16.msra.mxu0 %v1577_v63  ;;  %1294 = vmatprep.mubr.bf16.mxu0 %v8397_v61  ;;  %v1556_v15 = vsel %vm1553_vm14, %v1542_v9, %v1544_v59  ;;  %v5702_v63 = vld [vmem:[%s8382_s3 + $0x90] sm:$0xff]  }
 0x38c   : > { %v1546_v1 = vpop.permute.xlu0 %1545 }
 0x38d   : > { %v1557_v14 = vsel %vm1553_vm14, %v1544_v59, %v1546_v1  ;;  %2388 = vperm.xlu0 %5648, %v512_v48  }
 0x38e   : > { %5178 = vmatmul.mubr.msk.bf16.gmra.mxu1 %vm865_vm9, %v5691_v0  ;;  %1594 = vmatprep.subr.bf16.mxu0 %v1557_v14  ;;  %v1375_v20 = vpop.permute.xlu1 %1374 }
 0x38f   : > { %1595 = vmatpush1.bf16.msra.mxu0 %v1556_v15  ;;  %1111 = vmatprep.mubr.bf16.mxu1 %v8397_v61  ;;  %v5703_v15 = vld [vmem:[%s8382_s3 + $0x78] sm:$0xff]  }
 0x390   : > { %v1373_v21 = vpop.permute.xlu0 %1372  ;;  %5649 = vset.pattern.permute.xlu1 %v5929_v50 }
 0x391   : > { %v1390_v39 = vsel %vm8394_vm15, %v1373_v21, %v1375_v20  ;;  %2348 = vperm.xlu1 %5649, %v515_v19  }
 0x392   : > { %5204 = vmatmul.mubr.msk.bf16.gmra.mxu0 %vm865_vm9, %v5692_v18  ;;  %v1538_v25 = vpop.permute.xlu1 %1537 }
 0x393   : > { %1304 = vmatprep.mubr.bf16.mxu0 %v8397_v61 }
 0x394   : > { %v1371_v24 = vpop.permute.xlu0 %1370 }
 0x395   : > { %v1389_v41 = vsel %vm8394_vm15, %v1371_v24, %v1373_v21  ;;  %5650 = vset.pattern.permute.xlu1 %v5930_v60 }
 0x396   : > { %5179 = vmatmul.mubr.msk.bf16.gmra.mxu1 %vm865_vm9, %v5693_v22  ;;  %v1385_v28 = vpop.permute.xlu1 %1384  ;;  %2396 = vperm.xlu1 %5650, %v6588_v62  }
 0x397   : > { %1121 = vmatprep.mubr.bf16.mxu1 %v8397_v61  ;;  %v1394_v26 = vsel %vm8394_vm15, %v1385_v28, %v6533_v13 }
 0x398   : > { %v1383_v27 = vpop.permute.xlu0 %1382  ;;  %5219 = vmatprep.subr.msk.bf16.mxu1 %vm878_vm3, %v1394_v26 }
 0x399   : > { %v1393_v29 = vsel %vm8394_vm15, %v1383_v27, %v1385_v28  ;;  %vm8421_vm15 = vcmask 654336  }
 0x39a   : > { %5205 = vmatmul.mubr.msk.bf16.gmra.mxu0 %vm865_vm9, %v5694_v17  ;;  %v1412_v31 = vsel %vm878_vm3, %v1393_v29, 0  ;;  %v1536_v34 = vpop.permute.xlu1 %1535  ;;  %5651 = vset.pattern.permute.xlu1 %v5929_v50 }
 0x39b   : > { %1314 = vmatprep.mubr.bf16.mxu0 %v8397_v61  ;;  %1428 = vmatpush1.bf16.msra.mxu1 %v1412_v31  ;;  %v1554_v35 = vsel %vm1553_vm14, %v1536_v34, %v1538_v25  ;;  %v5706_v34 = vld [vmem:[%s8382_s3 + $0xc0] sm:$0xff]  }
 0x39c   : > { %v1540_v32 = vpop.permute.xlu0 %1539  ;;  %1429 = vmatprep.subr.bf16.mxu1 %v1392_v33  ;;  %2333 = vperm.xlu1 %5651, %v512_v48  }
 0x39d   : > { %v1555_v13 = vsel %vm1553_vm14, %v1538_v25, %v1540_v32 }
 0x39e   : > { %5180 = vmatmul.mubr.msk.bf16.gmra.mxu1 %vm865_vm9, %v5695_v30  ;;  %1596 = vmatprep.subr.bf16.mxu0 %v1555_v13  ;;  %v1882_v40 = vpop.permute.xlu1 %1881  ;;  %v5705_v30 = vld [vmem:[%s8382_s3 + $0xa0] sm:$0xff]  }
 0x39f   : > { %1597 = vmatpush1.bf16.msra.mxu0 %v1554_v35  ;;  %1449 = vmatprep.mubr.bf16.mxu1 %v8397_v61 }
 0x3a0   : > { %1430 = vmatpush1.bf16.msra.mxu1 %v1391_v37  ;;  %v1717_v38 = vpop.permute.xlu0 %1716  ;;  %2338 = vperm.xlu1 %5651, %v513_v54  }
 0x3a1   : > { %1431 = vmatprep.subr.bf16.mxu1 %v1390_v39  ;;  %v5707_v39 = vld [vmem:[%s8382_s3 + $0xa8] sm:$0xff]  }
 0x3a2   : > { %5206 = vmatmul.mubr.msk.bf16.gmra.mxu0 %vm865_vm9, %v5696_v36  ;;  %v1711_v44 = vpop.permute.xlu1 %1710 }
 0x3a3   : > { %1614 = vmatprep.mubr.bf16.mxu0 %v8397_v61 }
 0x3a4   : > { %1432 = vmatpush1.bf16.msra.mxu1 %v1389_v41  ;;  %v1709_v43 = vpop.permute.xlu0 %1708  ;;  %5652 = vset.pattern.permute.xlu1 %v5930_v60 }
 0x3a5   : > { %2392 = vperm.xlu1 %5652, %v513_v54   ;;  %v1722_v14 = vsel %vm1718_vm0, %v1709_v43, %v1711_v44  ;;  %v5708_v44 = vld [vmem:[%s8382_s3 + $0xc8] sm:$0xff]  }
 0x3a6   : > { %v1874_v47 = vpop.permute.xlu1 %1873 }
 0x3a7   : > { %5220 = vmatmul.mubr.msk.bf16.vlgmr.msra.gmra.mxu1 %vm865_vm9, %v5697_v42 }
 0x3a8   : > { %v1707_v46 = vpop.permute.xlu0 %1706  ;;  %1459 = vmatprep.mubr.bf16.mxu1 %v8397_v61 }
 0x3a9   : > { %v1721_v24 = vsel %vm1718_vm0, %v1707_v46, %v1709_v43 }
 0x3aa   : > { %5237 = vmatmul.mubr.msk.bf16.vlgmr.msra.gmra.mxu0 %vm865_vm9, %v5698_v45  ;;  %v1872_v53 = vpop.permute.xlu1 %1871 }
 0x3ab   : > { %1624 = vmatprep.mubr.bf16.mxu0 %v8397_v61  ;;  %v1886_v28 = vsel %vm8395_vm1, %v1872_v53, %v1874_v47 }
 0x3ac   : > { %v1876_v51 = vpop.permute.xlu0 %1875 }
 0x3ad   : > { %v1887_v25 = vsel %vm8395_vm1, %v1874_v47, %v1876_v51 }
 0x3ae   : > { %v1705_v56 = vpop.permute.xlu1 %1704 }
 0x3af   : > { %5221 = vmatmul.mubr.msk.bf16.gmra.mxu1 %vm865_vm9, %v5699_v49  ;;  %v5709_v49 = vld [vmem:[%s8382_s3 + $0xb0] sm:$0xff]  }
 0x3b0   : > { %v1703_v50 = vpop.permute.xlu0 %1702  ;;  %1469 = vmatprep.mubr.bf16.mxu1 %v8397_v61 }
 0x3b1   : > { %v1720_v17 = vsel %vm1718_vm0, %v1703_v50, %v1705_v56 }
 0x3b2   : > { %5238 = vmatmul.mubr.msk.bf16.gmra.mxu0 %vm865_vm9, %v5700_v55  ;;  %v1715_v59 = vpop.permute.xlu1 %1714  ;;  %v5710_v55 = vld [vmem:[%s8382_s3 + $0xd0] sm:$0xff]  }
 0x3b3   : > { %1634 = vmatprep.mubr.bf16.mxu0 %v8397_v61  ;;  %v1724_v62 = vsel %vm1718_vm0, %v1715_v59, %v1717_v38 }
 0x3b4   : > { %v1701_v58 = vpop.permute.xlu0 %1700  ;;  %5253 = vmatprep.subr.msk.bf16.mxu1 %vm878_vm3, %v1724_v62 }
 0x3b5   : > { %v1719_v29 = vsel %vm1718_vm0, %v1701_v58, %v1703_v50 }
 0x3b6   : > { %v1878_v60 = vpop.permute.xlu1 %1877 }
 0x3b7   : > { %5222 = vmatmul.mubr.msk.bf16.gmra.mxu1 %vm865_vm9, %v5701_v57 }
 0x3b8   : > { %v1713_v0 = vpop.permute.xlu0 %1712  ;;  %1479 = vmatprep.mubr.bf16.mxu1 %v8397_v61 }
 0x3b9   : > { %v1723_v1 = vsel %vm1718_vm0, %v1713_v0, %v1715_v59  ;;  %v5711_v59 = vld [vmem:[%s8382_s3 + $0xb8] sm:$0xff]  }
 0x3ba   : > { %v1742_v9 = vsel %vm878_vm3, %v1723_v1, 0  ;;  %5239 = vmatmul.mubr.msk.bf16.gmra.mxu0 %vm865_vm9, %v5702_v63  ;;  %v1868_v21 = vpop.permute.xlu1 %1867  ;;  %v5712_v1 = vld [vmem:[%s8382_s3 + $0xd8] sm:$0xff]  }
 0x3bb   : > { %1758 = vmatpush1.bf16.msra.mxu1 %v1742_v9  ;;  %1644 = vmatprep.mubr.bf16.mxu0 %v8397_v61 }
 0x3bc   : > { %1759 = vmatprep.subr.bf16.mxu1 %v1722_v14  ;;  %v1880_v18 = vpop.permute.xlu0 %1879 }
 0x3bd   : > { %v1888_v52 = vsel %vm8395_vm1, %v1878_v60, %v1880_v18  ;;  %v1889_v20 = vsel %vm8395_vm1, %v1880_v18, %v1882_v40 }
 0x3be   : > { %5270 = vmatprep.subr.msk.bf16.mxu0 %vm878_vm3, %v1889_v20  ;;  %v1907_v22 = vsel %vm878_vm3, %v1888_v52, 0  ;;  %v1866_v19 = vpop.permute.xlu1 %1865 }
 0x3bf   : > { %5223 = vmatmul.mubr.msk.bf16.gmra.mxu1 %vm865_vm9, %v5703_v15  ;;  %1923 = vmatpush1.bf16.msra.mxu0 %v1907_v22  ;;  %v1884_v33 = vsel %vm8395_vm1, %v1866_v19, %v1868_v21  ;;  %v5713_v15 = vld [vmem:[%s8382_s3 + $0xe0] sm:$0xff]   ;;  %v5720_v19 = vld [vmem:[%s8382_s3 + $0x118] sm:$0xff]  }
 0x3c0   : > { %1760 = vmatpush1.bf16.msra.mxu1 %v1721_v24  ;;  %1924 = vmatprep.subr.bf16.mxu0 %v1887_v25  ;;  %v1870_v27 = vpop.permute.xlu0 %1869  ;;  %v5714_v22 = vld [vmem:[%s8382_s3 + $0x100] sm:$0xff]   ;;  %v5716_v24 = vld [vmem:[%s8382_s3 + $0x108] sm:$0xff]   ;;  %v5717_v25 = vld [vmem:[%s8382_s3 + $0xf0] sm:$0xff]  }
 0x3c1   : > { %1761 = vmatprep.subr.bf16.mxu1 %v1720_v17  ;;  %1779 = vmatprep.mubr.bf16.mxu1 %v8397_v61  ;;  %v1885_v26 = vsel %vm8395_vm1, %v1868_v21, %v1870_v27  ;;  %vm8420_vm1 = vcmask 646144   ;;  %v5718_v17 = vld [vmem:[%s8382_s3 + $0x110] sm:$0xff]   ;;  %v5719_v27 = vld [vmem:[%s8382_s3 + $0xf8] sm:$0xff]  }
 0x3c2   : > { %5240 = vmatmul.mubr.msk.bf16.gmra.mxu0 %vm865_vm9, %v5704_v23  ;;  %v2045_v32 = vpop.permute.xlu1 %2044  ;;  %v5715_v23 = vld [vmem:[%s8382_s3 + $0xe8] sm:$0xff]  }
 0x3c3   : > { %1925 = vmatpush1.bf16.msra.mxu0 %v1886_v28  ;;  %1944 = vmatprep.mubr.bf16.mxu0 %v8397_v61 }
 0x3c4   : > { %1762 = vmatpush1.bf16.msra.mxu1 %v1719_v29  ;;  %1926 = vmatprep.subr.bf16.mxu0 %v1885_v26  ;;  %v2043_v31 = vpop.permute.xlu0 %2042 }
 0x3c5   : > { %v2053_v13 = vsel %vm8421_vm15, %v2043_v31, %v2045_v32 }
 0x3c6   : > { %v2208_v37 = vpop.permute.xlu1 %2207  ;;  %v2072_v38 = vsel %vm878_vm3, %v2053_v13, 0 }
 0x3c7   : > { %5254 = vmatmul.mubr.msk.bf16.vlgmr.msra.gmra.mxu1 %vm865_vm9, %v5705_v30  ;;  %1927 = vmatpush1.bf16.msra.mxu0 %v1884_v33 }
 0x3c8   : > { %v2047_v35 = vpop.permute.xlu0 %2046  ;;  %1789 = vmatprep.mubr.bf16.mxu1 %v8397_v61 }
 0x3c9   : > { %v2054_v36 = vsel %vm8421_vm15, %v2045_v32, %v2047_v35 }
 0x3ca   : > { %5271 = vmatmul.mubr.msk.bf16.vlgmr.msra.gmra.mxu0 %vm865_vm9, %v5706_v34  ;;  %5287 = vmatprep.subr.msk.bf16.mxu1 %vm878_vm3, %v2054_v36  ;;  %v2212_v42 = vpop.permute.xlu1 %2211 }
 0x3cb   : > { %2088 = vmatpush1.bf16.msra.mxu1 %v2072_v38  ;;  %1954 = vmatprep.mubr.bf16.mxu0 %v8397_v61 }
 0x3cc   : > { %v2210_v40 = vpop.permute.xlu0 %2209 }
 0x3cd   : > { %v2218_v41 = vsel %vm8420_vm1, %v2208_v37, %v2210_v40  ;;  %v2219_v43 = vsel %vm8420_vm1, %v2210_v40, %v2212_v42 }
 0x3ce   : > { %5304 = vmatprep.subr.msk.bf16.mxu0 %vm878_vm3, %v2219_v43  ;;  %v2237_v45 = vsel %vm878_vm3, %v2218_v41, 0  ;;  %v2041_v47 = vpop.permute.xlu1 %2040 }
 0x3cf   : > { %5255 = vmatmul.mubr.msk.bf16.gmra.mxu1 %vm865_vm9, %v5707_v39  ;;  %2253 = vmatpush1.bf16.msra.mxu0 %v2237_v45 }
 0x3d0   : > { %v2039_v46 = vpop.permute.xlu0 %2038  ;;  %1799 = vmatprep.mubr.bf16.mxu1 %v8397_v61 }
 0x3d1   : > { %v2052_v48 = vsel %vm8421_vm15, %v2039_v46, %v2041_v47 }
 0x3d2   : > { %5272 = vmatmul.mubr.msk.bf16.gmra.mxu0 %vm865_vm9, %v5708_v44  ;;  %2089 = vmatprep.subr.bf16.mxu1 %v2052_v48  ;;  %v2204_v54 = vpop.permute.xlu1 %2203 }
 0x3d3   : > { %1964 = vmatprep.mubr.bf16.mxu0 %v8397_v61 }
 0x3d4   : > { %v2037_v51 = vpop.permute.xlu0 %2036 }
 0x3d5   : > { %v2051_v53 = vsel %vm8421_vm15, %v2037_v51, %v2039_v46 }
 0x3d6   : > { %2090 = vmatpush1.bf16.msra.mxu1 %v2051_v53  ;;  %v2202_v56 = vpop.permute.xlu1 %2201 }
 0x3d7   : > { %5256 = vmatmul.mubr.msk.bf16.gmra.mxu1 %vm865_vm9, %v5709_v49  ;;  %v2216_v58 = vsel %vm8420_vm1, %v2202_v56, %v2204_v54 }
 0x3d8   : > { %v2206_v50 = vpop.permute.xlu0 %2205  ;;  %1809 = vmatprep.mubr.bf16.mxu1 %v8397_v61 }
 0x3d9   : > { %v2217_v57 = vsel %vm8420_vm1, %v2204_v54, %v2206_v50 }
 0x3da   : > { %5273 = vmatmul.mubr.msk.bf16.gmra.mxu0 %vm865_vm9, %v5710_v55  ;;  %2254 = vmatprep.subr.bf16.mxu0 %v2217_v57  ;;  %v2035_v63 = vpop.permute.xlu1 %2034 }
 0x3db   : > { %2255 = vmatpush1.bf16.msra.mxu0 %v2216_v58  ;;  %1974 = vmatprep.mubr.bf16.mxu0 %v8397_v61 }
 0x3dc   : > { %v2033_v62 = vpop.permute.xlu0 %2032 }
 0x3dd   : > { %v2050_v0 = vsel %vm8421_vm15, %v2033_v62, %v2035_v63 }
 0x3de   : > { %2091 = vmatprep.subr.bf16.mxu1 %v2050_v0  ;;  %v2198_v14 = vpop.permute.xlu1 %2197 }
 0x3df   : > { %5257 = vmatmul.mubr.msk.bf16.gmra.mxu1 %vm865_vm9, %v5711_v59 }
 0x3e0   : > { %v2031_v60 = vpop.permute.xlu0 %2030  ;;  %2109 = vmatprep.mubr.bf16.mxu1 %v8397_v61 }
 0x3e1   : > { %v2049_v9 = vsel %vm8421_vm15, %v2031_v60, %v2033_v62 }
 0x3e2   : > { %5274 = vmatmul.mubr.msk.bf16.gmra.mxu0 %vm865_vm9, %v5712_v1  ;;  %2092 = vmatpush1.bf16.msra.mxu1 %v2049_v9  ;;  %v2196_v52 = vpop.permute.xlu1 %2195 }
 0x3e3   : > { %2274 = vmatprep.mubr.bf16.mxu0 %v8397_v61  ;;  %v2214_v20 = vsel %vm8420_vm1, %v2196_v52, %v2198_v14 }
 0x3e4   : > { %v2200_v18 = vpop.permute.xlu0 %2199 }
 0x3e5   : > { %v2215_v21 = vsel %vm8420_vm1, %v2198_v14, %v2200_v18 }
 0x3e6   : > { %2256 = vmatprep.subr.bf16.mxu0 %v2215_v21 }
 0x3e7   : > { %5288 = vmatmul.mubr.msk.bf16.vlgmr.msra.gmra.mxu1 %vm865_vm9, %v5713_v15  ;;  %2257 = vmatpush1.bf16.msra.mxu0 %v2214_v20 }
 0x3e8   : > { %2119 = vmatprep.mubr.bf16.mxu1 %v8397_v61 }
 0x3ea   : > { %5305 = vmatmul.mubr.msk.bf16.vlgmr.msra.gmra.mxu0 %vm865_vm9, %v5714_v22 }
 0x3eb   : > { %2284 = vmatprep.mubr.bf16.mxu0 %v8397_v61 }
 0x3ef   : > { %5289 = vmatmul.mubr.msk.bf16.gmra.mxu1 %vm865_vm9, %v5715_v23 }
 0x3f0   : > { %2129 = vmatprep.mubr.bf16.mxu1 %v8397_v61 }
 0x3f2   : > { %5306 = vmatmul.mubr.msk.bf16.gmra.mxu0 %vm865_vm9, %v5716_v24 }
 0x3f3   : > { %2294 = vmatprep.mubr.bf16.mxu0 %v8397_v61 }
 0x3f7   : > { %5290 = vmatmul.mubr.msk.bf16.gmra.mxu1 %vm865_vm9, %v5717_v25 }
 0x3f8   : > { %2139 = vmatprep.mubr.bf16.mxu1 %v8397_v61 }
 0x3fa   : > { %5307 = vmatmul.mubr.msk.bf16.gmra.mxu0 %vm865_vm9, %v5718_v17 }
 0x3fb   : > { %2304 = vmatprep.mubr.bf16.mxu0 %v8397_v61 }
 0x3ff   : > { %5291 = vmatmul.mubr.msk.bf16.gmra.mxu1 %vm865_vm9, %v5719_v27 }
 0x400   : > { %2989 = vmatprep.mubr.bf16.mxu1 %v8397_v61 }
 0x402   : > { %5308 = vmatmul.mubr.msk.bf16.gmra.mxu0 %vm865_vm9, %v5720_v19 }
 0x403   : > { %3186 = vmatprep.mubr.bf16.mxu0 %v8397_v61 }
 0x419   : > { %v919_v28 = vpop.f32.mrf.mxu0 }
 0x41b   : > { %v921_v29 = vpop.f32.mrf.mxu0 }
 0x41d   : > { %v923_v26 = vpop.f32.mrf.mxu0 }
 0x41f   : > { %v6816_v30 = vpop.f32.mrf.mxu0 }
 0x421   : > { %v929_v31 = vpop.f32.mrf.mxu0 }
 0x423   : > { %v931_v32 = vpop.f32.mrf.mxu0 }
 0x425   : > { %v933_v33 = vpop.f32.mrf.mxu0 }
 0x427   : > { %v6818_v34 = vpop.f32.mrf.mxu0 }
 0x429   : > { %v939_v13 = vpop.f32.mrf.mxu0 }
 0x42b   : > { %v941_v35 = vpop.f32.mrf.mxu0 }
 0x42d   : > { %v943_v36 = vpop.f32.mrf.mxu0 }
 0x42f   : > { %v6820_v37 = vpop.f32.mrf.mxu0 }
 0x431   : > { %v949_v38 = vpop.f32.mrf.mxu0 }
 0x433   : > { %v951_v39 = vpop.f32.mrf.mxu0 }
 0x435   : > { %v953_v40 = vpop.f32.mrf.mxu0 }
 0x437   : > { %v6822_v43 = vpop.f32.mrf.mxu0 }
 0x446   : > { %v1093_v41 = vpop.f32.mrf.mxu1 }
 0x447   : > { %v1094_v42 = vadd.f32 %v1093_v41, %v919_v28 }
 0x448   : > { %v1095_v44 = vpop.f32.mrf.mxu1 }
 0x449   : > { %v1096_v45 = vadd.f32 %v1095_v44, %v921_v29 }
 0x44a   : > { %v1097_v46 = vpop.f32.mrf.mxu1  ;;  %v1286_v47 = vpop.f32.mrf.mxu0 }
 0x44b   : > { %v1098_v48 = vadd.f32 %v1097_v46, %v923_v26  ;;  %v6824_v49 = vadd.f32 %v1286_v47, %v1094_v42 }
 0x44c   : > { %v6826_v51 = vpop.f32.mrf.mxu1  ;;  %v1288_v53 = vpop.f32.mrf.mxu0 }
 0x44d   : > { %v6828_v54 = vadd.f32 %v1288_v53, %v1096_v45 }
 0x44e   : > { %v1103_v55 = vpop.f32.mrf.mxu1  ;;  %v1290_v50 = vpop.f32.mrf.mxu0 }
 0x44f   : > { %v1104_v56 = vadd.f32 %v1103_v55, %v929_v31  ;;  %v6830_v57 = vadd.f32 %v1290_v50, %v1098_v48 }
 0x450   : > { %v1105_v58 = vpop.f32.mrf.mxu1  ;;  %v6832_v59 = vpop.f32.mrf.mxu0 }
 0x451   : > { %v1106_v62 = vadd.f32 %v1105_v58, %v931_v32 }
 0x452   : > { %v1107_v63 = vpop.f32.mrf.mxu1  ;;  %v1296_v0 = vpop.f32.mrf.mxu0 }
 0x453   : > { %v1108_v1 = vadd.f32 %v1107_v63, %v933_v33  ;;  %v1329_v60 = vadd.f32 %v1296_v0, %v1104_v56 }
 0x454   : > { %v6834_v9 = vpop.f32.mrf.mxu1  ;;  %v1298_v14 = vpop.f32.mrf.mxu0 }
 0x455   : > { %v1330_v15 = vadd.f32 %v1298_v14, %v1106_v62 }
 0x456   : > { %v1113_v18 = vpop.f32.mrf.mxu1  ;;  %v1300_v52 = vpop.f32.mrf.mxu0 }
 0x457   : > { %v1114_v21 = vadd.f32 %v1113_v18, %v939_v13  ;;  %v6836_v20 = vadd.f32 %v1300_v52, %v1108_v1 }
 0x458   : > { %v1115_v22 = vpop.f32.mrf.mxu1  ;;  %v6838_v23 = vpop.f32.mrf.mxu0 }
 0x459   : > { %v1116_v24 = vadd.f32 %v1115_v22, %v941_v35 }
 0x45a   : > { %v1117_v25 = vpop.f32.mrf.mxu1  ;;  %v1306_v17 = vpop.f32.mrf.mxu0 }
 0x45b   : > { %v1118_v27 = vadd.f32 %v1117_v25, %v943_v36  ;;  %v1333_v19 = vadd.f32 %v1306_v17, %v1114_v21 }
 0x45c   : > { %v6840_v28 = vpop.f32.mrf.mxu1  ;;  %v1308_v29 = vpop.f32.mrf.mxu0 }
 0x45d   : > { %v1334_v26 = vadd.f32 %v1308_v29, %v1116_v24 }
 0x45e   : > { %v1123_v31 = vpop.f32.mrf.mxu1  ;;  %v1310_v32 = vpop.f32.mrf.mxu0 }
 0x45f   : > { %v1124_v33 = vadd.f32 %v1123_v31, %v949_v38  ;;  %v1335_v41 = vadd.f32 %v1310_v32, %v1118_v27 }
 0x460   : > { %v1125_v42 = vpop.f32.mrf.mxu1  ;;  %v6842_v13 = vpop.f32.mrf.mxu0 }
 0x461   : > { %v1126_v44 = vadd.f32 %v1125_v42, %v951_v39 }
 0x462   : > { %v1127_v45 = vpop.f32.mrf.mxu1  ;;  %v1316_v46 = vpop.f32.mrf.mxu0 }
 0x463   : > { %v1128_v47 = vadd.f32 %v1127_v45, %v953_v40  ;;  %v1337_v35 = vadd.f32 %v1316_v46, %v1124_v33 }
 0x464   : > { %v1318_v48 = vpop.f32.mrf.mxu0  ;;  %v6844_v53 = vpop.f32.mrf.mxu1 }
 0x465   : > { %v1338_v36 = vadd.f32 %v1318_v48, %v1126_v44 }
 0x466   : > { %v1320_v55 = vpop.f32.mrf.mxu0 }
 0x467   : > { %v1339_v50 = vadd.f32 %v1320_v55, %v1128_v47  ;;  %v6846_v56 = vpop.f32.mrf.mxu1 }
 0x468   : > { %v6848_v58 = vpop.f32.mrf.mxu0 }
 0x469   : > { %v6850_v38 = vpop.f32.mrf.mxu1 }
 0x46a   : > { %v6852_v62 = vpop.f32.mrf.mxu0 }
 0x46b   : > { %v6854_v63 = vpop.f32.mrf.mxu1 }
 0x46c   : > { %v6856_v39 = vpop.f32.mrf.mxu0 }
 0x46d   : > { %v6858_v40 = vpop.f32.mrf.mxu1 }
 0x46e   : > { %v6860_v0 = vpop.f32.mrf.mxu0 }
 0x46f   : > { %v1461_v1 = vpop.f32.mrf.mxu1 }
 0x470   : > { %v1494_v14 = vadd.f32 %v1461_v1, %v1329_v60  ;;  %v6862_v18 = vpop.f32.mrf.mxu0 }
 0x471   : > { %v1463_v52 = vpop.f32.mrf.mxu1 }
 0x472   : > { %v1495_v21 = vadd.f32 %v1463_v52, %v1330_v15  ;;  %v1626_v22 = vpop.f32.mrf.mxu0 }
 0x473   : > { %v6864_v24 = vadd.f32 %v1626_v22, %v1494_v14  ;;  %v6866_v25 = vpop.f32.mrf.mxu1  ;;  %v6882_v14 = vpop.permute.xlu1 %2368 }
 0x474   : > { %v1628_v17 = vpop.f32.mrf.mxu0  ;;  %8464 = vst [vmem:[#allocation16_spill] sm:$0xff] %v6882_v14 }
 0x475   : > { %v6868_v27 = vadd.f32 %v1628_v17, %v1495_v21  ;;  %v6870_v29 = vpop.f32.mrf.mxu1 }
 0x476   : > { %v6872_v31 = vpop.f32.mrf.mxu0 }
 0x477   : > { %v1471_v32 = vpop.f32.mrf.mxu1 }
 0x478   : > { %v1498_v33 = vadd.f32 %v1471_v32, %v1333_v19  ;;  %v6874_v42 = vpop.f32.mrf.mxu0 }
 0x479   : > { %v1473_v60 = vpop.f32.mrf.mxu1 }
 0x47a   : > { %v1499_v44 = vadd.f32 %v1473_v60, %v1334_v26  ;;  %v1636_v45 = vpop.f32.mrf.mxu0 }
 0x47b   : > { %v6876_v15 = vadd.f32 %v1636_v45, %v1498_v33  ;;  %v1475_v46 = vpop.f32.mrf.mxu1  ;;  %v6890_v45 = vpop.permute.xlu1 %2412 }
 0x47c   : > { %v1500_v47 = vadd.f32 %v1475_v46, %v1335_v41  ;;  %v1638_v48 = vpop.f32.mrf.mxu0  ;;  %8466 = vst [vmem:[#allocation18_spill] sm:$0xff] %v6890_v45 }
 0x47d   : > { %v6878_v55 = vadd.f32 %v1638_v48, %v1499_v44  ;;  %v6880_v1 = vpop.f32.mrf.mxu1 }
 0x47e   : > { %v1640_v52 = vpop.f32.mrf.mxu0 }
 0x47f   : > { %v6884_v21 = vadd.f32 %v1640_v52, %v1500_v47  ;;  %v1481_v19 = vpop.f32.mrf.mxu1 }
 0x480   : > { %v1502_v22 = vadd.f32 %v1481_v19, %v1337_v35  ;;  %v6886_v17 = vpop.f32.mrf.mxu0 }
 0x481   : > { %v1483_v26 = vpop.f32.mrf.mxu1 }
 0x482   : > { %v1503_v32 = vadd.f32 %v1483_v26, %v1338_v36  ;;  %v1646_v33 = vpop.f32.mrf.mxu0  ;;  %v6900_v36 = vpop.permute.xlu1 %2353 }
 0x483   : > { %v6888_v60 = vadd.f32 %v1646_v33, %v1502_v22  ;;  %v1485_v41 = vpop.f32.mrf.mxu1  ;;  %8469 = vst [vmem:[#allocation21_spill] sm:$0xff] %v6900_v36 }
 0x484   : > { %v1504_v44 = vadd.f32 %v1485_v41, %v1339_v50  ;;  %v1648_v46 = vpop.f32.mrf.mxu0 }
 0x485   : > { %8465 = vst [vmem:[#allocation17_spill] sm:$0xff] %v6888_v60  ;;  %v6892_v48 = vadd.f32 %v1648_v46, %v1503_v32  ;;  %v6894_v7 = vpop.f32.mrf.mxu1  ;;  %v6914_v46 = vpop.permute.xlu0 %2363 }
 0x486   : > { %v1650_v47 = vpop.f32.mrf.mxu0  ;;  %v6910_v41 = vpop.permute.xlu1 %2358  ;;  %8471 = vst [vmem:[#allocation23_spill] sm:$0xff] %v6914_v46 }
 0x487   : > { %8467 = vst [vmem:[#allocation19_spill] sm:$0xff] %v6892_v48  ;;  %v6896_v52 = vadd.f32 %v1650_v47, %v1504_v44  ;;  %v1781_v35 = vpop.f32.mrf.mxu1  ;;  %8470 = vst [vmem:[#allocation22_spill] sm:$0xff] %v6910_v41 }
 0x488   : > { %v6898_v19 = vpop.f32.mrf.mxu0 }
 0x489   : > { %8468 = vst [vmem:[#allocation20_spill] sm:$0xff] %v6896_v52  ;;  %v1783_v61 = vpop.f32.mrf.mxu1  ;;  %v6930_v45 = vpop.permute.xlu0 %2343 }
 0x48a   : > { %v1946_v22 = vpop.f32.mrf.mxu0  ;;  %v6924_v11 = vpop.permute.xlu1 %2408  ;;  %8476 = vst [vmem:[#allocation28_spill] sm:$0xff] %v6930_v45 }
 0x48b   : > { %v1785_v26 = vpop.f32.mrf.mxu1  ;;  %8474 = vst [vmem:[#allocation26_spill] sm:$0xff] %v6924_v11  ;;  %v1490_v11 = vadd.f32 %v6846_v56, %v6824_v49 }
 0x48c   : > { %v6902_v33 = vpop.f32.mrf.mxu0 }
 0x48d   : > { %v6904_v3 = vpop.f32.mrf.mxu1  ;;  %v1655_v56 = vadd.f32 %v6852_v62, %v1490_v11  ;;  %v2561_v11 = vsub.s32 4, %v6061_v8  ;;  %v1120_v62 = vadd.f32 %v6840_v28, %v6820_v37 }
 0x48e   : > { %v6906_v50 = vpop.f32.mrf.mxu0  ;;  %v6940_v48 = vpop.permute.xlu1 %2348 }
 0x48f   : > { %v6908_v32 = vpop.f32.mrf.mxu1  ;;  %8479 = vst [vmem:[#allocation31_spill] sm:$0xff] %v6940_v48  ;;  %v1492_v48 = vadd.f32 %v6854_v63, %v6830_v57  ;;  %v1820_v57 = vadd.f32 %v1781_v35, %v1655_v56  ;;  %v1336_v35 = vadd.f32 %v6842_v13, %v1120_v62  ;;  %v7023_v62 = vrot.slane %v6219_v12, %v2561_v11 }
 0x490   : > { %v6912_v44 = vpop.f32.mrf.mxu0 }
 0x491   : > { %v6916_v47 = vpop.f32.mrf.mxu1  ;;  %v1985_v28 = vadd.f32 %v1946_v22, %v1820_v57  ;;  %vm2678_vm15 = vcmp.ne.s16.totalorder %v7023_v62, 0 }
 0x492   : > { %v6918_v2 = vpop.f32.mrf.mxu0 }
 0x493   : > { %8472 = vst [vmem:[#allocation24_spill] sm:$0xff] %v6918_v2  ;;  %v6920_v5 = vpop.f32.mrf.mxu1  ;;  %v1491_v2 = vadd.f32 %v6850_v38, %v6828_v54 }
 0x494   : > { %v6922_v4 = vpop.f32.mrf.mxu0 }
 0x495   : > { %8473 = vst [vmem:[#allocation25_spill] sm:$0xff] %v6922_v4  ;;  %v6926_v16 = vpop.f32.mrf.mxu1  ;;  %v1656_v54 = vadd.f32 %v6856_v39, %v1491_v2  ;;  %v1496_v2 = vadd.f32 %v6866_v25, %v6836_v20  ;;  %v7001_v20 = vrot.slane %v6208_v6, %v2561_v11 }
 0x496   : > { %v6928_v14 = vpop.f32.mrf.mxu0 }
 0x497   : > { %8475 = vst [vmem:[#allocation27_spill] sm:$0xff] %v6928_v14  ;;  %v6932_v41 = vpop.f32.mrf.mxu1  ;;  %v6948_v14 = vpop.permute.xlu0 %2416  ;;  %v1821_v39 = vadd.f32 %v1783_v61, %v1656_v54  ;;  %v2558_v61 = vrot.slane %v6208_v6, %v6064_v10  ;;  %v1661_v25 = vadd.f32 %v6872_v31, %v1496_v2  ;;  %v2672_v6 = vrot.slane %v6219_v12, %v6064_v10 }
 0x498   : > { %v6934_v36 = vpop.f32.mrf.mxu0  ;;  %8481 = vst [vmem:[#allocation33_spill] sm:$0xff] %v6948_v14  ;;  %v1824_v31 = vadd.f32 %v6908_v32, %v6864_v24  ;;  %v1828_v24 = vadd.f32 %v6932_v41, %v6876_v15  ;;  %vm2564_vm1 = vcmp.ne.s16.totalorder %v7001_v20, 0 }
 0x499   : > { %8477 = vst [vmem:[#allocation29_spill] sm:$0xff] %v6934_v36  ;;  %v6936_v46 = vpop.f32.mrf.mxu1  ;;  %v1100_v36 = vadd.f32 %v6826_v51, %v6816_v30  ;;  %v1110_v30 = vadd.f32 %v6834_v9, %v6818_v34  ;;  %v1657_v34 = vadd.f32 %v6860_v0, %v1492_v48  ;;  %vm7035_vm3 = vcmp.ne.s16.totalorder %v2558_v61, 0 }
 0x49a   : > { %v6938_v52 = vpop.f32.mrf.mxu0  ;;  %vm7042_vm9 = vcmp.ne.s16.totalorder %v2672_v6, 0 }
 0x49b   : > { %8478 = vst [vmem:[#allocation30_spill] sm:$0xff] %v6938_v52  ;;  %v6942_v60 = vpop.f32.mrf.mxu1  ;;  %v1328_v49 = vadd.f32 %v6832_v59, %v1100_v36  ;;  %v1332_v59 = vadd.f32 %v6838_v23, %v1110_v30  ;;  %v1130_v36 = vadd.f32 %v6844_v53, %v6822_v43  ;;  %v1501_v43 = vadd.f32 %v6880_v1, %v1336_v35 }
 0x49c   : > { %8480 = vst [vmem:[#allocation32_spill] sm:$0xff] %v6942_v60  ;;  %v6946_v4 = vpop.f32.mrf.mxu0  ;;  %v8488_v41 = vld [vmem:[#allocation25_spill] sm:$0xff] }
 0x49d   : > { %v6950_v45 = vpop.f32.mrf.mxu1  ;;  %v1493_v38 = vadd.f32 %v6858_v40, %v1328_v49  ;;  %v1497_v23 = vadd.f32 %v6870_v29, %v1332_v59  ;;  %v1822_v49 = vadd.f32 %v1785_v26, %v1657_v34  ;;  %v1340_v13 = vadd.f32 %v6848_v58, %v1130_v36 }
 0x49e   : > { %8482 = vst [vmem:[#allocation34_spill] sm:$0xff] %v6950_v45  ;;  %v6956_v52 = vpop.f32.mrf.mxu0  ;;  %v6966_v45 = vpop.permute.xlu1 %2396  ;;  %v1986_v29 = vadd.f32 %v6902_v33, %v1821_v39  ;;  %v1826_v33 = vadd.f32 %v6920_v5, %v1661_v25 }
 0x49f   : > { %v6960_v60 = vpop.f32.mrf.mxu1  ;;  %v1658_v37 = vadd.f32 %v6862_v18, %v1493_v38  ;;  %v1662_v54 = vadd.f32 %v6874_v42, %v1497_v23  ;;  %v1505_v58 = vadd.f32 %v6894_v7, %v1340_v13  ;;  %v1987_v1 = vadd.f32 %v6906_v50, %v1822_v49 }
 0x4a0   : > { %8483 = vst [vmem:[#allocation35_spill] sm:$0xff] %v6960_v60  ;;  %v6964_v14 = vpop.f32.mrf.mxu0  ;;  %v6976_v60 = vpop.permute.xlu0 %2404  ;;  %v1666_v42 = vadd.f32 %v6886_v17, %v1501_v43 }
 0x4a1   : > { %v6970_v51 = vpop.f32.mrf.mxu1  ;;  %v1823_v18 = vadd.f32 %v6904_v3, %v1658_v37  ;;  %v1825_v3 = vadd.f32 %v6916_v47, %v6868_v27  ;;  %v1827_v7 = vadd.f32 %v6926_v16, %v1662_v54  ;;  %v1829_v27 = vadd.f32 %v6936_v46, %v6878_v55  ;;  %v8489_v55 = vld [vmem:[#allocation27_spill] sm:$0xff] }
 0x4a2   : > { %v6974_v63 = vpop.f32.mrf.mxu0  ;;  %v2334_v48 = vpop.permute.xlu1 %2333  ;;  %v1670_v12 = vadd.f32 %v6898_v19, %v1505_v58  ;;  %v1991_v46 = vadd.f32 %v8489_v55, %v1826_v33  ;;  %v8499_v55 = vld [vmem:[#allocation28_spill] sm:$0xff] }
 0x4a3   : > { %v6983_v9 = vpop.f32.mrf.mxu1  ;;  %v1988_v2 = vadd.f32 %v6912_v44, %v1823_v18  ;;  %v8484_v11 = vld [vmem:[#allocation32_spill] sm:$0xff]  ;;  %v1990_v23 = vadd.f32 %v8488_v41, %v1825_v3 }
 0x4a4   : > { %v6987_v40 = vpop.f32.mrf.mxu0  ;;  %v7010_v30 = vpop.permute.xlu0 %2400  ;;  %v1830_v17 = vadd.f32 %v8484_v11, %v6884_v21  ;;  %v8487_v44 = vld [vmem:[#allocation24_spill] sm:$0xff]  ;;  %v8492_v21 = vld [vmem:[#allocation29_spill] sm:$0xff] }
 0x4a5   : > { %v6993_v56 = vpop.f32.mrf.mxu1  ;;  %v1989_v15 = vadd.f32 %v8487_v44, %v1824_v31  ;;  %v1992_v13 = vadd.f32 %v8492_v21, %v1827_v7  ;;  %v8494_v54 = vld [vmem:[#allocation34_spill] sm:$0xff] }
 0x4a6   : > { %v6996_v0 = vpop.f32.mrf.mxu0  ;;  %v2339_v47 = vpop.permute.xlu1 %2338  ;;  %v1831_v58 = vadd.f32 %v8494_v54, %v1666_v42  ;;  %v1995_v31 = vadd.f32 %v6956_v52, %v1830_v17  ;;  %v8498_v17 = vld [vmem:[#allocation20_spill] sm:$0xff] }
 0x4a7   : > { %v2111_v53 = vpop.f32.mrf.mxu1  ;;  %v8496_v7 = vld [vmem:[#allocation35_spill] sm:$0xff] }
 0x4a8   : > { %v2150_v22 = vadd.f32 %v2111_v53, %v1985_v28  ;;  %v7008_v26 = vpop.f32.mrf.mxu0  ;;  %v2389_v49 = vpop.permute.xlu0 %2388  ;;  %v1996_v52 = vadd.f32 %v6964_v14, %v1831_v58 }
 0x4a9   : > { %v2113_v38 = vpop.f32.mrf.mxu1 }
 0x4aa   : > { %v2151_v57 = vadd.f32 %v2113_v38, %v1986_v29  ;;  %v2276_v59 = vpop.f32.mrf.mxu0  ;;  %v8493_v29 = vld [vmem:[#allocation30_spill] sm:$0xff]  ;;  %v2393_v38 = vpop.permute.xlu1 %2392 }
 0x4ab   : > { %v2315_v34 = vadd.f32 %v2276_v59, %v2150_v22  ;;  %v2115_v50 = vpop.f32.mrf.mxu1  ;;  %v1993_v18 = vadd.f32 %v8493_v29, %v1828_v24  ;;  %v1994_v22 = vadd.f32 %v6946_v4, %v1829_v27  ;;  %v8495_v59 = vld [vmem:[#allocation17_spill] sm:$0xff] }
 0x4ac   : > { %v2152_v5 = vadd.f32 %v2115_v50, %v1987_v1  ;;  %v2278_v32 = vpop.f32.mrf.mxu0  ;;  %v8497_v50 = vld [vmem:[#allocation19_spill] sm:$0xff] }
 0x4ad   : > { %v2371_v39 = vmul.f32 %v2334_v48, %v2315_v34  ;;  %v2316_v16 = vadd.f32 %v2278_v32, %v2151_v57  ;;  %v2117_v35 = vpop.f32.mrf.mxu1  ;;  %v1832_v34 = vadd.f32 %v8496_v7, %v8495_v59 }
 0x4ae   : > { %v2153_v37 = vadd.f32 %v2117_v35, %v1988_v2  ;;  %v2280_v28 = vpop.f32.mrf.mxu0  ;;  %v1833_v2 = vadd.f32 %v6970_v51, %v8497_v50  ;;  %v1835_v35 = vadd.f32 %v6993_v56, %v1670_v12 }
 0x4af   : > { %v2372_v43 = vmul.f32 %v2334_v48, %v2316_v16  ;;  %v2419_v61 = vadd.f32 %v2389_v49, %v2371_v39  ;;  %v2317_v53 = vadd.f32 %v2280_v28, %v2152_v5  ;;  %v2121_v25 = vpop.f32.mrf.mxu1  ;;  %v1834_v16 = vadd.f32 %v6983_v9, %v8498_v17 }
 0x4b0   : > { %v2154_v6 = vadd.f32 %v2121_v25, %v1989_v15  ;;  %v2282_v1 = vpop.f32.mrf.mxu0  ;;  %v7064_v28 = vadd.f32 %v6987_v40, %v1833_v2  ;;  %v7072_v25 = vadd.f32 %v7008_v26, %v1835_v35 }
 0x4b1   : > { %v2420_v3 = vadd.f32 %v2389_v49, %v2372_v43  ;;  %v2373_v48 = vmul.f32 %v2339_v47, %v2317_v53  ;;  %v2318_v33 = vadd.f32 %v2282_v1, %v2153_v37  ;;  %v2123_v57 = vpop.f32.mrf.mxu1  ;;  %v2435_v24 = vmax.f32 %v2419_v61, 0.0 }
 0x4b2   : > { %v2155_v5 = vadd.f32 %v2123_v57, %v1990_v23  ;;  %v2286_v4 = vpop.f32.mrf.mxu0  ;;  %v7069_v53 = vadd.f32 %v6996_v0, %v1834_v16 }
 0x4b3   : > { %v2436_v27 = vmax.f32 %v2420_v3, 0.0  ;;  %v2374_v42 = vmul.f32 %v2339_v47, %v2318_v33  ;;  %v2319_v32 = vadd.f32 %v2286_v4, %v2154_v6  ;;  %v2421_v11 = vadd.f32 %v2393_v38, %v2373_v48  ;;  %v2125_v39 = vpop.f32.mrf.mxu1  ;;  %v8500_v3 = vld [vmem:[#allocation31_spill] sm:$0xff]  ;;  %v8501_v4 = vld [vmem:[#allocation21_spill] sm:$0xff] }
 0x4b4   : > { %v2156_v44 = vadd.f32 %v2125_v39, %v1991_v46  ;;  %v2288_v15 = vpop.f32.mrf.mxu0  ;;  %v1997_v47 = vadd.f32 %v6974_v63, %v1832_v34 }
 0x4b5   : > { %v5514_v41 = vpack.c.bf16 %v2436_v27, %v2435_v24  ;;  %v2375_v51 = vmul.f32 %v8499_v55, %v2319_v32  ;;  %v2422_v49 = vadd.f32 %v2393_v38, %v2374_v42  ;;  %v2437_v23 = vmax.f32 %v2421_v11, 0.0  ;;  %v2127_v37 = vpop.f32.mrf.mxu1 }
 0x4b6   : > { %v2320_v21 = vadd.f32 %v2288_v15, %v2155_v5  ;;  %v2157_v14 = vadd.f32 %v2127_v37, %v1992_v13  ;;  %v2290_v43 = vpop.f32.mrf.mxu0 }
 0x4b7   : > { %v2423_v9 = vadd.f32 %v6966_v45, %v2375_v51  ;;  %v2438_v61 = vmax.f32 %v2422_v49, 0.0  ;;  %v2451_v56 = vpack.c.bf16 %v2437_v23, %v2435_v24  ;;  %v2321_v12 = vadd.f32 %v2290_v43, %v2156_v44  ;;  %v2131_v46 = vpop.f32.mrf.mxu1  ;;  %2491 = vrot.lane.b32.xlu0 %v5514_v41, %s5918_s27 }
 0x4b8   : > { %v2376_v63 = vmul.f32 %v8499_v55, %v2320_v21  ;;  %v2158_v40 = vadd.f32 %v2131_v46, %v1993_v18  ;;  %v2292_v29 = vpop.f32.mrf.mxu0 }
 0x4b9   : > { %v2439_v13 = vmax.f32 %v2423_v9, 0.0  ;;  %v2452_v54 = vpack.c.bf16 %v2438_v61, %v2436_v27  ;;  %v5515_v58 = vpack.c.bf16 %v2438_v61, %v2437_v23  ;;  %v2565_v6 = vsel %vm7035_vm3, %v2451_v56, 0  ;;  %v2133_v1 = vpop.f32.mrf.mxu1 }
 0x4ba   : > { %v2679_v38 = vsel %vm7042_vm9, %v2451_v56, 0  ;;  %v2424_v0 = vadd.f32 %v6966_v45, %v2376_v63  ;;  %v2377_v48 = vmul.f32 %v8500_v3, %v2321_v12  ;;  %v2322_v26 = vadd.f32 %v2292_v29, %v2157_v14  ;;  %v2296_v33 = vpop.f32.mrf.mxu0 }
 0x4bb   : > { %v2566_v18 = vsel %vm2564_vm1, %v2452_v54, 0  ;;  %v2680_v57 = vsel %vm2678_vm15, %v2452_v54, 0  ;;  %v2159_v59 = vadd.f32 %v2133_v1, %v1994_v22  ;;  %v2323_v7 = vadd.f32 %v2296_v33, %v2158_v40  ;;  %v2135_v34 = vpop.f32.mrf.mxu1  ;;  %2493 = vrot.lane.b32.xlu1 %v5515_v58, %s5918_s27  ;;  %v8503_v54 = vld [vmem:[#allocation26_spill] sm:$0xff]  ;;  %v8504_v33 = vld [vmem:[#allocation23_spill] sm:$0xff] }
 0x4bc   : > { %v2440_v50 = vmax.f32 %v2424_v0, 0.0  ;;  %v2425_v2 = vadd.f32 %v7010_v30, %v2377_v48  ;;  %v2378_v45 = vmul.f32 %v8500_v3, %v2322_v26  ;;  %v2160_v24 = vadd.f32 %v2135_v34, %v1995_v31  ;;  %v2298_v5 = vpop.f32.mrf.mxu0 }
 0x4bd   : > { %v2379_v27 = vmul.f32 %v8501_v4, %v2323_v7  ;;  %v2324_v42 = vadd.f32 %v2298_v5, %v2159_v59  ;;  %v2137_v32 = vpop.f32.mrf.mxu1  ;;  %v5317_v11 = vcombine.low %v2565_v6, %v2566_v18  ;;  %v5318_v39 = vcombine.high %v2565_v6, %v2566_v18 }
 0x4be   : > { %v5516_v17 = vpack.c.bf16 %v2440_v50, %v2439_v13  ;;  %v2441_v16 = vmax.f32 %v2425_v2, 0.0  ;;  %v2426_v22 = vadd.f32 %v7010_v30, %v2378_v45  ;;  %v2161_v35 = vadd.f32 %v2137_v32, %v1996_v52  ;;  %v2300_v44 = vpop.f32.mrf.mxu0  ;;  %v8502_v52 = vld [vmem:[#allocation22_spill] sm:$0xff] }
 0x4bf   : > { %v2427_v15 = vadd.f32 %v6976_v60, %v2379_v27  ;;  %v2380_v41 = vmul.f32 %v8501_v4, %v2324_v42  ;;  %v2325_v55 = vadd.f32 %v2300_v44, %v2160_v24  ;;  %2605 = vrot.lane.b32.xlu0 %v5317_v11, %s5918_s27  ;;  %v2141_v31 = vpop.f32.mrf.mxu1  ;;  %2607 = vrot.lane.b32.xlu1 %v5318_v39, %s5918_s27  ;;  %v8505_v24 = vld [vmem:[#allocation18_spill] sm:$0xff] }
 0x4c0   : > { %v2453_v51 = vpack.c.bf16 %v2441_v16, %v2439_v13  ;;  %v2442_v49 = vmax.f32 %v2426_v22, 0.0  ;;  %v2162_v23 = vadd.f32 %v2141_v31, %v1997_v47  ;;  %v2302_v37 = vpop.f32.mrf.mxu0  ;;  %v5325_v21 = vcombine.low %v2679_v38, %v2680_v57 }
 0x4c1   : > { %v2443_v14 = vmax.f32 %v2427_v15, 0.0  ;;  %v2428_v30 = vadd.f32 %v6976_v60, %v2380_v41  ;;  %v2381_v43 = vmul.f32 %v8502_v52, %v2325_v55  ;;  %v2326_v9 = vadd.f32 %v2302_v37, %v2161_v35  ;;  %v2143_v61 = vpop.f32.mrf.mxu1  ;;  %v8507_v55 = vld [vmem:[#allocation33_spill] sm:$0xff] }
 0x4c2   : > { %v2454_v56 = vpack.c.bf16 %v2442_v49, %v2440_v50  ;;  %v5517_v12 = vpack.c.bf16 %v2442_v49, %v2441_v16  ;;  %v2163_v46 = vadd.f32 %v2143_v61, %v7064_v28  ;;  %v2306_v63 = vpop.f32.mrf.mxu0  ;;  %v5326_v40 = vcombine.high %v2679_v38, %v2680_v57  ;;  %v8506_v16 = vld [vmem:[#allocation16_spill] sm:$0xff] }
 0x4c3   : > { %v2444_v29 = vmax.f32 %v2428_v30, 0.0  ;;  %v2429_v13 = vadd.f32 %v8503_v54, %v2381_v43  ;;  %v2382_v47 = vmul.f32 %v8502_v52, %v2326_v9  ;;  %v2327_v58 = vadd.f32 %v2306_v63, %v2162_v23  ;;  %2719 = vrot.lane.b32.xlu0 %v5325_v21, %s5918_s27  ;;  %v2145_v6 = vpop.f32.mrf.mxu1 }
 0x4c4   : > { %v2164_v60 = vadd.f32 %v2145_v6, %v7069_v53  ;;  %2721 = vrot.lane.b32.xlu1 %v5326_v40, %s5918_s27  ;;  %v2308_v1 = vpop.f32.mrf.mxu0  ;;  %v2567_v0 = vsel %vm7035_vm3, %v2453_v51, 0  ;;  %v2568_v28 = vsel %vm2564_vm1, %v2454_v56, 0  ;;  %v2681_v38 = vsel %vm7042_vm9, %v2453_v51, 0 }
 0x4c5   : > { %v5518_v3 = vpack.c.bf16 %v2444_v29, %v2443_v14  ;;  %v2445_v48 = vmax.f32 %v2429_v13, 0.0  ;;  %v2430_v26 = vadd.f32 %v8503_v54, %v2382_v47  ;;  %v2383_v18 = vmul.f32 %v8504_v33, %v2327_v58  ;;  %v2147_v57 = vpop.f32.mrf.mxu1 }
 0x4c6   : > { %v2328_v53 = vadd.f32 %v2308_v1, %v2163_v46  ;;  %v2165_v59 = vadd.f32 %v2147_v57, %v7072_v25  ;;  %v2310_v7 = vpop.f32.mrf.mxu0  ;;  %v5319_v34 = vcombine.low %v2567_v0, %v2568_v28  ;;  %v5320_v50 = vcombine.high %v2567_v0, %v2568_v28 }
 0x4c7   : > { %v2455_v2 = vpack.c.bf16 %v2445_v48, %v2443_v14  ;;  %v2446_v45 = vmax.f32 %v2430_v26, 0.0  ;;  %v2431_v5 = vadd.f32 %v8505_v24, %v2383_v18  ;;  %v2329_v4 = vadd.f32 %v2310_v7, %v2164_v60  ;;  %2495 = vrot.lane.b32.xlu0 %v5516_v17, %s5918_s27 }
 0x4c8   : > { %v2384_v27 = vmul.f32 %v8504_v33, %v2328_v53  ;;  %2497 = vrot.lane.b32.xlu1 %v5517_v12, %s5918_s27  ;;  %v2312_v42 = vpop.f32.mrf.mxu0  ;;  %v2682_v32 = vsel %vm2678_vm15, %v2454_v56, 0 }
 0x4c9   : > { %v2456_v11 = vpack.c.bf16 %v2446_v45, %v2444_v29  ;;  %v5519_v25 = vpack.c.bf16 %v2446_v45, %v2445_v48  ;;  %v2447_v39 = vmax.f32 %v2431_v5, 0.0  ;;  %v2385_v22 = vmul.f32 %v8506_v16, %v2329_v4 }
 0x4ca   : > { %v2432_v35 = vadd.f32 %v8505_v24, %v2384_v27  ;;  %v2330_v44 = vadd.f32 %v2312_v42, %v2165_v59  ;;  %v5327_v15 = vcombine.low %v2681_v38, %v2682_v32  ;;  %v5328_v41 = vcombine.high %v2681_v38, %v2682_v32 }
 0x4cb   : > { %v2433_v17 = vadd.f32 %v8507_v55, %v2385_v22  ;;  %2609 = vrot.lane.b32.xlu0 %v5319_v34, %s5918_s27  ;;  %v2569_v31 = vsel %vm7035_vm3, %v2455_v2, 0  ;;  %v2570_v51 = vsel %vm2564_vm1, %v2456_v11, 0  ;;  %v2683_v49 = vsel %vm7042_vm9, %v2455_v2, 0 }
 0x4cc   : > { %v2448_v23 = vmax.f32 %v2432_v35, 0.0  ;;  %v2386_v37 = vmul.f32 %v8506_v16, %v2330_v44  ;;  %2611 = vrot.lane.b32.xlu1 %v5320_v50, %s5918_s27  ;;  %v5321_v21 = vcombine.low %v2569_v31, %v2570_v51  ;;  %v5322_v14 = vcombine.high %v2569_v31, %v2570_v51 }
 0x4cd   : > { %v2449_v30 = vmax.f32 %v2433_v17, 0.0  ;;  %v2684_v52 = vsel %vm2678_vm15, %v2456_v11, 0 }
 0x4ce   : > { %v5520_v43 = vpack.c.bf16 %v2448_v23, %v2447_v39  ;;  %v2434_v9 = vadd.f32 %v8507_v55, %v2386_v37  ;;  %v5329_v61 = vcombine.low %v2683_v49, %v2684_v52  ;;  %v5330_v56 = vcombine.high %v2683_v49, %v2684_v52 }
 0x4cf   : > { %v2457_v12 = vpack.c.bf16 %v2449_v30, %v2447_v39  ;;  %2723 = vrot.lane.b32.xlu0 %v5327_v15, %s5918_s27 }
 0x4d0   : > { %v2450_v46 = vmax.f32 %v2434_v9, 0.0  ;;  %2725 = vrot.lane.b32.xlu1 %v5328_v41, %s5918_s27 }
 0x4d1   : > { %v2571_v63 = vsel %vm7035_vm3, %v2457_v12, 0  ;;  %v2685_v40 = vsel %vm7042_vm9, %v2457_v12, 0 }
 0x4d2   : > { %v2458_v29 = vpack.c.bf16 %v2450_v46, %v2448_v23  ;;  %v5521_v54 = vpack.c.bf16 %v2450_v46, %v2449_v30 }
 0x4d3   : > { %2499 = vrot.lane.b32.xlu0 %v5518_v3, %s5918_s27 }
 0x4d4   : > { %2501 = vrot.lane.b32.xlu1 %v5519_v25, %s5918_s27  ;;  %v2572_v13 = vsel %vm2564_vm1, %v2458_v29, 0  ;;  %v2686_v47 = vsel %vm2678_vm15, %v2458_v29, 0 }
 0x4d5   : > { %v5323_v58 = vcombine.low %v2571_v63, %v2572_v13  ;;  %v5324_v6 = vcombine.high %v2571_v63, %v2572_v13  ;;  %v5331_v60 = vcombine.low %v2685_v40, %v2686_v47  ;;  %v5332_v36 = vcombine.high %v2685_v40, %v2686_v47 }
 0x4d7   : > { %2613 = vrot.lane.b32.xlu0 %v5321_v21, %s5918_s27 }
 0x4d8   : > { %2615 = vrot.lane.b32.xlu1 %v5322_v14, %s5918_s27 }
 0x4db   : > { %2727 = vrot.lane.b32.xlu0 %v5329_v61, %s5918_s27 }
 0x4dc   : > { %2729 = vrot.lane.b32.xlu1 %v5330_v56, %s5918_s27 }
 0x4df   : > { %2503 = vrot.lane.b32.xlu0 %v5520_v43, %s5918_s27 }
 0x4e0   : > { %2505 = vrot.lane.b32.xlu1 %v5521_v54, %s5918_s27 }
 0x4e3   : > { %2617 = vrot.lane.b32.xlu0 %v5323_v58, %s5918_s27 }
 0x4e4   : > { %2619 = vrot.lane.b32.xlu1 %v5324_v6, %s5918_s27 }
 0x4e7   : > { %2731 = vrot.lane.b32.xlu0 %v5331_v60, %s5918_s27 }
 0x4e8   : > { %2733 = vrot.lane.b32.xlu1 %v5332_v36, %s5918_s27 }
 0x529   : > { %v2492_v20 = vpop.permute.xlu0 %2491 }
 0x52a   : > { %v2507_v62 = vrot.slane %v2492_v20, 4 }
 0x52c   : > { %v2515_v19 = vsel %vm604_vm12, %v2507_v62, %v2492_v20  ;;  %2540 = vst.msk [vmem:[#allocation3 + $0x8] sm:$0xf] %vm554_vm2, %v2507_v62 }
 0x52d   : > { %2539 = vst.msk [vmem:[#allocation3] sm:$0xff] %vm6223_vm13, %v2515_v19  ;;  %v2494_v0 = vpop.permute.xlu1 %2493 }
 0x52e   : > { %v2508_v28 = vrot.slane %v2494_v0, 4 }
 0x530   : > { %v2516_v38 = vsel %vm604_vm12, %v2508_v28, %v2494_v0  ;;  %2542 = vst.msk [vmem:[#allocation3 + $0x14] sm:$0xf] %vm554_vm2, %v2508_v28 }
 0x531   : > { %2541 = vst.msk [vmem:[#allocation3 + $0xc] sm:$0xff] %vm6223_vm13, %v2516_v38  ;;  %v2606_v3 = vpop.permute.xlu0 %2605  ;;  %v2608_v48 = vpop.permute.xlu1 %2607 }
 0x532   : > { %v2621_v26 = vrot.slane %v2606_v3, 4  ;;  %v2622_v33 = vrot.slane %v2608_v48, 4 }
 0x534   : > { %v2629_v18 = vsel %vm604_vm12, %v2621_v26, %v2606_v3  ;;  %2654 = vst.msk [vmem:[#allocation3 + $0x68] sm:$0xf] %vm554_vm2, %v2621_v26  ;;  %v2630_v57 = vsel %vm604_vm12, %v2622_v33, %v2608_v48  ;;  %2656 = vst.msk [vmem:[#allocation3 + $0x74] sm:$0xf] %vm554_vm2, %v2622_v33  ;;  %v2807_v11 = vld [vmem:[#allocation3] sm:$0xff] }
 0x535   : > { %2653 = vst.msk [vmem:[#allocation3 + $0x60] sm:$0xff] %vm6223_vm13, %v2629_v18  ;;  %2655 = vst.msk [vmem:[#allocation3 + $0x6c] sm:$0xff] %vm6223_vm13, %v2630_v57  ;;  %v2720_v53 = vpop.permute.xlu0 %2719 }
 0x536   : > { %v2735_v59 = vrot.slane %v2720_v53, 4  ;;  %v2722_v7 = vpop.permute.xlu1 %2721 }
 0x537   : > { %v2736_v34 = vrot.slane %v2722_v7, 4  ;;  %v7170_v50 = vld [vmem:[#allocation3 + $0x8] ss:$12 sps:$4 sm:$0xff]  }
 0x538   : > { %v2743_v2 = vsel %vm604_vm12, %v2735_v59, %v2720_v53  ;;  %2768 = vst.msk [vmem:[#allocation3 + $0xc8] sm:$0xf] %vm554_vm2, %v2735_v59  ;;  %v7174_v45 = vld [vmem:[#allocation3 + $0x4] ss:$12 sps:$4 sm:$0xff]   ;;  %2908 = vrot.lane.b32.xlu0 %v7170_v50, %s8428_s21 }
 0x539   : > { %2767 = vst.msk [vmem:[#allocation3 + $0xc0] sm:$0xff] %vm6223_vm13, %v2743_v2  ;;  %v2744_v24 = vsel %vm604_vm12, %v2736_v34, %v2722_v7  ;;  %v2496_v5 = vpop.permute.xlu0 %2495  ;;  %v2809_v4 = vld [vmem:[#allocation3 + $0xc] sm:$0xff]  ;;  %2906 = vrot.lane.b32.xlu1 %v7174_v45, %s8428_s21 }
 0x53a   : > { %2770 = vst.msk [vmem:[#allocation3 + $0xd4] sm:$0xf] %vm554_vm2, %v2736_v34  ;;  %v2509_v27 = vrot.slane %v2496_v5, 4  ;;  %v2498_v42 = vpop.permute.xlu1 %2497  ;;  %v7188_v39 = vcombine.low %v2807_v11, %v2809_v4 }
 0x53b   : > { %2769 = vst.msk [vmem:[#allocation3 + $0xcc] sm:$0xff] %vm6223_vm13, %v2744_v24  ;;  %v2510_v32 = vrot.slane %v2498_v42, 4  ;;  %v7202_v17 = vld [vmem:[#allocation3 + $0x68] ss:$12 sps:$4 sm:$0xff]  }
 0x53c   : > { %v2517_v25 = vsel %vm604_vm12, %v2509_v27, %v2496_v5  ;;  %2544 = vst.msk [vmem:[#allocation3 + $0x20] sm:$0xf] %vm554_vm2, %v2509_v27  ;;  %v2783_v21 = vld [vmem:[#allocation3 + $0x60] sm:$0xff]  ;;  %v2785_v61 = vld [vmem:[#allocation3 + $0x6c] sm:$0xff] }
 0x53d   : > { %2543 = vst.msk [vmem:[#allocation3 + $0x18] sm:$0xff] %vm6223_vm13, %v2517_v25  ;;  %v2518_v16 = vsel %vm604_vm12, %v2510_v32, %v2498_v42  ;;  %v2610_v22 = vpop.permute.xlu0 %2609  ;;  %2904 = vrot.lane.b32.xlu1 %v7188_v39, %s8428_s21  ;;  %v7216_v30 = vld [vmem:[#allocation3 + $0x64] ss:$12 sps:$4 sm:$0xff]   ;;  %v7232_v54 = vcombine.low %v2783_v21, %v2785_v61 }
 0x53e   : > { %2546 = vst.msk [vmem:[#allocation3 + $0x2c] sm:$0xf] %vm554_vm2, %v2510_v32  ;;  %v2623_v35 = vrot.slane %v2610_v22, 4  ;;  %v2612_v44 = vpop.permute.xlu1 %2611 }
 0x53f   : > { %2545 = vst.msk [vmem:[#allocation3 + $0x24] sm:$0xff] %vm6223_vm13, %v2518_v16  ;;  %v2624_v15 = vrot.slane %v2612_v44, 4 }
 0x540   : > { %v2631_v41 = vsel %vm604_vm12, %v2623_v35, %v2610_v22  ;;  %2658 = vst.msk [vmem:[#allocation3 + $0x80] sm:$0xf] %vm554_vm2, %v2623_v35  ;;  %v3227_v56 = vld [vmem:[#allocation3 + $0xc0] sm:$0xff] }
 0x541   : > { %v7200_v55 = vld [vmem:[#allocation3 + $0xc8] ss:$12 sps:$4 sm:$0xff]   ;;  %2657 = vst.msk [vmem:[#allocation3 + $0x78] sm:$0xff] %vm6223_vm13, %v2631_v41  ;;  %v2632_v31 = vsel %vm604_vm12, %v2624_v15, %v2612_v44  ;;  %v2724_v51 = vpop.permute.xlu0 %2723  ;;  %3106 = vrot.lane.b32.xlu1 %v7202_v17, %s5922_s8 }
 0x542   : > { %2660 = vst.msk [vmem:[#allocation3 + $0x8c] sm:$0xf] %vm554_vm2, %v2624_v15  ;;  %v2737_v49 = vrot.slane %v2724_v51, 4  ;;  %v2726_v23 = vpop.permute.xlu1 %2725  ;;  %3328 = vrot.lane.b32.xlu0 %v7200_v55, %s8426_s26  ;;  %v7218_v52 = vld [vmem:[#allocation3 + $0xc4] ss:$12 sps:$4 sm:$0xff]  }
 0x543   : > { %2659 = vst.msk [vmem:[#allocation3 + $0x84] sm:$0xff] %vm6223_vm13, %v2632_v31  ;;  %v2738_v37 = vrot.slane %v2726_v23, 4  ;;  %v3229_v12 = vld [vmem:[#allocation3 + $0xcc] sm:$0xff] }
 0x544   : > { %v2745_v14 = vsel %vm604_vm12, %v2737_v49, %v2724_v51  ;;  %2772 = vst.msk [vmem:[#allocation3 + $0xe0] sm:$0xf] %vm554_vm2, %v2737_v49  ;;  %v7234_v13 = vcombine.low %v3227_v56, %v3229_v12  ;;  %v2811_v38 = vld [vmem:[#allocation3 + $0x18] sm:$0xff] }
 0x545   : > { %2771 = vst.msk [vmem:[#allocation3 + $0xd8] sm:$0xff] %vm6223_vm13, %v2745_v14  ;;  %v2746_v43 = vsel %vm604_vm12, %v2738_v37, %v2726_v23  ;;  %v2500_v9 = vpop.permute.xlu0 %2499  ;;  %3326 = vrot.lane.b32.xlu1 %v7218_v52, %s8426_s26  ;;  %v7250_v19 = vld [vmem:[#allocation3 + $0x20] ss:$12 sps:$4 sm:$0xff]  }
 0x546   : > { %2774 = vst.msk [vmem:[#allocation3 + $0xec] sm:$0xf] %vm554_vm2, %v2738_v37  ;;  %v2511_v46 = vrot.slane %v2500_v9, 4  ;;  %v2502_v63 = vpop.permute.xlu1 %2501  ;;  %3104 = vrot.lane.b32.xlu0 %v7216_v30, %s5922_s8  ;;  %v7248_v62 = vld [vmem:[#allocation3 + $0x1c] ss:$12 sps:$4 sm:$0xff]  }
 0x547   : > { %2773 = vst.msk [vmem:[#allocation3 + $0xe4] sm:$0xff] %vm6223_vm13, %v2746_v43  ;;  %v2512_v40 = vrot.slane %v2502_v63, 4  ;;  %v2813_v3 = vld [vmem:[#allocation3 + $0x24] sm:$0xff] }
 0x548   : > { %v2519_v29 = vsel %vm604_vm12, %v2511_v46, %v2500_v9  ;;  %2548 = vst.msk [vmem:[#allocation3 + $0x38] sm:$0xf] %vm554_vm2, %v2511_v46  ;;  %v7264_v57 = vcombine.low %v2811_v38, %v2813_v3 }
 0x549   : > { %2547 = vst.msk [vmem:[#allocation3 + $0x30] sm:$0xff] %vm6223_vm13, %v2519_v29  ;;  %v2520_v47 = vsel %vm604_vm12, %v2512_v40, %v2502_v63  ;;  %v2614_v58 = vpop.permute.xlu0 %2613  ;;  %3324 = vrot.lane.b32.xlu1 %v7234_v13, %s8426_s26  ;;  %v7266_v53 = vld [vmem:[#allocation3 + $0x80] ss:$12 sps:$4 sm:$0xff]  }
 0x54a   : > { %2550 = vst.msk [vmem:[#allocation3 + $0x44] sm:$0xf] %vm554_vm2, %v2512_v40  ;;  %v2625_v6 = vrot.slane %v2614_v58, 4  ;;  %v2616_v60 = vpop.permute.xlu1 %2615  ;;  %3102 = vrot.lane.b32.xlu0 %v7232_v54, %s5922_s8  ;;  %v7296_v15 = vld [vmem:[#allocation3 + $0x7c] ss:$12 sps:$4 sm:$0xff]  }
 0x54b   : > { %2549 = vst.msk [vmem:[#allocation3 + $0x3c] sm:$0xff] %vm6223_vm13, %v2520_v47  ;;  %v2626_v36 = vrot.slane %v2616_v60, 4  ;;  %v7310_v21 = vld [vmem:[#allocation3 + $0x78] ss:$12 sps:$4 sm:$0xff]  }
 0x54c   : > { %v2633_v20 = vsel %vm604_vm12, %v2625_v6, %v2614_v58  ;;  %2662 = vst.msk [vmem:[#allocation3 + $0x98] sm:$0xf] %vm554_vm2, %v2625_v6  ;;  %v3231_v11 = vld [vmem:[#allocation3 + $0xd8] sm:$0xff] }
 0x54d   : > { %2661 = vst.msk [vmem:[#allocation3 + $0x90] sm:$0xff] %vm6223_vm13, %v2633_v20  ;;  %v2634_v0 = vsel %vm604_vm12, %v2626_v36, %v2616_v60  ;;  %v2728_v28 = vpop.permute.xlu0 %2727  ;;  %2914 = vrot.lane.b32.xlu1 %v7250_v19, %s8428_s21  ;;  %v7278_v5 = vld [vmem:[#allocation3 + $0xe0] ss:$12 sps:$4 sm:$0xff]  }
 0x54e   : > { %2664 = vst.msk [vmem:[#allocation3 + $0xa4] sm:$0xf] %vm554_vm2, %v2626_v36  ;;  %v2739_v48 = vrot.slane %v2728_v28, 4  ;;  %v2730_v26 = vpop.permute.xlu1 %2729  ;;  %2912 = vrot.lane.b32.xlu0 %v7248_v62, %s8428_s21  ;;  %v7282_v27 = vld [vmem:[#allocation3 + $0xdc] ss:$12 sps:$4 sm:$0xff]  }
 0x54f   : > { %2663 = vst.msk [vmem:[#allocation3 + $0x9c] sm:$0xff] %vm6223_vm13, %v2634_v0  ;;  %v2740_v33 = vrot.slane %v2730_v26, 4  ;;  %v3233_v25 = vld [vmem:[#allocation3 + $0xe4] sm:$0xff] }
 0x550   : > { %v2747_v18 = vsel %vm604_vm12, %v2739_v48, %v2728_v28  ;;  %2776 = vst.msk [vmem:[#allocation3 + $0xf8] sm:$0xf] %vm554_vm2, %v2739_v48  ;;  %v7298_v41 = vcombine.low %v3231_v11, %v3233_v25 }
 0x551   : > { %2775 = vst.msk [vmem:[#allocation3 + $0xf0] sm:$0xff] %vm6223_vm13, %v2747_v18  ;;  %v2748_v59 = vsel %vm604_vm12, %v2740_v33, %v2730_v26  ;;  %v2504_v7 = vpop.permute.xlu0 %2503  ;;  %3112 = vrot.lane.b32.xlu1 %v7266_v53, %s5922_s8  ;;  %v7326_v61 = vld [vmem:[#allocation3 + $0x38] ss:$12 sps:$4 sm:$0xff]  }
 0x552   : > { %2778 = vst.msk [vmem:[#allocation3 + $0x104] sm:$0xf] %vm554_vm2, %v2740_v33  ;;  %v2513_v34 = vrot.slane %v2504_v7, 4  ;;  %v2506_v2 = vpop.permute.xlu1 %2505  ;;  %2910 = vrot.lane.b32.xlu0 %v7264_v57, %s8428_s21  ;;  %v7314_v43 = vld [vmem:[#allocation3 + $0x34] ss:$12 sps:$4 sm:$0xff]  }
 0x553   : > { %2777 = vst.msk [vmem:[#allocation3 + $0xfc] sm:$0xff] %vm6223_vm13, %v2748_v59  ;;  %v2514_v24 = vrot.slane %v2506_v2, 4  ;;  %v7328_v56 = vld [vmem:[#allocation3 + $0x30] ss:$12 sps:$4 sm:$0xff]  }
 0x554   : > { %v2521_v4 = vsel %vm604_vm12, %v2513_v34, %v2504_v7  ;;  %2552 = vst.msk [vmem:[#allocation3 + $0x50] sm:$0xf] %vm554_vm2, %v2513_v34 }
 0x555   : > { %2551 = vst.msk [vmem:[#allocation3 + $0x48] sm:$0xff] %vm6223_vm13, %v2521_v4  ;;  %v2522_v42 = vsel %vm604_vm12, %v2514_v24, %v2506_v2  ;;  %v2618_v32 = vpop.permute.xlu0 %2617  ;;  %3332 = vrot.lane.b32.xlu1 %v7282_v27, %s8426_s26  ;;  %v5747_v46 = vld [vmem:[#allocation3 + $0x98] ss:$12 sps:$4 sm:$0xff]  }
 0x556   : > { %2554 = vst.msk [vmem:[#allocation3 + $0x5c] sm:$0xf] %vm554_vm2, %v2514_v24  ;;  %v2627_v16 = vrot.slane %v2618_v32, 4  ;;  %v2620_v22 = vpop.permute.xlu1 %2619  ;;  %3334 = vrot.lane.b32.xlu0 %v7278_v5, %s8426_s26  ;;  %v5745_v12 = vld [vmem:[#allocation3 + $0x94] ss:$12 sps:$4 sm:$0xff]  }
 0x557   : > { %2553 = vst.msk [vmem:[#allocation3 + $0x54] sm:$0xff] %vm6223_vm13, %v2522_v42  ;;  %v2628_v35 = vrot.slane %v2620_v22, 4  ;;  %v5748_v63 = vld [vmem:[#allocation3 + $0x90] ss:$12 sps:$4 sm:$0xff]  }
 0x558   : > { %v2635_v44 = vsel %vm604_vm12, %v2627_v16, %v2618_v32  ;;  %2666 = vst.msk [vmem:[#allocation3 + $0xb0] sm:$0xf] %vm554_vm2, %v2627_v16 }
 0x559   : > { %2665 = vst.msk [vmem:[#allocation3 + $0xa8] sm:$0xff] %vm6223_vm13, %v2635_v44  ;;  %v2636_v31 = vsel %vm604_vm12, %v2628_v35, %v2620_v22  ;;  %v2732_v51 = vpop.permute.xlu0 %2731  ;;  %3330 = vrot.lane.b32.xlu1 %v7298_v41, %s8426_s26  ;;  %v7338_v1 = vld [vmem:[#allocation3 + $0xf8] ss:$12 sps:$4 sm:$0xff]  }
 0x55a   : > { %2668 = vst.msk [vmem:[#allocation3 + $0xbc] sm:$0xf] %vm554_vm2, %v2628_v35  ;;  %v2741_v49 = vrot.slane %v2732_v51, 4  ;;  %v2734_v23 = vpop.permute.xlu1 %2733  ;;  %3110 = vrot.lane.b32.xlu0 %v7296_v15, %s5922_s8  ;;  %v7348_v40 = vld [vmem:[#allocation3 + $0xf4] ss:$12 sps:$4 sm:$0xff]  }
 0x55b   : > { %2667 = vst.msk [vmem:[#allocation3 + $0xb4] sm:$0xff] %vm6223_vm13, %v2636_v31  ;;  %v2742_v37 = vrot.slane %v2734_v23, 4  ;;  %v7353_v29 = vld [vmem:[#allocation3 + $0xf0] ss:$12 sps:$4 sm:$0xff]  }
 0x55c   : > { %v2749_v14 = vsel %vm604_vm12, %v2741_v49, %v2732_v51  ;;  %2780 = vst.msk [vmem:[#allocation3 + $0x110] sm:$0xf] %vm554_vm2, %v2741_v49 }
 0x55d   : > { %2779 = vst.msk [vmem:[#allocation3 + $0x108] sm:$0xff] %vm6223_vm13, %v2749_v14  ;;  %v2750_v9 = vsel %vm604_vm12, %v2742_v37, %v2734_v23  ;;  %2918 = vrot.lane.b32.xlu1 %v7314_v43, %s8428_s21  ;;  %v7358_v47 = vld [vmem:[#allocation3 + $0x50] ss:$12 sps:$4 sm:$0xff]  }
 0x55e   : > { %2782 = vst.msk [vmem:[#allocation3 + $0x11c] sm:$0xf] %vm554_vm2, %v2742_v37  ;;  %3108 = vrot.lane.b32.xlu0 %v7310_v21, %s5922_s8  ;;  %v7364_v58 = vld [vmem:[#allocation3 + $0x4c] ss:$12 sps:$4 sm:$0xff]   ;;  %v7370_v6 = vld [vmem:[#allocation3 + $0x48] ss:$12 sps:$4 sm:$0xff]  }
 0x55f   : > { %2781 = vst.msk [vmem:[#allocation3 + $0x114] sm:$0xff] %vm6223_vm13, %v2750_v9  ;;  %vm2944_vm2 = vcmask 523264   ;;  %vm8514_vm13 = vcmask 793600  }
 0x560   : > { %vm8515_vm15 = vmmov %vm8514_vm13 }
 0x561   : > { %2916 = vrot.lane.b32.xlu1 %v7328_v56, %s8428_s21  ;;  %v5756_v60 = vld [vmem:[#allocation3 + $0xb0] ss:$12 sps:$4 sm:$0xff]   ;;  %vm8516_vm1 = vmmov %vm8514_vm13 }
 0x562   : > { %2920 = vrot.lane.b32.xlu0 %v7326_v61, %s8428_s21  ;;  %v5758_v20 = vld [vmem:[#allocation3 + $0xac] ss:$12 sps:$4 sm:$0xff]   ;;  %v5762_v28 = vld [vmem:[#allocation3 + $0xa8] ss:$12 sps:$4 sm:$0xff]   ;;  %vm8517_vm3 = vmmov %vm8516_vm1 }
 0x563   : > { %vm8518_vm9 = vmmov %vm8516_vm1 }
 0x565   : > { %3678 = vrot.lane.b32.xlu1 %v7314_v43, %s8422_s11  ;;  %v7391_v36 = vld [vmem:[#allocation3 + $0x110] ss:$12 sps:$4 sm:$0xff]  }
 0x566   : > { %3680 = vrot.lane.b32.xlu0 %v7326_v61, %s8422_s11  ;;  %v7396_v0 = vld [vmem:[#allocation3 + $0x10c] ss:$12 sps:$4 sm:$0xff]   ;;  %v7401_v38 = vld [vmem:[#allocation3 + $0x108] ss:$12 sps:$4 sm:$0xff]  }
 0x569   : > { %3676 = vrot.lane.b32.xlu1 %v7328_v56, %s8422_s11 }
 0x56a   : > { %3340 = vrot.lane.b32.xlu0 %v7338_v1, %s8426_s26 }
 0x56d   : > { %3118 = vrot.lane.b32.xlu1 %v5747_v46, %s5922_s8 }
 0x56e   : > { %3116 = vrot.lane.b32.xlu0 %v5745_v12, %s5922_s8 }
 0x571   : > { %3510 = vrot.lane.b32.xlu1 %v5747_v46, %s8424_s10 }
 0x572   : > { %3114 = vrot.lane.b32.xlu0 %v5748_v63, %s5922_s8 }
 0x575   : > { %3338 = vrot.lane.b32.xlu1 %v7348_v40, %s8426_s26 }
 0x576   : > { %3508 = vrot.lane.b32.xlu0 %v5745_v12, %s8424_s10 }
 0x579   : > { %3336 = vrot.lane.b32.xlu1 %v7353_v29, %s8426_s26 }
 0x57a   : > { %3506 = vrot.lane.b32.xlu0 %v5748_v63, %s8424_s10 }
 0x57d   : > { %2926 = vrot.lane.b32.xlu1 %v7358_v47, %s8428_s21 }
 0x57e   : > { %3686 = vrot.lane.b32.xlu0 %v7358_v47, %s8422_s11 }
 0x581   : > { %3504 = vrot.lane.b32.xlu1 %v7266_v53, %s8424_s10 }
 0x582   : > { %2924 = vrot.lane.b32.xlu0 %v7364_v58, %s8428_s21 }
 0x585   : > { %3672 = vrot.lane.b32.xlu1 %v7248_v62, %s8422_s11 }
 0x586   : > { %2922 = vrot.lane.b32.xlu0 %v7370_v6, %s8428_s21 }
 0x589   : > { %3670 = vrot.lane.b32.xlu1 %v7264_v57, %s8422_s11 }
 0x58a   : > { %3502 = vrot.lane.b32.xlu0 %v7296_v15, %s8424_s10 }
 0x58d   : > { %3684 = vrot.lane.b32.xlu1 %v7364_v58, %s8422_s11 }
 0x58e   : > { %3500 = vrot.lane.b32.xlu0 %v7310_v21, %s8424_s10 }
 0x591   : > { %3682 = vrot.lane.b32.xlu1 %v7370_v6, %s8422_s11 }
 0x592   : > { %3674 = vrot.lane.b32.xlu0 %v7250_v19, %s8422_s11 }
 0x595   : > { %3124 = vrot.lane.b32.xlu1 %v5756_v60, %s5922_s8 }
 0x596   : > { %3496 = vrot.lane.b32.xlu0 %v7216_v30, %s8424_s10 }
 0x599   : > { %3516 = vrot.lane.b32.xlu1 %v5756_v60, %s8424_s10 }
 0x59a   : > { %3346 = vrot.lane.b32.xlu0 %v7391_v36, %s8426_s26 }
 0x59d   : > { %3344 = vrot.lane.b32.xlu1 %v7396_v0, %s8426_s26 }
 0x59e   : > { %3122 = vrot.lane.b32.xlu0 %v5758_v20, %s5922_s8 }
 0x5a1   : > { %3342 = vrot.lane.b32.xlu1 %v7401_v38, %s8426_s26 }
 0x5a2   : > { %3120 = vrot.lane.b32.xlu0 %v5762_v28, %s5922_s8 }
 0x5a5   : > { %3498 = vrot.lane.b32.xlu1 %v7202_v17, %s8424_s10 }
 0x5a6   : > { %3494 = vrot.lane.b32.xlu0 %v7232_v54, %s8424_s10 }
 0x5a9   : > { %3666 = vrot.lane.b32.xlu1 %v7174_v45, %s8422_s11 }
 0x5aa   : > { %3668 = vrot.lane.b32.xlu0 %v7170_v50, %s8422_s11  ;;  %v7419_v48 = vpop.permute.xlu0 %2908 }
 0x5ab   : > { %v7414_v3 = vpop.permute.xlu1 %2906 }
 0x5ad   : > { %3664 = vrot.lane.b32.xlu1 %v7188_v39, %s8422_s11  ;;  %s8589_s11 = smov 96  }
 0x5ae   : > { %4026 = vrot.lane.b32.xlu0 %v5756_v60, %s8509_s15 }
 0x5af   : > { %v7421_v26 = vpop.permute.xlu1 %2904 }
 0x5b1   : > { %3856 = vrot.lane.b32.xlu1 %v7391_v36, %s8510_s16 }
 0x5b2   : > { %3848 = vrot.lane.b32.xlu0 %v7348_v40, %s8510_s16 }
 0x5b3   : > { %v7429_v18 = vpop.permute.xlu1 %3106 }
 0x5b4   : > { %v7427_v33 = vpop.permute.xlu0 %3328 }
 0x5b5   : > { %3850 = vrot.lane.b32.xlu1 %v7338_v1, %s8510_s16 }
 0x5b6   : > { %3846 = vrot.lane.b32.xlu0 %v7353_v29, %s8510_s16 }
 0x5b7   : > { %v7437_v7 = vpop.permute.xlu1 %3326 }
 0x5b8   : > { %v7435_v59 = vpop.permute.xlu0 %3104 }
 0x5b9   : > { %4018 = vrot.lane.b32.xlu1 %v5745_v12, %s8509_s15 }
 0x5ba   : > { %4020 = vrot.lane.b32.xlu0 %v5747_v46, %s8509_s15 }
 0x5bb   : > { %v7443_v2 = vpop.permute.xlu1 %3324 }
 0x5bc   : > { %v7441_v34 = vpop.permute.xlu0 %3102 }
 0x5bd   : > { %4016 = vrot.lane.b32.xlu1 %v5748_v63, %s8509_s15 }
 0x5be   : > { %3514 = vrot.lane.b32.xlu0 %v5758_v20, %s8424_s10 }
 0x5bf   : > { %v7449_v4 = vpop.permute.xlu1 %2914 }
 0x5c0   : > { %v7447_v24 = vpop.permute.xlu0 %2912 }
 0x5c1   : > { %3844 = vrot.lane.b32.xlu1 %v7278_v5, %s8510_s16 }
 0x5c2   : > { %3512 = vrot.lane.b32.xlu0 %v5762_v28, %s8424_s10  ;;  %s8587_s10 = smov 111  }
 0x5c3   : > { %v7456_v32 = vpop.permute.xlu1 %3112 }
 0x5c4   : > { %v7454_v42 = vpop.permute.xlu0 %2910 }
 0x5c5   : > { %4012 = vrot.lane.b32.xlu1 %v7296_v15, %s8509_s15 }
 0x5c6   : > { %3842 = vrot.lane.b32.xlu0 %v7282_v27, %s8510_s16 }
 0x5c7   : > { %v7464_v25 = vpop.permute.xlu1 %3332 }
 0x5c8   : > { %v7462_v11 = vpop.permute.xlu0 %3334 }
 0x5c9   : > { %4010 = vrot.lane.b32.xlu1 %v7310_v21, %s8509_s15 }
 0x5ca   : > { %3840 = vrot.lane.b32.xlu0 %v7298_v41, %s8510_s16 }
 0x5cb   : > { %v7472_v22 = vpop.permute.xlu1 %3330 }
 0x5cc   : > { %v7470_v16 = vpop.permute.xlu0 %3110 }
 0x5cd   : > { %3838 = vrot.lane.b32.xlu1 %v7200_v55, %s8510_s16 }
 0x5ce   : > { %4014 = vrot.lane.b32.xlu0 %v7266_v53, %s8509_s15 }
 0x5cf   : > { %v2919_v44 = vpop.permute.xlu1 %2918 }
 0x5d0   : > { %v7478_v35 = vpop.permute.xlu0 %3108 }
 0x5d1   : > { %4006 = vrot.lane.b32.xlu1 %v7216_v30, %s8509_s15 }
 0x5d2   : > { %3836 = vrot.lane.b32.xlu0 %v7218_v52, %s8510_s16 }
 0x5d3   : > { %v2917_v31 = vpop.permute.xlu1 %2916 }
 0x5d4   : > { %v2921_v15 = vpop.permute.xlu0 %2920 }
 0x5d5   : > { %4004 = vrot.lane.b32.xlu1 %v7232_v54, %s8509_s15 }
 0x5d6   : > { %3834 = vrot.lane.b32.xlu0 %v7234_v13, %s8510_s16 }
 0x5d7   : > { %v7490_v51 = vpop.permute.xlu1 %3678 }
 0x5d8   : > { %v7488_v53 = vpop.permute.xlu0 %3680 }
 0x5d9   : > { %4196 = vrot.lane.b32.xlu1 %v7358_v47, %s8511_s13 }
 0x5da   : > { %4008 = vrot.lane.b32.xlu0 %v7202_v17, %s8509_s15 }
 0x5db   : > { %v7498_v30 = vpop.permute.xlu1 %3676 }
 0x5dc   : > { %v7496_v49 = vpop.permute.xlu0 %3340 }
 0x5dd   : > { %4024 = vrot.lane.b32.xlu1 %v5758_v20, %s8509_s15 }
 0x5de   : > { %3854 = vrot.lane.b32.xlu0 %v7396_v0, %s8510_s16 }
 0x5df   : > { %v7505_v23 = vpop.permute.xlu1 %3118 }
 0x5e0   : > { %v7503_v54 = vpop.permute.xlu0 %3116 }
 0x5e1   : > { %4022 = vrot.lane.b32.xlu1 %v5762_v28, %s8509_s15  ;;  %v2928_v28 = vsel %vm854_vm8, %v7421_v26, %v7414_v3 }
 0x5e2   : > { %3852 = vrot.lane.b32.xlu0 %v7401_v38, %s8510_s16 }
 0x5e3   : > { %v7512_v37 = vpop.permute.xlu1 %3510 }
 0x5e4   : > { %v7510_v17 = vpop.permute.xlu0 %3114 }
 0x5e5   : > { %4190 = vrot.lane.b32.xlu1 %v7326_v61, %s8511_s13 }
 0x5e6   : > { %4194 = vrot.lane.b32.xlu0 %v7364_v58, %s8511_s13 }
 0x5e7   : > { %v7520_v14 = vpop.permute.xlu1 %3338 }
 0x5e8   : > { %v7518_v21 = vpop.permute.xlu0 %3508 }
 0x5e9   : > { %4358 = vrot.lane.b32.xlu1 %v7348_v40, %s8512_s12 }
 0x5ea   : > { %4192 = vrot.lane.b32.xlu0 %v7370_v6, %s8511_s13 }
 0x5eb   : > { %v7528_v12 = vpop.permute.xlu1 %3336 }
 0x5ec   : > { %v7526_v9 = vpop.permute.xlu0 %3506 }
 0x5ed   : > { %4356 = vrot.lane.b32.xlu1 %v7353_v29, %s8512_s12 }
 0x5ee   : > { %4366 = vrot.lane.b32.xlu0 %v7391_v36, %s8512_s12  ;;  %v2930_v36 = vsel %vm854_vm8, %v7454_v42, %v7447_v24 }
 0x5ef   : > { %v2927_v46 = vpop.permute.xlu1 %2926 }
 0x5f0   : > { %v7534_v61 = vpop.permute.xlu0 %3686 }
 0x5f1   : > { %4184 = vrot.lane.b32.xlu1 %v7250_v19, %s8511_s13  ;;  %v2933_v19 = vsel %vm854_vm8, %v2919_v44, %v2921_v15  ;;  %v5766_v15 = vld [vmem:[%s8383_s4 + $0x30] sm:$0xff]  }
 0x5f2   : > { %4188 = vrot.lane.b32.xlu0 %v7314_v43, %s8511_s13 }
 0x5f3   : > { %v7540_v40 = vpop.permute.xlu1 %3504 }
 0x5f4   : > { %v2925_v63 = vpop.permute.xlu0 %2924 }
 0x5f5   : > { %v2935_v47 = vsel %vm854_vm8, %v2925_v63, %v2927_v46  ;;  %4352 = vrot.lane.b32.xlu1 %v7282_v27, %s8512_s12  ;;  %v2932_v27 = vsel %vm854_vm8, %v2917_v31, %v2919_v44  ;;  %v3131_v31 = vsel %vm1030_vm10, %v7503_v54, %v7505_v23  ;;  %v3351_v23 = vsel %vm1223_vm11, %v7464_v25, %v7462_v11  ;;  %v5767_v11 = vld [vmem:[%s8383_s4 + $0x38] sm:$0xff]  }
 0x5f6   : > { %4186 = vrot.lane.b32.xlu0 %v7328_v56, %s8511_s13  ;;  %2965 = vmatprep.subr.bf16.mxu1 %v2935_v47  ;;  %v3130_v47 = vsel %vm1030_vm10, %v7510_v17, %v7503_v54  ;;  %v3350_v17 = vsel %vm1223_vm11, %v7472_v22, %v7464_v25 }
 0x5f7   : > { %v7547_v58 = vpop.permute.xlu1 %3672 }
 0x5f8   : > { %v2923_v29 = vpop.permute.xlu0 %2922 }
 0x5f9   : > { %v2934_v43 = vsel %vm854_vm8, %v2923_v29, %v2925_v63  ;;  %4350 = vrot.lane.b32.xlu1 %v7298_v41, %s8512_s12  ;;  %v3352_v29 = vsel %vm1223_vm11, %v7528_v12, %v7520_v14  ;;  %v3349_v12 = vsel %vm1223_vm11, %v7437_v7, %v7427_v33  ;;  %v5768_v33 = vld [vmem:[%s8383_s4] sm:$0xff]  }
 0x5fa   : > { %4360 = vrot.lane.b32.xlu0 %v7338_v1, %s8512_s12  ;;  %2966 = vmatpush1.bf16.msra.mxu1 %v2934_v43  ;;  %v2931_v1 = vsel %vm854_vm8, %v7447_v24, %v7449_v4 }
 0x5fb   : > { %2967 = vmatprep.subr.bf16.mxu1 %v2933_v19  ;;  %v7557_v6 = vpop.permute.xlu1 %3670  ;;  %v5809_v19 = vld [vmem:[%s8381_s2 + $0x30] sm:$0xff] }
 0x5fc   : > { %v7555_v56 = vpop.permute.xlu0 %3502 }
 0x5fd   : > { %4364 = vrot.lane.b32.xlu1 %v7396_v0, %s8512_s12 }
 0x5fe   : > { %4182 = vrot.lane.b32.xlu0 %v7248_v62, %s8511_s13  ;;  %2968 = vmatpush1.bf16.msra.mxu1 %v2932_v27  ;;  %v2929_v62 = vsel %vm854_vm8, %v7414_v3, %v7419_v48  ;;  %v8513_v3 = vmov 0  }
 0x5ff   : > { %2969 = vmatprep.subr.bf16.mxu1 %v2931_v1  ;;  %v7569_v60 = vpop.permute.xlu1 %3684 }
 0x600   : > { %v7567_v41 = vpop.permute.xlu0 %3500 }
 0x601   : > { %4362 = vrot.lane.b32.xlu1 %v7401_v38, %s8512_s12 }
 0x602   : > { %4180 = vrot.lane.b32.xlu0 %v7264_v57, %s8511_s13  ;;  %2970 = vmatpush1.bf16.msra.mxu1 %v2930_v36  ;;  %v5764_v57 = vld [vmem:[%s8383_s4 + $0x20] sm:$0xff]  }
 0x603   : > { %2971 = vmatprep.subr.bf16.mxu1 %v2929_v62  ;;  %v7583_v0 = vpop.permute.xlu1 %3682  ;;  %v5770_v62 = vld [vmem:[%s8383_s4 + $0x8] sm:$0xff]  }
 0x604   : > { %v7581_v20 = vpop.permute.xlu0 %3674  ;;  %v3694_v36 = vsel %vm1553_vm14, %v7583_v0, %v7569_v60 }
 0x605   : > { %4178 = vrot.lane.b32.xlu1 %v7170_v50, %s8511_s13  ;;  %v5765_v50 = vld [vmem:[%s8383_s4 + $0x28] sm:$0xff]  }
 0x606   : > { %4354 = vrot.lane.b32.xlu0 %v7278_v5, %s8512_s12  ;;  %2972 = vmatpush1.bf16.msra.mxu1 %v2928_v28  ;;  %v5810_v28 = vld [vmem:[%s8381_s2 + $0x28] sm:$0xff] }
 0x607   : > { %v3125_v48 = vpop.permute.xlu1 %3124 }
 0x608   : > { %v7595_v38 = vpop.permute.xlu0 %3496 }
 0x609   : > { %5357 = vmatmul.mubr.msk.bf16.vlgmr.msra.gmra.mxu1 %vm2944_vm2, %v5764_v57  ;;  %4346 = vrot.lane.b32.xlu1 %v7218_v52, %s8512_s12  ;;  %v3693_v57 = vsel %vm1553_vm14, %v7490_v51, %v7488_v53  ;;  %v5771_v53 = vld [vmem:[%s8383_s4 + $0x48] sm:$0xff]  }
 0x60a   : > { %4176 = vrot.lane.b32.xlu0 %v7174_v45, %s8511_s13  ;;  %2999 = vmatprep.mubr.bf16.mxu1 %v8513_v3 }
 0x60b   : > { %v7603_v5 = vpop.permute.xlu1 %3516 }
 0x60c   : > { %v3347_v26 = vpop.permute.xlu0 %3346 }
 0x60d   : > { %4344 = vrot.lane.b32.xlu1 %v7234_v13, %s8512_s12 }
 0x60e   : > { %4174 = vrot.lane.b32.xlu0 %v7188_v39, %s8511_s13 }
 0x60f   : > { %v3345_v45 = vpop.permute.xlu1 %3344 }
 0x610   : > { %v3123_v24 = vpop.permute.xlu0 %3122  ;;  %v3355_v52 = vsel %vm1223_vm11, %v3345_v45, %v3347_v26  ;;  %v3692_v26 = vsel %vm1553_vm14, %v7498_v30, %v7490_v51 }
 0x611   : > { %5358 = vmatmul.mubr.msk.bf16.gmra.mxu1 %vm2944_vm2, %v5765_v50  ;;  %v3133_v4 = vsel %vm1030_vm10, %v3123_v24, %v3125_v48  ;;  %3384 = vmatprep.subr.bf16.mxu1 %v3355_v52  ;;  %v5811_v50 = vld [vmem:[%s8381_s2 + $0x20] sm:$0xff]  ;;  %v5812_v52 = vld [vmem:[%s8381_s2 + $0x18] sm:$0xff] }
 0x612   : > { %4348 = vrot.lane.b32.xlu0 %v7200_v55, %s8512_s12  ;;  %3162 = vmatprep.subr.bf16.mxu0 %v3133_v4  ;;  %v3353_v55 = vsel %vm1223_vm11, %v7520_v14, %v7496_v49  ;;  %v3129_v49 = vsel %vm1030_vm10, %v7470_v16, %v7456_v32  ;;  %v3128_v32 = vsel %vm1030_vm10, %v7478_v35, %v7470_v16 }
 0x613   : > { %3009 = vmatprep.mubr.bf16.mxu1 %v8513_v3  ;;  %v3343_v39 = vpop.permute.xlu1 %3342  ;;  %v3127_v14 = vsel %vm1030_vm10, %v7435_v59, %v7429_v18  ;;  %v3126_v16 = vsel %vm1030_vm10, %v7441_v34, %v7435_v59  ;;  %v3348_v35 = vsel %vm1223_vm11, %v7443_v2, %v7437_v7  ;;  %v3695_v18 = vsel %vm1553_vm14, %v7569_v60, %v7534_v61  ;;  %v5769_v2 = vld [vmem:[%s8383_s4 + $0x40] sm:$0xff]   ;;  %v5808_v61 = vld [vmem:[%s8381_s2 + $0x38] sm:$0xff] }
 0x614   : > { %v3121_v42 = vpop.permute.xlu0 %3120  ;;  %v3354_v13 = vsel %vm1223_vm11, %v3343_v39, %v3345_v45  ;;  %v5931_v7 = vmov 7   ;;  %v5932_v60 = vmov 8   ;;  %v3690_v45 = vsel %vm1553_vm14, %v7557_v6, %v7547_v58 }
 0x615   : > { %v3132_v44 = vsel %vm1030_vm10, %v3121_v42, %v3123_v24  ;;  %3385 = vmatpush1.bf16.msra.mxu1 %v3354_v13  ;;  %5653 = vset.pattern.permute.xlu0 %v5931_v7  ;;  %v3691_v24 = vsel %vm1553_vm14, %v7547_v58, %v7581_v20  ;;  %v5772_v20 = vld [vmem:[%s8383_s4 + $0x10] sm:$0xff]  }
 0x616   : > { %3163 = vmatpush1.bf16.msra.mxu0 %v3132_v44  ;;  %3386 = vmatprep.subr.bf16.mxu1 %v3353_v55  ;;  %v5773_v44 = vld [vmem:[%s8383_s4 + $0x50] sm:$0xff]  }
 0x617   : > { %3164 = vmatprep.subr.bf16.mxu0 %v3131_v31  ;;  %v7631_v63 = vpop.permute.xlu1 %3498  ;;  %5654 = vset.pattern.permute.xlu1 %v5931_v7  ;;  %v5813_v13 = vld [vmem:[%s8381_s2 + $0x10] sm:$0xff] }
 0x618   : > { %v7629_v46 = vpop.permute.xlu0 %3494  ;;  %4514 = vperm.xlu0 %5653, %v5808_v61   ;;  %4510 = vperm.xlu1 %5654, %v5809_v19  }
 0x619   : > { %5359 = vmatmul.mubr.msk.bf16.gmra.mxu1 %vm2944_vm2, %v5766_v15  ;;  %v3523_v15 = vsel %vm8516_vm1, %v7518_v21, %v7512_v37  ;;  %v5814_v37 = vld [vmem:[%s8381_s2 + $0x8] sm:$0xff] }
 0x61a   : > { %3165 = vmatpush1.bf16.msra.mxu0 %v3130_v47  ;;  %3387 = vmatpush1.bf16.msra.mxu1 %v3352_v29  ;;  %v3522_v47 = vsel %vm8517_vm3, %v7526_v9, %v7518_v21  ;;  %v5774_v29 = vld [vmem:[%s8383_s4 + $0x18] sm:$0xff]   ;;  %vm8521_vm3 = vcmask 662528  }
 0x61b   : > { %3166 = vmatprep.subr.bf16.mxu0 %v3129_v49  ;;  %3388 = vmatprep.subr.bf16.mxu1 %v3351_v23  ;;  %v7648_v54 = vpop.permute.xlu1 %3666  ;;  %v3521_v49 = vsel %vm8518_vm9, %v7555_v56, %v7540_v40  ;;  %v5815_v40 = vld [vmem:[%s8381_s2] sm:$0xff]  ;;  %vm8522_vm9 = vmmov %vm8521_vm3 }
 0x61c   : > { %v7646_v43 = vpop.permute.xlu0 %3668  ;;  %3019 = vmatprep.mubr.bf16.mxu1 %v8513_v3  ;;  %4506 = vperm.xlu0 %5653, %v5810_v28  }
 0x61d   : > { %5655 = vset.pattern.permute.xlu1 %v5932_v60  ;;  %v3689_v58 = vsel %vm1553_vm14, %v7648_v54, %v7646_v43  ;;  %v5775_v43 = vld [vmem:[%s8383_s4 + $0x58] sm:$0xff]  }
 0x61e   : > { %3167 = vmatpush1.bf16.msra.mxu0 %v3128_v32  ;;  %3389 = vmatpush1.bf16.msra.mxu1 %v3350_v17  ;;  %v3518_v17 = vsel %vm8516_vm1, %v7629_v46, %v7595_v38  ;;  %v5776_v32 = vld [vmem:[%s8383_s4 + $0x60] sm:$0xff]  }
 0x61f   : > { %3168 = vmatprep.subr.bf16.mxu0 %v3127_v14  ;;  %3390 = vmatprep.subr.bf16.mxu1 %v3349_v12  ;;  %v7668_v22 = vpop.permute.xlu1 %3664  ;;  %v5778_v12 = vld [vmem:[%s8383_s4 + $0x68] sm:$0xff]  }
 0x620   : > { %v7666_v25 = vpop.permute.xlu0 %4026  ;;  %4562 = vperm.xlu1 %5655, %v5808_v61   ;;  %4502 = vperm.xlu0 %5653, %v5811_v50   ;;  %v3688_v42 = vsel %vm1553_vm14, %v7668_v22, %v7648_v54  ;;  %v5780_v61 = vld [vmem:[%s8383_s4 + $0x70] sm:$0xff]  }
 0x621   : > { %5360 = vmatmul.mubr.msk.bf16.gmra.mxu1 %vm2944_vm2, %v5767_v11 }
 0x622   : > { %3169 = vmatpush1.bf16.msra.mxu0 %v3126_v16  ;;  %3391 = vmatpush1.bf16.msra.mxu1 %v3348_v35  ;;  %v5779_v35 = vld [vmem:[%s8383_s4 + $0x88] sm:$0xff]  }
 0x623   : > { %3724 = vmatprep.subr.bf16.mxu1 %v3695_v18  ;;  %3408 = vmatprep.mubr.bf16.mxu1 %v8513_v3  ;;  %v7686_v34 = vpop.permute.xlu1 %3856 }
 0x624   : > { %v7684_v59 = vpop.permute.xlu0 %3848  ;;  %4558 = vperm.xlu1 %5655, %v5809_v19   ;;  %4498 = vperm.xlu0 %5653, %v5812_v52  }
 0x625   : > { %5377 = vmatmul.mubr.msk.bf16.vlgmr.msra.gmra.mxu0 %vm2944_vm2, %v5768_v33 }
 0x626   : > { %3196 = vmatprep.mubr.bf16.mxu0 %v8513_v3 }
 0x627   : > { %v7701_v1 = vpop.permute.xlu1 %3850 }
 0x628   : > { %v7699_v27 = vpop.permute.xlu0 %3846  ;;  %4554 = vperm.xlu1 %5655, %v5810_v28   ;;  %4494 = vperm.xlu0 %5653, %v5813_v13  }
 0x629   : > { %5405 = vmatmul.mubr.msk.bf16.vlgmr.msra.gmra.mxu1 %vm2944_vm2, %v5769_v2 }
 0x62a   : > { %3725 = vmatpush1.bf16.msra.mxu1 %v3694_v36  ;;  %3418 = vmatprep.mubr.bf16.mxu1 %v8513_v3 }
 0x62b   : > { %3726 = vmatprep.subr.bf16.mxu1 %v3693_v57  ;;  %v7720_v48 = vpop.permute.xlu1 %4018 }
 0x62c   : > { %v7718_v0 = vpop.permute.xlu0 %4020  ;;  %4550 = vperm.xlu1 %5655, %v5811_v50   ;;  %4490 = vperm.xlu0 %5653, %v5814_v37  }
 0x62d   : > { %5378 = vmatmul.mubr.msk.bf16.gmra.mxu0 %vm2944_vm2, %v5770_v62 }
 0x62e   : > { %3727 = vmatpush1.bf16.msra.mxu1 %v3692_v26  ;;  %3206 = vmatprep.mubr.bf16.mxu0 %v8513_v3 }
 0x62f   : > { %3728 = vmatprep.subr.bf16.mxu1 %v3691_v24  ;;  %v7736_v30 = vpop.permute.xlu1 %4016 }
 0x630   : > { %v3515_v51 = vpop.permute.xlu0 %3514  ;;  %4546 = vperm.xlu1 %5655, %v5812_v52   ;;  %4486 = vperm.xlu0 %5653, %v5815_v40  }
 0x631   : > { %5406 = vmatmul.mubr.msk.bf16.gmra.mxu1 %vm2944_vm2, %v5771_v53  ;;  %v3525_v4 = vsel %vm8514_vm13, %v3515_v51, %v7603_v5  ;;  %vm8519_vm13 = vmmov %vm8516_vm1  ;;  %v3862_v53 = vsel %vm1718_vm0, %v7699_v27, %v7684_v59 }
 0x632   : > { %3729 = vmatpush1.bf16.msra.mxu1 %v3690_v45  ;;  %3554 = vmatprep.subr.bf16.mxu0 %v3525_v4  ;;  %v3520_v23 = vsel %vm8519_vm13, %v7567_v41, %v7555_v56  ;;  %vm8523_vm13 = vmmov %vm8521_vm3 }
 0x633   : > { %3730 = vmatprep.subr.bf16.mxu1 %v3689_v58  ;;  %3428 = vmatprep.mubr.bf16.mxu1 %v8513_v3  ;;  %v7754_v5 = vpop.permute.xlu1 %3844  ;;  %v4033_v57 = vsel %vm8523_vm13, %v7720_v48, %v7718_v0 }
 0x634   : > { %v3513_v6 = vpop.permute.xlu0 %3512  ;;  %4542 = vperm.xlu1 %5655, %v5813_v13   ;;  %5656 = vset.pattern.permute.xlu0 %v5932_v60 }
 0x635   : > { %v3524_v39 = vsel %vm8515_vm15, %v3513_v6, %v3515_v51  ;;  %5379 = vmatmul.mubr.msk.bf16.gmra.mxu0 %vm2944_vm2, %v5772_v20  ;;  %vm8520_vm15 = vmmov %vm8516_vm1  ;;  %4534 = vperm.xlu0 %5656, %v5815_v40  }
 0x636   : > { %3731 = vmatpush1.bf16.msra.mxu1 %v3688_v42  ;;  %3555 = vmatpush1.bf16.msra.mxu0 %v3524_v39  ;;  %v3519_v54 = vsel %vm8520_vm15, %v7595_v38, %v7631_v63  ;;  %v5777_v38 = vld [vmem:[%s8383_s4 + $0x80] sm:$0xff]   ;;  %vm8524_vm15 = vmmov %vm8521_vm3 }
 0x637   : > { %3556 = vmatprep.subr.bf16.mxu0 %v3523_v15  ;;  %3216 = vmatprep.mubr.bf16.mxu0 %v8513_v3  ;;  %v7773_v55 = vpop.permute.xlu1 %4012  ;;  %v4032_v50 = vsel %vm8524_vm15, %v7736_v30, %v7720_v48  ;;  %vm8525_vm1 = vmmov %vm8521_vm3  ;;  %v5783_v30 = vld [vmem:[%s8383_s4 + $0x98] sm:$0xff]   ;;  %vm8529_vm15 = vcmask 654336  }
 0x638   : > { %v7771_v31 = vpop.permute.xlu0 %3842  ;;  %4538 = vperm.xlu1 %5655, %v5814_v37   ;;  %vm8528_vm13 = vmmov %vm8525_vm1  ;;  %v5786_v37 = vld [vmem:[%s8383_s4 + $0xa8] sm:$0xff]  }
 0x639   : > { %5407 = vmatmul.mubr.msk.bf16.gmra.mxu1 %vm2944_vm2, %v5773_v44  ;;  %v3861_v0 = vsel %vm1718_vm0, %v7771_v31, %v7754_v5  ;;  %v5784_v5 = vld [vmem:[%s8383_s4 + $0xa0] sm:$0xff]  }
 0x63a   : > { %3557 = vmatpush1.bf16.msra.mxu0 %v3522_v47  ;;  %3438 = vmatprep.mubr.bf16.mxu1 %v8513_v3 }
 0x63b   : > { %3558 = vmatprep.subr.bf16.mxu0 %v3521_v49  ;;  %v7791_v9 = vpop.permute.xlu1 %4010 }
 0x63c   : > { %v7789_v21 = vpop.permute.xlu0 %3840 }
 0x63d   : > { %5380 = vmatmul.mubr.msk.bf16.gmra.mxu0 %vm2944_vm2, %v5774_v29  ;;  %v3860_v48 = vsel %vm1718_vm0, %v7789_v21, %v7771_v31  ;;  %v5785_v31 = vld [vmem:[%s8383_s4 + $0xc0] sm:$0xff]  }
 0x63e   : > { %3559 = vmatpush1.bf16.msra.mxu0 %v3520_v23  ;;  %3578 = vmatprep.mubr.bf16.mxu0 %v8513_v3 }
 0x63f   : > { %3560 = vmatprep.subr.bf16.mxu0 %v3519_v54  ;;  %v7807_v41 = vpop.permute.xlu1 %3838  ;;  %v5788_v54 = vld [vmem:[%s8383_s4 + $0xb0] sm:$0xff]  }
 0x640   : > { %v4015_v56 = vpop.permute.xlu0 %4014 }
 0x641   : > { %5408 = vmatmul.mubr.msk.bf16.gmra.mxu1 %vm2944_vm2, %v5775_v43  ;;  %v4031_v24 = vsel %vm8525_vm1, %v7773_v55, %v4015_v56 }
 0x642   : > { %3561 = vmatpush1.bf16.msra.mxu0 %v3518_v17  ;;  %3748 = vmatprep.mubr.bf16.mxu1 %v8513_v3 }
 0x643   : > { %v7820_v11 = vpop.permute.xlu1 %4006 }
 0x644   : > { %v7818_v63 = vpop.permute.xlu0 %3836 }
 0x645   : > { %5421 = vmatmul.mubr.msk.bf16.vlgmr.msra.gmra.mxu0 %vm2944_vm2, %v5776_v32  ;;  %v3859_v45 = vsel %vm1718_vm0, %v7818_v63, %v7807_v41 }
 0x646   : > { %3588 = vmatprep.mubr.bf16.mxu0 %v8513_v3 }
 0x647   : > { %v4005_v14 = vpop.permute.xlu1 %4004 }
 0x648   : > { %v3835_v46 = vpop.permute.xlu0 %3834  ;;  %v4028_v6 = vsel %vm8528_vm13, %v4005_v14, %v7820_v11 }
 0x649   : > { %5437 = vmatmul.mubr.msk.bf16.vlgmr.msra.gmra.mxu1 %vm2944_vm2, %v5777_v38  ;;  %v3858_v58 = vsel %vm1718_vm0, %v3835_v46, %v7818_v63  ;;  %v5789_v63 = vld [vmem:[%s8383_s4 + $0xd0] sm:$0xff]  }
 0x64a   : > { %3758 = vmatprep.mubr.bf16.mxu1 %v8513_v3 }
 0x64b   : > { %v4197_v16 = vpop.permute.xlu1 %4196 }
 0x64c   : > { %v4009_v22 = vpop.permute.xlu0 %4008 }
 0x64d   : > { %5422 = vmatmul.mubr.msk.bf16.gmra.mxu0 %vm2944_vm2, %v5778_v12  ;;  %v5790_v12 = vld [vmem:[%s8383_s4 + $0xb8] sm:$0xff]  }
 0x64e   : > { %3598 = vmatprep.mubr.bf16.mxu0 %v8513_v3 }
 0x64f   : > { %v4025_v18 = vpop.permute.xlu1 %4024 }
 0x650   : > { %v3855_v33 = vpop.permute.xlu0 %3854  ;;  %v4035_v2 = vsel %vm8521_vm3, %v4025_v18, %v7666_v25  ;;  %v5781_v25 = vld [vmem:[%s8383_s4 + $0x90] sm:$0xff]   ;;  %vm8526_vm3 = vmmov %vm8525_vm1 }
 0x651   : > { %5438 = vmatmul.mubr.msk.bf16.gmra.mxu1 %vm2944_vm2, %v5779_v35  ;;  %v3865_v7 = vsel %vm1718_vm0, %v3855_v33, %v7686_v34  ;;  %4064 = vmatprep.subr.bf16.mxu1 %v4035_v2  ;;  %v3863_v34 = vsel %vm1718_vm0, %v7684_v59, %v7701_v1  ;;  %v5782_v1 = vld [vmem:[%s8383_s4 + $0x78] sm:$0xff]   ;;  %v4030_v51 = vsel %vm8526_vm3, %v7791_v9, %v7773_v55  ;;  %v5787_v9 = vld [vmem:[%s8383_s4 + $0xc8] sm:$0xff]  }
 0x652   : > { %3894 = vmatprep.subr.bf16.mxu0 %v3865_v7  ;;  %3768 = vmatprep.mubr.bf16.mxu1 %v8513_v3  ;;  %v5791_v7 = vld [vmem:[%s8383_s4 + $0xd8] sm:$0xff]  }
 0x653   : > { %v4023_v36 = vpop.permute.xlu1 %4022 }
 0x654   : > { %v3853_v19 = vpop.permute.xlu0 %3852  ;;  %v4034_v28 = vsel %vm8522_vm9, %v4023_v36, %v4025_v18  ;;  %vm8527_vm9 = vmmov %vm8525_vm1  ;;  %v5792_v36 = vld [vmem:[%s8383_s4 + $0xe0] sm:$0xff]  }
 0x655   : > { %v3864_v62 = vsel %vm1718_vm0, %v3853_v19, %v3855_v33  ;;  %5423 = vmatmul.mubr.msk.bf16.gmra.mxu0 %vm2944_vm2, %v5780_v61  ;;  %4065 = vmatpush1.bf16.msra.mxu1 %v4034_v28  ;;  %v4029_v4 = vsel %vm8527_vm9, %v7820_v11, %v4009_v22  ;;  %vm8530_vm1 = vmmov %vm8529_vm15 }
 0x656   : > { %3895 = vmatpush1.bf16.msra.mxu0 %v3864_v62  ;;  %4066 = vmatprep.subr.bf16.mxu1 %v4033_v57  ;;  %vm8531_vm3 = vmmov %vm8530_vm1  ;;  %v5793_v57 = vld [vmem:[%s8383_s4 + $0x100] sm:$0xff]  }
 0x657   : > { %3896 = vmatprep.subr.bf16.mxu0 %v3863_v34  ;;  %v4191_v26 = vpop.permute.xlu1 %4190  ;;  %3608 = vmatprep.mubr.bf16.mxu0 %v8513_v3  ;;  %vm8532_vm9 = vmmov %vm8530_vm1 }
 0x658   : > { %v4195_v60 = vpop.permute.xlu0 %4194  ;;  %vm8533_vm13 = vmmov %vm8530_vm1 }
 0x659   : > { %5439 = vmatmul.mubr.msk.bf16.gmra.mxu1 %vm2944_vm2, %v5781_v25  ;;  %v4205_v42 = vsel %vm8529_vm15, %v4195_v60, %v4197_v16  ;;  %vm8534_vm15 = vcmask 646144  }
 0x65a   : > { %3897 = vmatpush1.bf16.msra.mxu0 %v3862_v53  ;;  %4067 = vmatpush1.bf16.msra.mxu1 %v4032_v50  ;;  %v5796_v53 = vld [vmem:[%s8383_s4 + $0xf0] sm:$0xff]  }
 0x65b   : > { %3898 = vmatprep.subr.bf16.mxu0 %v3861_v0  ;;  %4068 = vmatprep.subr.bf16.mxu1 %v4031_v24  ;;  %v7874_v27 = vpop.permute.xlu1 %4358  ;;  %v5797_v50 = vld [vmem:[%s8383_s4 + $0x110] sm:$0xff]   ;;  %v5799_v0 = vld [vmem:[%s8383_s4 + $0x118] sm:$0xff]  }
 0x65c   : > { %v4193_v59 = vpop.permute.xlu0 %4192  ;;  %3778 = vmatprep.mubr.bf16.mxu1 %v8513_v3 }
 0x65d   : > { %5424 = vmatmul.mubr.msk.bf16.gmra.mxu0 %vm2944_vm2, %v5782_v1  ;;  %v4204_v13 = vsel %vm8530_vm1, %v4193_v59, %v4195_v60  ;;  %v5794_v60 = vld [vmem:[%s8383_s4 + $0xe8] sm:$0xff]   ;;  %v5798_v1 = vld [vmem:[%s8383_s4 + $0xf8] sm:$0xff]  }
 0x65e   : > { %3899 = vmatpush1.bf16.msra.mxu0 %v3860_v48  ;;  %4069 = vmatpush1.bf16.msra.mxu1 %v4030_v51 }
 0x65f   : > { %3900 = vmatprep.subr.bf16.mxu0 %v3859_v45  ;;  %4070 = vmatprep.subr.bf16.mxu1 %v4029_v4  ;;  %v4357_v52 = vpop.permute.xlu1 %4356 }
 0x660   : > { %v4367_v20 = vpop.permute.xlu0 %4366  ;;  %3918 = vmatprep.mubr.bf16.mxu0 %v8513_v3 }
 0x661   : > { %5440 = vmatmul.mubr.msk.bf16.gmra.mxu1 %vm2944_vm2, %v5783_v30 }
 0x662   : > { %3901 = vmatpush1.bf16.msra.mxu0 %v3858_v58  ;;  %4071 = vmatpush1.bf16.msra.mxu1 %v4028_v6 }
 0x663   : > { %4234 = vmatprep.subr.bf16.mxu0 %v4205_v42  ;;  %4088 = vmatprep.mubr.bf16.mxu1 %v8513_v3  ;;  %v4185_v44 = vpop.permute.xlu1 %4184 }
 0x664   : > { %v4189_v39 = vpop.permute.xlu0 %4188 }
 0x665   : > { %5453 = vmatmul.mubr.msk.bf16.vlgmr.msra.gmra.mxu0 %vm2944_vm2, %v5784_v5  ;;  %v4203_v15 = vsel %vm8531_vm3, %v4189_v39, %v4191_v26  ;;  %vm8535_vm3 = vmmov %vm8534_vm15  ;;  %v5795_v26 = vld [vmem:[%s8383_s4 + $0x108] sm:$0xff]  }
 0x666   : > { %4235 = vmatpush1.bf16.msra.mxu0 %v4204_v13  ;;  %3928 = vmatprep.mubr.bf16.mxu0 %v8513_v3 }
 0x667   : > { %4236 = vmatprep.subr.bf16.mxu0 %v4203_v15  ;;  %v4353_v29 = vpop.permute.xlu1 %4352 }
 0x668   : > { %v4187_v55 = vpop.permute.xlu0 %4186 }
 0x669   : > { %v4202_v47 = vsel %vm8532_vm9, %v4187_v55, %v4189_v39  ;;  %5469 = vmatmul.mubr.msk.bf16.vlgmr.msra.gmra.mxu1 %vm2944_vm2, %v5785_v31  ;;  %vm8536_vm9 = vmmov %vm8535_vm3 }
 0x66a   : > { %4237 = vmatpush1.bf16.msra.mxu0 %v4202_v47  ;;  %4098 = vmatprep.mubr.bf16.mxu1 %v8513_v3 }
 0x66b   : > { %v4351_v21 = vpop.permute.xlu1 %4350 }
 0x66c   : > { %v4361_v49 = vpop.permute.xlu0 %4360  ;;  %v4370_v2 = vsel %vm8535_vm3, %v4351_v21, %v4353_v29 }
 0x66d   : > { %5454 = vmatmul.mubr.msk.bf16.gmra.mxu0 %vm2944_vm2, %v5786_v37  ;;  %v4373_v38 = vsel %vm8536_vm9, %v7874_v27, %v4361_v49  ;;  %vm8539_vm9 = vmmov %vm8530_vm1 }
 0x66e   : > { %3938 = vmatprep.mubr.bf16.mxu0 %v8513_v3 }
 0x66f   : > { %v4365_v43 = vpop.permute.xlu1 %4364 }
 0x670   : > { %v4183_v23 = vpop.permute.xlu0 %4182  ;;  %v4375_v56 = vsel %vm8534_vm15, %v4365_v43, %v4367_v20  ;;  %vm8538_vm15 = vmmov %vm8535_vm3 }
 0x671   : > { %5470 = vmatmul.mubr.msk.bf16.gmra.mxu1 %vm2944_vm2, %v5787_v9  ;;  %v4201_v40 = vsel %vm8533_vm13, %v4183_v23, %v4185_v44  ;;  %4404 = vmatprep.subr.bf16.mxu1 %v4375_v56  ;;  %vm8537_vm13 = vmmov %vm8535_vm3 }
 0x672   : > { %4238 = vmatprep.subr.bf16.mxu0 %v4201_v40  ;;  %4108 = vmatprep.mubr.bf16.mxu1 %v8513_v3  ;;  %v4372_v22 = vsel %vm8537_vm13, %v4357_v52, %v7874_v27  ;;  %vm8540_vm13 = vmmov %vm8535_vm3 }
 0x673   : > { %v4363_v32 = vpop.permute.xlu1 %4362 }
 0x674   : > { %v4181_v41 = vpop.permute.xlu0 %4180  ;;  %v4374_v11 = vsel %vm8535_vm3, %v4363_v32, %v4365_v43 }
 0x675   : > { %v4200_v17 = vsel %vm8530_vm1, %v4181_v41, %v4183_v23  ;;  %5455 = vmatmul.mubr.msk.bf16.gmra.mxu0 %vm2944_vm2, %v5788_v54  ;;  %4405 = vmatpush1.bf16.msra.mxu1 %v4374_v11 }
 0x676   : > { %4239 = vmatpush1.bf16.msra.mxu0 %v4200_v17  ;;  %3948 = vmatprep.mubr.bf16.mxu0 %v8513_v3 }
 0x677   : > { %4406 = vmatprep.subr.bf16.mxu1 %v4373_v38  ;;  %v4179_v14 = vpop.permute.xlu1 %4178 }
 0x678   : > { %v4355_v46 = vpop.permute.xlu0 %4354 }
 0x679   : > { %5471 = vmatmul.mubr.msk.bf16.gmra.mxu1 %vm2944_vm2, %v5789_v63  ;;  %v4371_v16 = vsel %vm8538_vm15, %v4353_v29, %v4355_v46  ;;  %vm8541_vm15 = vmmov %vm8535_vm3 }
 0x67a   : > { %4118 = vmatprep.mubr.bf16.mxu1 %v8513_v3  ;;  %4407 = vmatpush1.bf16.msra.mxu1 %v4372_v22 }
 0x67b   : > { %4408 = vmatprep.subr.bf16.mxu1 %v4371_v16  ;;  %v4347_v33 = vpop.permute.xlu1 %4346 }
 0x67c   : > { %v4177_v35 = vpop.permute.xlu0 %4176 }
 0x67d   : > { %5456 = vmatmul.mubr.msk.bf16.gmra.mxu0 %vm2944_vm2, %v5790_v12  ;;  %v4199_v18 = vsel %vm8530_vm1, %v4177_v35, %v4179_v14  ;;  %vm607_vm1 = vcmask 523520  }
 0x67e   : > { %4240 = vmatprep.subr.bf16.mxu0 %v4199_v18  ;;  %4258 = vmatprep.mubr.bf16.mxu0 %v8513_v3 }
 0x67f   : > { %4409 = vmatpush1.bf16.msra.mxu1 %v4370_v2  ;;  %v4345_v62 = vpop.permute.xlu1 %4344 }
 0x680   : > { %v4175_v61 = vpop.permute.xlu0 %4174  ;;  %v4368_v34 = vsel %vm8541_vm15, %v4345_v62, %v4347_v33 }
 0x681   : > { %v4198_v19 = vsel %vm8539_vm9, %v4175_v61, %v4177_v35  ;;  %5472 = vmatmul.mubr.msk.bf16.gmra.mxu1 %vm2944_vm2, %v5791_v7 }
 0x682   : > { %4241 = vmatpush1.bf16.msra.mxu0 %v4198_v19  ;;  %4428 = vmatprep.mubr.bf16.mxu1 %v8513_v3 }
 0x684   : > { %v4349_v28 = vpop.permute.xlu0 %4348 }
 0x685   : > { %5485 = vmatmul.mubr.msk.bf16.vlgmr.msra.gmra.mxu0 %vm2944_vm2, %v5792_v36  ;;  %v4369_v25 = vsel %vm8540_vm13, %v4347_v33, %v4349_v28 }
 0x686   : > { %4410 = vmatprep.subr.bf16.mxu1 %v4369_v25  ;;  %4268 = vmatprep.mubr.bf16.mxu0 %v8513_v3 }
 0x687   : > { %4411 = vmatpush1.bf16.msra.mxu1 %v4368_v34 }
 0x68a   : > { %5501 = vmatmul.mubr.msk.bf16.vlgmr.msra.gmra.mxu1 %vm2944_vm2, %v5793_v57 }
 0x68b   : > { %4438 = vmatprep.mubr.bf16.mxu1 %v8513_v3 }
 0x68d   : > { %5486 = vmatmul.mubr.msk.bf16.gmra.mxu0 %vm2944_vm2, %v5794_v60 }
 0x68e   : > { %4278 = vmatprep.mubr.bf16.mxu0 %v8513_v3 }
 0x692   : > { %5502 = vmatmul.mubr.msk.bf16.gmra.mxu1 %vm2944_vm2, %v5795_v26 }
 0x693   : > { %4448 = vmatprep.mubr.bf16.mxu1 %v8513_v3 }
 0x695   : > { %5487 = vmatmul.mubr.msk.bf16.gmra.mxu0 %vm2944_vm2, %v5796_v53 }
 0x696   : > { %4288 = vmatprep.mubr.bf16.mxu0 %v8513_v3 }
 0x69a   : > { %5503 = vmatmul.mubr.msk.bf16.gmra.mxu1 %vm2944_vm2, %v5797_v50 }
 0x69b   : > { %4458 = vmatprep.mubr.bf16.mxu1 %v8513_v3 }
 0x69d   : > { %5488 = vmatmul.mubr.msk.bf16.gmra.mxu0 %vm2944_vm2, %v5798_v1 }
 0x6a2   : > { %5504 = vmatmul.mubr.msk.bf16.gmra.mxu1 %vm2944_vm2, %v5799_v0 }
 0x6c9   : > { %v2991_v24 = vpop.f32.mrf.mxu1 }
 0x6cb   : > { %v2993_v59 = vpop.f32.mrf.mxu1 }
 0x6cd   : > { %v2995_v27 = vpop.f32.mrf.mxu1 }
 0x6cf   : > { %v2997_v48 = vpop.f32.mrf.mxu1 }
 0x6d1   : > { %v3001_v51 = vpop.f32.mrf.mxu1 }
 0x6d3   : > { %v3003_v30 = vpop.f32.mrf.mxu1 }
 0x6d5   : > { %v3005_v45 = vpop.f32.mrf.mxu1 }
 0x6d7   : > { %v3007_v4 = vpop.f32.mrf.mxu1 }
 0x6d9   : > { %v3011_v20 = vpop.f32.mrf.mxu1 }
 0x6db   : > { %v3013_v52 = vpop.f32.mrf.mxu1 }
 0x6dd   : > { %v3015_v58 = vpop.f32.mrf.mxu1 }
 0x6df   : > { %v3017_v3 = vpop.f32.mrf.mxu1 }
 0x6e1   : > { %v3021_v6 = vpop.f32.mrf.mxu1 }
 0x6e3   : > { %v3023_v5 = vpop.f32.mrf.mxu1 }
 0x6e5   : > { %v3025_v42 = vpop.f32.mrf.mxu1  ;;  %v3188_v39 = vpop.f32.mrf.mxu0 }
 0x6e6   : > { %v3189_v44 = vadd.f32 %v3188_v39, %v2991_v24 }
 0x6e7   : > { %v3027_v13 = vpop.f32.mrf.mxu1  ;;  %v3190_v15 = vpop.f32.mrf.mxu0 }
 0x6e8   : > { %v3191_v31 = vadd.f32 %v3190_v15, %v2993_v59 }
 0x6e9   : > { %v3192_v55 = vpop.f32.mrf.mxu0  ;;  %v3410_v47 = vpop.f32.mrf.mxu1 }
 0x6ea   : > { %v3193_v29 = vadd.f32 %v3192_v55, %v2995_v27  ;;  %v3449_v37 = vadd.f32 %v3410_v47, %v3189_v44 }
 0x6eb   : > { %v3194_v49 = vpop.f32.mrf.mxu0  ;;  %v3412_v21 = vpop.f32.mrf.mxu1 }
 0x6ec   : > { %v3195_v9 = vadd.f32 %v3194_v49, %v2997_v48  ;;  %v3450_v23 = vadd.f32 %v3412_v21, %v3191_v31 }
 0x6ed   : > { %v3198_v43 = vpop.f32.mrf.mxu0  ;;  %v3414_v40 = vpop.f32.mrf.mxu1 }
 0x6ee   : > { %v3199_v54 = vadd.f32 %v3198_v43, %v3001_v51  ;;  %v3451_v56 = vadd.f32 %v3414_v40, %v3193_v29 }
 0x6ef   : > { %v3200_v41 = vpop.f32.mrf.mxu0  ;;  %v3416_v17 = vpop.f32.mrf.mxu1 }
 0x6f0   : > { %v3201_v32 = vadd.f32 %v3200_v41, %v3003_v30  ;;  %v3452_v63 = vadd.f32 %v3416_v17, %v3195_v9 }
 0x6f1   : > { %v3202_v11 = vpop.f32.mrf.mxu0  ;;  %v3420_v38 = vpop.f32.mrf.mxu1 }
 0x6f2   : > { %v3203_v46 = vadd.f32 %v3202_v11, %v3005_v45  ;;  %v3453_v14 = vadd.f32 %v3420_v38, %v3199_v54 }
 0x6f3   : > { %v3204_v12 = vpop.f32.mrf.mxu0  ;;  %v3422_v22 = vpop.f32.mrf.mxu1 }
 0x6f4   : > { %v3205_v16 = vadd.f32 %v3204_v12, %v3007_v4  ;;  %v3454_v35 = vadd.f32 %v3422_v22, %v3201_v32 }
 0x6f5   : > { %v3208_v33 = vpop.f32.mrf.mxu0  ;;  %v3424_v18 = vpop.f32.mrf.mxu1 }
 0x6f6   : > { %v3209_v7 = vadd.f32 %v3208_v33, %v3011_v20  ;;  %v3455_v2 = vadd.f32 %v3424_v18, %v3203_v46  ;;  %v8430_v20 = vmov 0.0  }
 0x6f7   : > { %v3210_v61 = vpop.f32.mrf.mxu0  ;;  %v3426_v19 = vpop.f32.mrf.mxu1  ;;  %4667 = vmatprep.mubr.f32.mxu0 %v8430_v20  ;;  %605 = vst.msk [vmem:[#allocation4] sm:$0xff] %vm604_vm12, %v8430_v20  ;;  %606 = vst.msk [vmem:[#allocation4 + $0x18] sm:$0xff] %vm604_vm12, %v8430_v20  ;;  %4673 = vmatprep.mubr.f32.mxu1 %v8430_v20 }
 0x6f8   : > { %v3211_v36 = vadd.f32 %v3210_v61, %v3013_v52  ;;  %v3456_v62 = vadd.f32 %v3426_v19, %v3205_v16 }
 0x6f9   : > { %v3212_v28 = vpop.f32.mrf.mxu0  ;;  %v3430_v25 = vpop.f32.mrf.mxu1 }
 0x6fa   : > { %v3213_v34 = vadd.f32 %v3212_v28, %v3015_v58  ;;  %v3457_v57 = vadd.f32 %v3430_v25, %v3209_v7 }
 0x6fb   : > { %v3214_v60 = vpop.f32.mrf.mxu0  ;;  %v3432_v26 = vpop.f32.mrf.mxu1 }
 0x6fc   : > { %v3215_v53 = vadd.f32 %v3214_v60, %v3017_v3  ;;  %v3458_v50 = vadd.f32 %v3432_v26, %v3211_v36 }
 0x6fd   : > { %v3218_v1 = vpop.f32.mrf.mxu0  ;;  %v3434_v0 = vpop.f32.mrf.mxu1 }
 0x6fe   : > { %v3219_v24 = vadd.f32 %v3218_v1, %v3021_v6  ;;  %v3459_v59 = vadd.f32 %v3434_v0, %v3213_v34 }
 0x6ff   : > { %v3220_v27 = vpop.f32.mrf.mxu0  ;;  %v3436_v48 = vpop.f32.mrf.mxu1 }
 0x700   : > { %v3221_v51 = vadd.f32 %v3220_v27, %v3023_v5  ;;  %v3460_v30 = vadd.f32 %v3436_v48, %v3215_v53 }
 0x701   : > { %v3222_v45 = vpop.f32.mrf.mxu0  ;;  %v3440_v4 = vpop.f32.mrf.mxu1 }
 0x702   : > { %v3223_v52 = vadd.f32 %v3222_v45, %v3025_v42  ;;  %v3461_v58 = vadd.f32 %v3440_v4, %v3219_v24 }
 0x703   : > { %v3224_v3 = vpop.f32.mrf.mxu0  ;;  %v3442_v6 = vpop.f32.mrf.mxu1 }
 0x704   : > { %v3225_v39 = vadd.f32 %v3224_v3, %v3027_v13  ;;  %v8001_v5 = vadd.f32 %v3442_v6, %v3221_v51 }
 0x705   : > { %v3444_v44 = vpop.f32.mrf.mxu1  ;;  %v3580_v15 = vpop.f32.mrf.mxu0 }
 0x706   : > { %v8003_v31 = vadd.f32 %v3444_v44, %v3223_v52  ;;  %v3619_v55 = vadd.f32 %v3580_v15, %v3449_v37 }
 0x707   : > { %v3446_v47 = vpop.f32.mrf.mxu1  ;;  %v3582_v29 = vpop.f32.mrf.mxu0 }
 0x708   : > { %v8005_v49 = vadd.f32 %v3446_v47, %v3225_v39  ;;  %v3620_v21 = vadd.f32 %v3582_v29, %v3450_v23 }
 0x709   : > { %v3584_v9 = vpop.f32.mrf.mxu0  ;;  %v3750_v43 = vpop.f32.mrf.mxu1 }
 0x70a   : > { %v3621_v40 = vadd.f32 %v3584_v9, %v3451_v56  ;;  %v3789_v42 = vadd.f32 %v3750_v43, %v3619_v55 }
 0x70b   : > { %v3586_v54 = vpop.f32.mrf.mxu0  ;;  %v3752_v41 = vpop.f32.mrf.mxu1 }
 0x70c   : > { %v3622_v17 = vadd.f32 %v3586_v54, %v3452_v63  ;;  %v3790_v13 = vadd.f32 %v3752_v41, %v3620_v21 }
 0x70d   : > { %v3590_v32 = vpop.f32.mrf.mxu0  ;;  %v3754_v11 = vpop.f32.mrf.mxu1 }
 0x70e   : > { %v3623_v38 = vadd.f32 %v3590_v32, %v3453_v14  ;;  %v3791_v46 = vadd.f32 %v3754_v11, %v3621_v40 }
 0x70f   : > { %v3592_v12 = vpop.f32.mrf.mxu0  ;;  %v3756_v22 = vpop.f32.mrf.mxu1 }
 0x710   : > { %v3624_v37 = vadd.f32 %v3592_v12, %v3454_v35  ;;  %v3792_v16 = vadd.f32 %v3756_v22, %v3622_v17 }
 0x711   : > { %v3594_v33 = vpop.f32.mrf.mxu0  ;;  %v3760_v18 = vpop.f32.mrf.mxu1 }
 0x712   : > { %v3625_v7 = vadd.f32 %v3594_v33, %v3455_v2  ;;  %v8007_v23 = vadd.f32 %v3760_v18, %v3623_v38 }
 0x713   : > { %v3596_v61 = vpop.f32.mrf.mxu0  ;;  %v3762_v56 = vpop.f32.mrf.mxu1 }
 0x714   : > { %v3626_v19 = vadd.f32 %v3596_v61, %v3456_v62  ;;  %v8009_v36 = vadd.f32 %v3762_v56, %v3624_v37 }
 0x715   : > { %v3600_v63 = vpop.f32.mrf.mxu0  ;;  %v3764_v28 = vpop.f32.mrf.mxu1 }
 0x716   : > { %v3627_v25 = vadd.f32 %v3600_v63, %v3457_v57  ;;  %v8011_v34 = vadd.f32 %v3764_v28, %v3625_v7 }
 0x717   : > { %v3602_v14 = vpop.f32.mrf.mxu0  ;;  %v3766_v60 = vpop.f32.mrf.mxu1 }
 0x718   : > { %v3628_v26 = vadd.f32 %v3602_v14, %v3458_v50  ;;  %v8013_v35 = vadd.f32 %v3766_v60, %v3626_v19 }
 0x719   : > { %v3604_v53 = vpop.f32.mrf.mxu0  ;;  %v3770_v1 = vpop.f32.mrf.mxu1 }
 0x71a   : > { %v3629_v2 = vadd.f32 %v3604_v53, %v3459_v59  ;;  %v8015_v0 = vadd.f32 %v3770_v1, %v3627_v25 }
 0x71b   : > { %v3606_v24 = vpop.f32.mrf.mxu0  ;;  %v3772_v27 = vpop.f32.mrf.mxu1 }
 0x71c   : > { %v3630_v62 = vadd.f32 %v3606_v24, %v3460_v30  ;;  %v8017_v48 = vadd.f32 %v3772_v27, %v3628_v26 }
 0x71d   : > { %v3610_v51 = vpop.f32.mrf.mxu0  ;;  %v3774_v45 = vpop.f32.mrf.mxu1 }
 0x71e   : > { %v3631_v57 = vadd.f32 %v3610_v51, %v3461_v58  ;;  %v8019_v4 = vadd.f32 %v3774_v45, %v3629_v2 }
 0x71f   : > { %v8021_v52 = vpop.f32.mrf.mxu0  ;;  %v3776_v50 = vpop.f32.mrf.mxu1 }
 0x720   : > { %v8023_v3 = vadd.f32 %v3776_v50, %v3630_v62 }
 0x721   : > { %v8025_v6 = vpop.f32.mrf.mxu0  ;;  %v3780_v59 = vpop.f32.mrf.mxu1 }
 0x722   : > { %v8027_v39 = vadd.f32 %v3780_v59, %v3631_v57 }
 0x723   : > { %v8029_v44 = vpop.f32.mrf.mxu0  ;;  %v8031_v30 = vpop.f32.mrf.mxu1 }
 0x725   : > { %v8033_v15 = vpop.f32.mrf.mxu1  ;;  %v3920_v55 = vpop.f32.mrf.mxu0 }
 0x726   : > { %v3959_v58 = vadd.f32 %v3920_v55, %v3789_v42 }
 0x727   : > { %v8035_v47 = vpop.f32.mrf.mxu1  ;;  %v3922_v29 = vpop.f32.mrf.mxu0 }
 0x728   : > { %v3960_v21 = vadd.f32 %v3922_v29, %v3790_v13 }
 0x729   : > { %v3924_v9 = vpop.f32.mrf.mxu0  ;;  %v4090_v43 = vpop.f32.mrf.mxu1 }
 0x72a   : > { %v3961_v40 = vadd.f32 %v3924_v9, %v3791_v46  ;;  %v8037_v54 = vadd.f32 %v4090_v43, %v3959_v58  ;;  %v8081_v58 = vpop.permute.xlu1 %4510  ;;  %v8087_v9 = vpop.permute.xlu0 %4514 }
 0x72b   : > { %v3926_v41 = vpop.f32.mrf.mxu0  ;;  %v4092_v17 = vpop.f32.mrf.mxu1 }
 0x72c   : > { %v3962_v32 = vadd.f32 %v3926_v41, %v3792_v16  ;;  %v8039_v11 = vadd.f32 %v4092_v17, %v3960_v21 }
 0x72d   : > { %v3930_v38 = vpop.f32.mrf.mxu0  ;;  %v4094_v12 = vpop.f32.mrf.mxu1 }
 0x72e   : > { %v8041_v22 = vadd.f32 %v4094_v12, %v3961_v40  ;;  %v8103_v20 = vpop.permute.xlu0 %4506 }
 0x72f   : > { %v3932_v37 = vpop.f32.mrf.mxu0  ;;  %v4096_v42 = vpop.f32.mrf.mxu1  ;;  %8555 = vst [vmem:[#allocation21_spill] sm:$0xff] %v8103_v20 }
 0x730   : > { %8542 = vst [vmem:[#allocation32_spill] sm:$0xff] %v8041_v22  ;;  %v8043_v33 = vadd.f32 %v4096_v42, %v3962_v32  ;;  %v8097_v32 = vpop.permute.xlu1 %4562 }
 0x731   : > { %v3934_v18 = vpop.f32.mrf.mxu0  ;;  %v8045_v13 = vpop.f32.mrf.mxu1  ;;  %8552 = vst [vmem:[#allocation20_spill] sm:$0xff] %v8097_v32 }
 0x732   : > { %8543 = vst [vmem:[#allocation24_spill] sm:$0xff] %v8043_v33  ;;  %v8117_v22 = vpop.permute.xlu0 %4502  ;;  %v3965_v33 = vadd.f32 %v3934_v18, %v8011_v34 }
 0x733   : > { %v8047_v7 = vpop.f32.mrf.mxu0  ;;  %v8049_v46 = vpop.f32.mrf.mxu1  ;;  %8560 = vst [vmem:[#allocation16_spill] sm:$0xff] %v8117_v22  ;;  %v3963_v22 = vadd.f32 %v3930_v38, %v8007_v23 }
 0x735   : > { %v8051_v61 = vpop.f32.mrf.mxu0  ;;  %v8053_v16 = vpop.f32.mrf.mxu1 }
 0x736   : > { %v4135_v18 = vadd.f32 %v8053_v16, %v3965_v33 }
 0x737   : > { %v8055_v56 = vpop.f32.mrf.mxu0  ;;  %v8057_v19 = vpop.f32.mrf.mxu1 }
 0x739   : > { %v8059_v63 = vpop.f32.mrf.mxu0  ;;  %v8061_v28 = vpop.f32.mrf.mxu1 }
 0x73b   : > { %v3946_v25 = vpop.f32.mrf.mxu0  ;;  %v8063_v14 = vpop.f32.mrf.mxu1 }
 0x73d   : > { %v3950_v60 = vpop.f32.mrf.mxu0  ;;  %v8065_v26 = vpop.f32.mrf.mxu1 }
 0x73f   : > { %v3952_v53 = vpop.f32.mrf.mxu0  ;;  %v8067_v1 = vpop.f32.mrf.mxu1 }
 0x741   : > { %v3954_v2 = vpop.f32.mrf.mxu0  ;;  %v4120_v24 = vpop.f32.mrf.mxu1 }
 0x743   : > { %v8069_v27 = vpop.f32.mrf.mxu0  ;;  %v4122_v62 = vpop.f32.mrf.mxu1 }
 0x745   : > { %v4124_v51 = vpop.f32.mrf.mxu1  ;;  %v8071_v45 = vpop.f32.mrf.mxu0 }
 0x747   : > { %v8073_v57 = vpop.f32.mrf.mxu1  ;;  %v8075_v50 = vpop.f32.mrf.mxu0 }
 0x749   : > { %v8077_v59 = vpop.f32.mrf.mxu0 }
 0x74a   : > { %8544 = vst [vmem:[#allocation25_spill] sm:$0xff] %v8077_v59  ;;  %v8079_v55 = vpop.f32.mrf.mxu1 }
 0x74b   : > { %8545 = vst [vmem:[#allocation27_spill] sm:$0xff] %v8079_v55  ;;  %v8083_v29 = vpop.f32.mrf.mxu0 }
 0x74c   : > { %8546 = vst [vmem:[#allocation29_spill] sm:$0xff] %v8083_v29  ;;  %v8085_v21 = vpop.f32.mrf.mxu1 }
 0x74d   : > { %8547 = vst [vmem:[#allocation30_spill] sm:$0xff] %v8085_v21  ;;  %v8089_v43 = vpop.f32.mrf.mxu0 }
 0x74e   : > { %8548 = vst [vmem:[#allocation34_spill] sm:$0xff] %v8089_v43  ;;  %v8091_v40 = vpop.f32.mrf.mxu1 }
 0x74f   : > { %8549 = vst [vmem:[#allocation17_spill] sm:$0xff] %v8091_v40  ;;  %v8093_v41 = vpop.f32.mrf.mxu0  ;;  %v8113_v40 = vpop.permute.xlu1 %4558 }
 0x750   : > { %8550 = vst [vmem:[#allocation35_spill] sm:$0xff] %v8093_v41  ;;  %v8095_v17 = vpop.f32.mrf.mxu1  ;;  %8558 = vst [vmem:[#allocation23_spill] sm:$0xff] %v8113_v40 }
 0x751   : > { %8551 = vst [vmem:[#allocation19_spill] sm:$0xff] %v8095_v17  ;;  %v8099_v12 = vpop.f32.mrf.mxu0 }
 0x752   : > { %8553 = vst [vmem:[#allocation28_spill] sm:$0xff] %v8099_v12  ;;  %v8101_v42 = vpop.f32.mrf.mxu1 }
 0x753   : > { %8554 = vst [vmem:[#allocation31_spill] sm:$0xff] %v8101_v42  ;;  %v8105_v10 = vpop.f32.mrf.mxu0  ;;  %v3632_v42 = vadd.f32 %v8021_v52, %v8001_v5  ;;  %v8128_v12 = vpop.permute.xlu1 %4554 }
 0x754   : > { %v8107_v8 = vpop.f32.mrf.mxu1 }
 0x755   : > { %8556 = vst [vmem:[#allocation22_spill] sm:$0xff] %v8107_v8  ;;  %v8109_v55 = vpop.f32.mrf.mxu0  ;;  %v3633_v8 = vadd.f32 %v8025_v6, %v8003_v31  ;;  %v3802_v40 = vadd.f32 %v8031_v30, %v3632_v42  ;;  %v8135_v31 = vpop.permute.xlu0 %4498  ;;  %v3966_v30 = vadd.f32 %v8047_v7, %v8013_v35  ;;  %v3969_v35 = vadd.f32 %v8059_v63, %v8019_v4 }
 0x756   : > { %v8111_v21 = vpop.f32.mrf.mxu1 }
 0x757   : > { %8557 = vst [vmem:[#allocation26_spill] sm:$0xff] %v8111_v21  ;;  %v4282_v59 = vpop.f32.mrf.mxu0  ;;  %v3634_v21 = vadd.f32 %v8029_v44, %v8005_v49  ;;  %v3803_v5 = vadd.f32 %v8033_v15, %v3633_v8  ;;  %v3972_v6 = vadd.f32 %v3952_v53, %v3802_v40  ;;  %v4133_v44 = vadd.f32 %v8045_v13, %v3963_v22 }
 0x758   : > { %v8115_v17 = vpop.f32.mrf.mxu1  ;;  %v3967_v8 = vadd.f32 %v8051_v61, %v8015_v0  ;;  %v3970_v15 = vadd.f32 %v3946_v25, %v8023_v3  ;;  %v3968_v22 = vadd.f32 %v8055_v56, %v8017_v48  ;;  %v8152_v61 = vpop.permute.xlu1 %4550  ;;  %v4136_v25 = vadd.f32 %v8057_v19, %v3966_v30 }
 0x759   : > { %8559 = vst [vmem:[#allocation18_spill] sm:$0xff] %v8115_v17  ;;  %v4284_v32 = vpop.f32.mrf.mxu0  ;;  %v3804_v52 = vadd.f32 %v8035_v47, %v3634_v21  ;;  %v3973_v34 = vadd.f32 %v3954_v2, %v3803_v5  ;;  %v4142_v47 = vadd.f32 %v4122_v62, %v3972_v6  ;;  %v4139_v16 = vadd.f32 %v8065_v26, %v3969_v35  ;;  %v4495_v4 = vpop.permute.xlu0 %4494 }
 0x75a   : > { %v8119_v43 = vpop.f32.mrf.mxu1  ;;  %v4138_v33 = vadd.f32 %v8063_v14, %v3968_v22  ;;  %v4300_v40 = vadd.f32 %v8075_v50, %v8039_v11 }
 0x75b   : > { %8561 = vst [vmem:[#allocation33_spill] sm:$0xff] %v8119_v43  ;;  %v4286_v20 = vpop.f32.mrf.mxu0  ;;  %v3964_v43 = vadd.f32 %v3932_v37, %v8009_v36  ;;  %v3971_v36 = vadd.f32 %v3950_v60, %v8027_v39  ;;  %v4140_v39 = vadd.f32 %v8067_v1, %v3970_v15  ;;  %v4143_v0 = vadd.f32 %v4124_v51, %v3973_v34 }
 0x75c   : > { %v4452_v41 = vpop.f32.mrf.mxu1  ;;  %v4309_v62 = vadd.f32 %v4284_v32, %v4139_v16  ;;  %v4308_v14 = vadd.f32 %v4282_v59, %v4138_v33  ;;  %v8562_v59 = vld [vmem:[#allocation24_spill] sm:$0xff]  ;;  %v8576_v16 = vld [vmem:[#allocation25_spill] sm:$0xff] }
 0x75d   : > { %v4290_v17 = vpop.f32.mrf.mxu0  ;;  %v4134_v23 = vadd.f32 %v8049_v46, %v3964_v43  ;;  %v4141_v13 = vadd.f32 %v4120_v24, %v3971_v36  ;;  %v3974_v46 = vadd.f32 %v8069_v27, %v3804_v52  ;;  %v4310_v53 = vadd.f32 %v4286_v20, %v4140_v39  ;;  %v8563_v52 = vld [vmem:[#allocation29_spill] sm:$0xff]  ;;  %v4491_v50 = vpop.permute.xlu0 %4490  ;;  %v8572_v39 = vld [vmem:[#allocation22_spill] sm:$0xff]  ;;  %v8575_v33 = vld [vmem:[#allocation32_spill] sm:$0xff] }
 0x75e   : > { %v4454_v29 = vpop.f32.mrf.mxu1  ;;  %v4137_v24 = vadd.f32 %v8061_v28, %v3967_v8  ;;  %v4299_v27 = vadd.f32 %v8071_v45, %v8037_v54  ;;  %v4547_v28 = vpop.permute.xlu1 %4546  ;;  %v4478_v5 = vadd.f32 %v4452_v41, %v4308_v14  ;;  %v4302_v6 = vadd.f32 %v8563_v52, %v8562_v59  ;;  %v8568_v41 = vld [vmem:[#allocation21_spill] sm:$0xff]  ;;  %v8570_v22 = vld [vmem:[#allocation26_spill] sm:$0xff] }
 0x75f   : > { %v4292_v49 = vpop.f32.mrf.mxu0  ;;  %v4311_v48 = vadd.f32 %v4290_v17, %v4141_v13  ;;  %v4144_v63 = vadd.f32 %v8073_v57, %v3974_v46  ;;  %v4306_v57 = vadd.f32 %v8105_v10, %v4136_v25  ;;  %v4479_v17 = vadd.f32 %v4454_v29, %v4309_v62 }
 0x760   : > { %v4456_v38 = vpop.f32.mrf.mxu1  ;;  %v4312_v3 = vadd.f32 %v4292_v49, %v4142_v47  ;;  %v4307_v20 = vadd.f32 %v8109_v55, %v4137_v24  ;;  %v8564_v49 = vld [vmem:[#allocation28_spill] sm:$0xff]  ;;  %v8566_v55 = vld [vmem:[#allocation35_spill] sm:$0xff]  ;;  %v8569_v47 = vld [vmem:[#allocation34_spill] sm:$0xff] }
 0x761   : > { %v4294_v37 = vpop.f32.mrf.mxu0  ;;  %v4480_v21 = vadd.f32 %v4456_v38, %v4310_v53  ;;  %v4305_v30 = vadd.f32 %v8564_v49, %v4135_v18  ;;  %v4304_v29 = vadd.f32 %v8566_v55, %v4134_v23  ;;  %v8567_v38 = vld [vmem:[#allocation18_spill] sm:$0xff]  ;;  %v4527_v13 = vmul.f32 %v8568_v41, %v4479_v17  ;;  %v8571_v18 = vld [vmem:[#allocation20_spill] sm:$0xff]  ;;  %v8578_v53 = vld [vmem:[#allocation19_spill] sm:$0xff] }
 0x762   : > { %v4460_v7 = vpop.f32.mrf.mxu1  ;;  %v4313_v1 = vadd.f32 %v4294_v37, %v4143_v0  ;;  %v8565_v36 = vld [vmem:[#allocation33_spill] sm:$0xff]  ;;  %v4476_v8 = vadd.f32 %v8567_v38, %v4306_v57  ;;  %v4303_v37 = vadd.f32 %v8569_v47, %v4133_v44  ;;  %v8580_v57 = vld [vmem:[#allocation30_spill] sm:$0xff] }
 0x763   : > { %v4296_v56 = vpop.f32.mrf.mxu0  ;;  %v4481_v19 = vadd.f32 %v4460_v7, %v4311_v48  ;;  %v4477_v11 = vadd.f32 %v8565_v36, %v4307_v20  ;;  %v4528_v15 = vmul.f32 %v8568_v41, %v4480_v21  ;;  %v4475_v35 = vadd.f32 %v8570_v22, %v4305_v30 }
 0x764   : > { %v4462_v60 = vpop.f32.mrf.mxu1  ;;  %v4314_v26 = vadd.f32 %v4296_v56, %v4144_v63  ;;  %v4474_v46 = vadd.f32 %v8572_v39, %v4304_v29  ;;  %v4301_v48 = vadd.f32 %v8576_v16, %v8575_v33  ;;  %v4543_v63 = vpop.permute.xlu1 %4542  ;;  %v4575_v21 = vadd.f32 %v8128_v12, %v4527_v13 }
 0x765   : > { %v4482_v2 = vadd.f32 %v4462_v60, %v4312_v3  ;;  %v4529_v10 = vmul.f32 %v8081_v58, %v4481_v19  ;;  %v8574_v3 = vld [vmem:[#allocation23_spill] sm:$0xff]  ;;  %v4576_v62 = vadd.f32 %v8128_v12, %v4528_v15  ;;  %v8579_v19 = vld [vmem:[#allocation17_spill] sm:$0xff]  ;;  %v4523_v14 = vmul.f32 %v8135_v31, %v4475_v35 }
 0x766   : > { %v4464_v51 = vpop.f32.mrf.mxu1  ;;  %v4470_v20 = vadd.f32 %v8580_v57, %v4300_v40  ;;  %v4522_v17 = vmul.f32 %v4495_v4, %v4474_v46  ;;  %v4591_v30 = vmax.f32 %v4575_v21, 0.0  ;;  %v5934_v39 = vmov 9  }
 0x767   : > { %v4483_v43 = vadd.f32 %v4464_v51, %v4313_v1  ;;  %v4530_v54 = vmul.f32 %v8081_v58, %v4482_v2  ;;  %v8573_v58 = vld [vmem:[#allocation16_spill] sm:$0xff]  ;;  %v4577_v60 = vadd.f32 %v8574_v3, %v4529_v10  ;;  %v4472_v1 = vadd.f32 %v8578_v53, %v4302_v6  ;;  %5657 = vset.pattern.permute.xlu0 %v5934_v39 }
 0x768   : > { %v4466_v42 = vpop.f32.mrf.mxu1  ;;  %v4526_v0 = vmul.f32 %v8573_v58, %v4478_v5  ;;  %v4525_v44 = vmul.f32 %v8573_v58, %v4477_v11  ;;  %v4524_v2 = vmul.f32 %v8135_v31, %v4476_v8  ;;  %v4471_v51 = vadd.f32 %v8579_v19, %v4301_v48  ;;  %v4539_v11 = vpop.permute.xlu1 %4538 }
 0x769   : > { %v4531_v45 = vmul.f32 %v8087_v9, %v4483_v43  ;;  %v4484_v32 = vadd.f32 %v4466_v42, %v4314_v26  ;;  %v4578_v25 = vadd.f32 %v8574_v3, %v4530_v54  ;;  %v4487_v43 = vpop.permute.xlu0 %4486  ;;  %v8581_v54 = vld [vmem:[#allocation27_spill] sm:$0xff]  ;;  %v4593_v52 = vmax.f32 %v4577_v60, 0.0 }
 0x76a   : > { %v4574_v5 = vadd.f32 %v8152_v61, %v4526_v0  ;;  %v4573_v59 = vadd.f32 %v8152_v61, %v4525_v44  ;;  %v4520_v31 = vmul.f32 %v4491_v50, %v4472_v1  ;;  %v4592_v12 = vmax.f32 %v4576_v62, 0.0 }
 0x76b   : > { %v4532_v34 = vmul.f32 %v8087_v9, %v4484_v32  ;;  %v4579_v7 = vadd.f32 %v8571_v18, %v4531_v45  ;;  %v8577_v9 = vld [vmem:[#allocation31_spill] sm:$0xff]  ;;  %v4594_v42 = vmax.f32 %v4578_v25, 0.0  ;;  %v4469_v45 = vadd.f32 %v8581_v54, %v4299_v27 }
 0x76c   : > { %v4473_v56 = vadd.f32 %v8577_v9, %v4303_v37  ;;  %v4572_v6 = vadd.f32 %v4547_v28, %v4524_v2  ;;  %v4519_v40 = vmul.f32 %v4491_v50, %v4471_v51  ;;  %v4571_v49 = vadd.f32 %v4547_v28, %v4523_v14  ;;  %v8585_v14 = vld [vmem:[#allocation10_spill] sm:$0xff] }
 0x76d   : > { %v4580_v23 = vadd.f32 %v8571_v18, %v4532_v34  ;;  %v4595_v26 = vmax.f32 %v4579_v7, 0.0  ;;  %v4518_v36 = vmul.f32 %v4487_v43, %v4470_v20  ;;  %v4570_v27 = vadd.f32 %v4543_v63, %v4522_v17  ;;  %v4535_v29 = vpop.permute.xlu0 %4534  ;;  %v521_v18 = vld [vmem:[%s8381_s2 + $0x40] sm:$0xff]  ;;  %v522_v7 = vld [vmem:[%s8381_s2 + $0x48] sm:$0xff] }
 0x76e   : > { %v4521_v32 = vmul.f32 %v4495_v4, %v4473_v56  ;;  %v4590_v4 = vmax.f32 %v4574_v5, 0.0  ;;  %v4517_v61 = vmul.f32 %v4487_v43, %v4469_v45  ;;  %v4589_v55 = vmax.f32 %v4573_v59, 0.0 }
 0x76f   : > { %v4596_v24 = vmax.f32 %v4580_v23, 0.0  ;;  %v4568_v38 = vadd.f32 %v4539_v11, %v4520_v31  ;;  %v4588_v50 = vmax.f32 %v4572_v6, 0.0  ;;  %v4567_v28 = vadd.f32 %v4539_v11, %v4519_v40  ;;  %v8214_v23 = vld [vmem:[%s8381_s2] sm:$0x1] }
 0x770   : > { %v4569_v10 = vadd.f32 %v4543_v63, %v4521_v32  ;;  %v4587_v8 = vmax.f32 %v4571_v49, 0.0  ;;  %v4566_v41 = vadd.f32 %v4535_v29, %v4518_v36  ;;  %v4586_v15 = vmax.f32 %v4570_v27, 0.0  ;;  %v8583_v63 = vld [vmem:[#allocation8_spill] sm:$0xff] }
 0x771   : > { %4619 = vmatprep.subr.mxu0 %v4596_v24  ;;  %5523 = vmatprep.subr.mxu1 %v4596_v24  ;;  %v4565_v34 = vadd.f32 %v4535_v29, %v4517_v61  ;;  %v4584_v37 = vmax.f32 %v4568_v38, 0.0  ;;  %v4583_v22 = vmax.f32 %v4567_v28, 0.0  ;;  %v8582_v46 = vmov 0.0   ;;  %v8584_v24 = vld [vmem:[#allocation9_spill] sm:$0xff] }
 0x772   : > { %4620 = vmatpush1.msra.mxu0 %v4595_v26  ;;  %5531 = vmatpush1.msra.mxu1 %v4595_v26  ;;  %v4585_v47 = vmax.f32 %v4569_v10, 0.0  ;;  %v4582_v35 = vmax.f32 %v4566_v41, 0.0  ;;  %608 = vst.msk [vmem:[#allocation4 + $0x10] sm:$0xff] %vm607_vm1, %v8582_v46  ;;  %609 = vst.msk [vmem:[#allocation4 + $0x28] sm:$0xff] %vm607_vm1, %v8582_v46  ;;  %v5935_v33 = vmov 10   ;;  %v8224_v53 = vsub.s32 1, %v8583_v63 }
 0x773   : > { %4621 = vmatprep.subr.mxu0 %v4594_v42  ;;  %5524 = vmatprep.subr.mxu1 %v4594_v42  ;;  %v4581_v13 = vmax.f32 %v4565_v34, 0.0 }
 0x774   : > { %4622 = vmatpush1.msra.mxu0 %v4593_v52  ;;  %5532 = vmatpush1.msra.mxu1 %v4593_v52 }
 0x775   : > { %4623 = vmatprep.subr.mxu0 %v4592_v12  ;;  %5525 = vmatprep.subr.mxu1 %v4592_v12 }
 0x776   : > { %4624 = vmatpush1.msra.mxu0 %v4591_v30  ;;  %5533 = vmatpush1.msra.mxu1 %v4591_v30 }
 0x777   : > { %4625 = vmatprep.subr.mxu0 %v4590_v4  ;;  %5526 = vmatprep.subr.mxu1 %v4590_v4 }
 0x778   : > { %4626 = vmatpush1.msra.mxu0 %v4589_v55  ;;  %5534 = vmatpush1.msra.mxu1 %v4589_v55 }
 0x779   : > { %4627 = vmatprep.subr.mxu0 %v4588_v50  ;;  %5527 = vmatprep.subr.mxu1 %v4588_v50 }
 0x77a   : > { %4628 = vmatpush1.msra.mxu0 %v4587_v8  ;;  %5535 = vmatpush1.msra.mxu1 %v4587_v8 }
 0x77b   : > { %4629 = vmatprep.subr.mxu0 %v4586_v15  ;;  %5528 = vmatprep.subr.mxu1 %v4586_v15 }
 0x77c   : > { %4630 = vmatpush1.msra.mxu0 %v4585_v47  ;;  %5536 = vmatpush1.msra.mxu1 %v4585_v47 }
 0x77d   : > { %4631 = vmatprep.subr.mxu0 %v4584_v37  ;;  %5529 = vmatprep.subr.mxu1 %v4584_v37 }
 0x77e   : > { %4632 = vmatpush1.msra.mxu0 %v4583_v22  ;;  %5537 = vmatpush1.msra.mxu1 %v4583_v22 }
 0x77f   : > { %4633 = vmatprep.subr.mxu0 %v4582_v35  ;;  %5530 = vmatprep.subr.mxu1 %v4582_v35 }
 0x780   : > { %4634 = vmatpush1.msra.mxu0 %v4581_v13  ;;  %5538 = vmatpush1.msra.mxu1 %v4581_v13 }
 0x781   : > { %5505 = vmatmul.mubr.msk.f32.vlgmr.msra.gmra.mxu0 %vm2944_vm2, %v521_v18  ;;  %5506 = vmatmul.mubr.msk.f32.vlgmr.msra.gmra.mxu1 %vm2944_vm2, %v522_v7  ;;  %vm4700_vm2 = vcmask 1047808  }
 0x782   : > { %5658 = vset.pattern.permute.xlu1 %v5935_v33 }
 0x841   : > { %v4669_v58 = vpop.f32.mrf.mxu0  ;;  %v4675_v0 = vpop.f32.mrf.mxu1 }
 0x842   : > { %4684 = vrot.lane.b32.xlu1 %v4669_v58, %s5918_s27  ;;  %4688 = vrot.lane.b32.xlu0 %v4675_v0, %s5918_s27 }
 0x843   : > { %v4671_v3 = vpop.f32.mrf.mxu0  ;;  %v4677_v25 = vpop.f32.mrf.mxu1 }
 0x846   : > { %4686 = vrot.lane.b32.xlu1 %v4671_v3, %s5918_s27  ;;  %4970 = vperm.xlu0 %5657, %v8214_v23  }
 0x84a   : > { %4690 = vrot.lane.b32.xlu1 %v4677_v25, %s5918_s27  ;;  %5659 = vset.pattern.permute.xlu0 %v5935_v33  ;;  %s8586_s27 = smov 112  }
 0x8b4   : > { %v4685_v16 = vpop.permute.xlu1 %4684  ;;  %v4689_v48 = vpop.permute.xlu0 %4688 }
 0x8b5   : > { %4701 = vst.msk [vmem:[#allocation4] sm:$0xff] %vm4700_vm2, %v4685_v16  ;;  %4704 = vst.msk [vmem:[#allocation4 + $0x18] sm:$0xff] %vm4700_vm2, %v4689_v48 }
 0x8b8   : > { %v4687_v9 = vpop.permute.xlu1 %4686 }
 0x8b9   : > { %v4692_v56 = vsel %vm604_vm12, %v4685_v16, %v4687_v9  ;;  %4703 = vst.msk [vmem:[#allocation4 + $0x10] sm:$0xff] %vm604_vm12, %v4687_v9 }
 0x8ba   : > { %4702 = vst [vmem:[#allocation4 + $0x8] sm:$0xff] %v4692_v56 }
 0x8bc   : > { %v4691_v44 = vpop.permute.xlu1 %4690 }
 0x8bd   : > { %v4693_v60 = vsel %vm604_vm12, %v4689_v48, %v4691_v44  ;;  %4706 = vst.msk [vmem:[#allocation4 + $0x28] sm:$0xff] %vm604_vm12, %v4691_v44  ;;  %vm8590_vm12 = vcmask 793600  }
 0x8be   : > { %4705 = vst [vmem:[#allocation4 + $0x20] sm:$0xff] %v4693_v60  ;;  %vm8591_vm3 = vmmov %vm8590_vm12 }
 0x8c1   : > { %v4707_v1 = vld [vmem:[#allocation4] ss:$8 sm:$0x7]  ;;  %v4735_v19 = vld [vmem:[#allocation4 + $0x1] ss:$8 sm:$0x7]  ;;  %v8281_v41 = vpop.permute.xlu0 %4970 }
 0x8c2   : > { %v4716_v2 = vrot.slane %v4707_v1, %v8224_v53  ;;  %v4712_v62 = vrot.slane %v4707_v1, %v8584_v24  ;;  %v4740_v51 = vrot.slane %v4735_v19, %v8584_v24  ;;  %v4720_v21 = vrot.slane %v4707_v1, %v8585_v14  ;;  %v4763_v57 = vld [vmem:[#allocation4 + $0x2] ss:$8 sm:$0x7]  ;;  %v4793_v42 = vld [vmem:[#allocation4 + $0x3] ss:$8 sm:$0x7] }
 0x8c3   : > { %v4748_v26 = vrot.slane %v4735_v19, %v8585_v14  ;;  %v4744_v43 = vrot.slane %v4735_v19, %v8224_v53  ;;  %v4772_v20 = vrot.slane %v4763_v57, %v8224_v53  ;;  %v4768_v17 = vrot.slane %v4763_v57, %v8584_v24  ;;  %v4823_v59 = vld [vmem:[#allocation4 + $0x4] ss:$8 sm:$0x7]  ;;  %v4851_v12 = vld [vmem:[#allocation4 + $0x5] ss:$8 sm:$0x7] }
 0x8c4   : > { %4723 = vrot.lane.b32.xlu1 %v4716_v2, %s5922_s8  ;;  %4721 = vrot.lane.b32.xlu0 %v4712_v62, %s5922_s8  ;;  %v4798_v5 = vrot.slane %v4793_v42, %v8584_v24  ;;  %v4776_v54 = vrot.slane %v4763_v57, %v8585_v14  ;;  %v4806_v45 = vrot.slane %v4793_v42, %v8585_v14  ;;  %v4881_v36 = vld [vmem:[#allocation4 + $0x6] ss:$8 sm:$0x7]  ;;  %v4911_v27 = vld [vmem:[#allocation4 + $0x7] ss:$8 sm:$0x7] }
 0x8c5   : > { %v4802_v32 = vrot.slane %v4793_v42, %v8224_v53  ;;  %v4832_v52 = vrot.slane %v4823_v59, %v8224_v53  ;;  %v4828_v31 = vrot.slane %v4823_v59, %v8584_v24  ;;  %v4856_v6 = vrot.slane %v4851_v12, %v8584_v24  ;;  %v4939_v38 = vld [vmem:[#allocation4 + $0x18] ss:$8 sm:$0x7] }
 0x8c6   : > { %v4836_v40 = vrot.slane %v4823_v59, %v8585_v14  ;;  %v4864_v49 = vrot.slane %v4851_v12, %v8585_v14  ;;  %v4860_v30 = vrot.slane %v4851_v12, %v8224_v53  ;;  %v4890_v11 = vrot.slane %v4881_v36, %v8224_v53 }
 0x8c7   : > { %v4886_v4 = vrot.slane %v4881_v36, %v8584_v24  ;;  %v4916_v61 = vrot.slane %v4911_v27, %v8584_v24  ;;  %v4894_v10 = vrot.slane %v4881_v36, %v8585_v14  ;;  %v4924_v55 = vrot.slane %v4911_v27, %v8585_v14 }
 0x8c8   : > { %4749 = vrot.lane.b32.xlu1 %v4740_v51, %s8586_s27  ;;  %4725 = vrot.lane.b32.xlu0 %v4720_v21, %s5922_s8  ;;  %s8588_s8 = smov 97   ;;  %v4920_v29 = vrot.slane %v4911_v27, %v8224_v53  ;;  %v4944_v50 = vrot.slane %v4939_v38, %v8584_v24  ;;  %v4952_v28 = vrot.slane %v4939_v38, %v8585_v14  ;;  %v5936_v14 = vmov 1966171168  }
 0x8c9   : > { %v4948_v8 = vrot.slane %v4939_v38, %v8224_v53 }
 0x8cc   : > { %4753 = vrot.lane.b32.xlu1 %v4748_v26, %s8586_s27  ;;  %4751 = vrot.lane.b32.xlu0 %v4744_v43, %s8586_s27 }
 0x8d0   : > { %4779 = vrot.lane.b32.xlu1 %v4772_v20, %s8587_s10  ;;  %4777 = vrot.lane.b32.xlu0 %v4768_v17, %s8587_s10 }
 0x8d4   : > { %4807 = vrot.lane.b32.xlu1 %v4798_v5, %s8588_s8  ;;  %4781 = vrot.lane.b32.xlu0 %v4776_v54, %s8587_s10 }
 0x8d8   : > { %4811 = vrot.lane.b32.xlu1 %v4806_v45, %s8588_s8  ;;  %4809 = vrot.lane.b32.xlu0 %v4802_v32, %s8588_s8 }
 0x8dc   : > { %4839 = vrot.lane.b32.xlu1 %v4832_v52, %s8589_s11  ;;  %4837 = vrot.lane.b32.xlu0 %v4828_v31, %s8589_s11 }
 0x8e0   : > { %4865 = vrot.lane.b32.xlu1 %v4856_v6, %s8510_s16  ;;  %4841 = vrot.lane.b32.xlu0 %v4836_v40, %s8589_s11 }
 0x8e4   : > { %4869 = vrot.lane.b32.xlu1 %v4864_v49, %s8510_s16  ;;  %4867 = vrot.lane.b32.xlu0 %v4860_v30, %s8510_s16 }
 0x8e8   : > { %4897 = vrot.lane.b32.xlu1 %v4890_v11, %s8509_s15  ;;  %4895 = vrot.lane.b32.xlu0 %v4886_v4, %s8509_s15 }
 0x8ec   : > { %4925 = vrot.lane.b32.xlu1 %v4916_v61, %s8511_s13  ;;  %4899 = vrot.lane.b32.xlu0 %v4894_v10, %s8509_s15  ;;  %s8603_s15 = scalar_lea.vmem [#allocation5], %s6053_s7 }
 0x8f0   : > { %4929 = vrot.lane.b32.xlu1 %v4924_v55, %s8511_s13  ;;  %4927 = vrot.lane.b32.xlu0 %v4920_v29, %s8511_s13 }
 0x8f4   : > { %4953 = vrot.lane.b32.xlu1 %v4944_v50, %s8512_s12  ;;  %4957 = vrot.lane.b32.xlu0 %v4952_v28, %s8512_s12 }
 0x8f8   : > { %4955 = vrot.lane.b32.xlu1 %v4948_v8, %s8512_s12 }
 0x8fc   : > { %4976 = vperm.xlu1 %5658, %v8214_v23  }
 0x936   : > { %v4722_v15 = vpop.permute.xlu0 %4721  ;;  %v4724_v34 = vpop.permute.xlu1 %4723 }
 0x937   : > { %v4728_v56 = vsel %vm1030_vm10, %v4722_v15, %v4724_v34 }
 0x938   : > { %v4732_v21 = vsel %vm6194_vm6, %v4728_v56, 0.0 }
 0x93a   : > { %v4726_v47 = vpop.permute.xlu0 %4725  ;;  %v4750_v37 = vpop.permute.xlu1 %4749 }
 0x93b   : > { %v4729_v44 = vsel %vm1030_vm10, %v4724_v34, %v4726_v47 }
 0x93c   : > { %v4733_v43 = vsel %vm6198_vm7, %v4729_v44, 0.0 }
 0x93e   : > { %v4752_v22 = vpop.permute.xlu0 %4751  ;;  %v4754_v35 = vpop.permute.xlu1 %4753 }
 0x93f   : > { %v4756_v2 = vsel %vm854_vm8, %v4750_v37, %v4752_v22  ;;  %v4757_v24 = vsel %vm854_vm8, %v4752_v22, %v4754_v35  ;;  %vm8596_vm8 = vcmask 662528  }
 0x940   : > { %v4760_v5 = vadd.f32 %v4756_v2, %v4732_v21  ;;  %v4761_v54 = vadd.f32 %v4757_v24, %v4733_v43  ;;  %vm8597_vm10 = vmmov %vm8596_vm8 }
 0x942   : > { %v4778_v13 = vpop.permute.xlu0 %4777  ;;  %v4780_v18 = vpop.permute.xlu1 %4779 }
 0x943   : > { %v4784_v60 = vsel %vm1223_vm11, %v4778_v13, %v4780_v18 }
 0x944   : > { %v4788_v20 = vsel %vm6185_vm4, %v4784_v60, 0.0 }
 0x945   : > { %v4790_v52 = vadd.f32 %v4788_v20, %v4760_v5 }
 0x946   : > { %v4782_v7 = vpop.permute.xlu0 %4781  ;;  %v4808_v39 = vpop.permute.xlu1 %4807 }
 0x947   : > { %v4785_v53 = vsel %vm1223_vm11, %v4780_v18, %v4782_v7  ;;  %vm8598_vm11 = vmmov %vm8540_vm13 }
 0x948   : > { %v4789_v42 = vsel %vm6190_vm5, %v4785_v53, 0.0 }
 0x949   : > { %v4791_v31 = vadd.f32 %v4789_v42, %v4761_v54  ;;  %v8602_v42 = vlaneseq }
 0x94a   : > { %v4810_v46 = vpop.permute.xlu0 %4809  ;;  %v4812_v58 = vpop.permute.xlu1 %4811 }
 0x94b   : > { %v4814_v19 = vsel %vm8590_vm12, %v4808_v39, %v4810_v46  ;;  %v4815_v51 = vsel %vm8591_vm3, %v4810_v46, %v4812_v58 }
 0x94c   : > { %v4818_v32 = vsel %vm6194_vm6, %v4814_v19, 0.0  ;;  %v4819_v59 = vsel %vm6198_vm7, %v4815_v51, 0.0 }
 0x94d   : > { %v4820_v49 = vadd.f32 %v4818_v32, %v4790_v52  ;;  %v4821_v30 = vadd.f32 %v4819_v59, %v4791_v31 }
 0x94e   : > { %v4838_v0 = vpop.permute.xlu0 %4837  ;;  %v4840_v3 = vpop.permute.xlu1 %4839 }
 0x94f   : > { %v4844_v27 = vsel %vm1553_vm14, %v4838_v0, %v4840_v3 }
 0x950   : > { %v4848_v50 = vadd.f32 %v4844_v27, %v4820_v49 }
 0x952   : > { %v4842_v25 = vpop.permute.xlu0 %4841  ;;  %v4866_v33 = vpop.permute.xlu1 %4865 }
 0x953   : > { %v4845_v6 = vsel %vm1553_vm14, %v4840_v3, %v4842_v25  ;;  %vm8599_vm14 = vmmov %vm8598_vm11 }
 0x954   : > { %v4849_v10 = vadd.f32 %v4845_v6, %v4821_v30 }
 0x956   : > { %v4868_v16 = vpop.permute.xlu0 %4867  ;;  %v4870_v23 = vpop.permute.xlu1 %4869 }
 0x957   : > { %v4873_v12 = vsel %vm1718_vm0, %v4868_v16, %v4870_v23  ;;  %v4872_v36 = vsel %vm1718_vm0, %v4866_v33, %v4868_v16  ;;  %vm8600_vm0 = vmmov %vm8539_vm9 }
 0x958   : > { %v4877_v61 = vsel %vm6190_vm5, %v4873_v12, 0.0  ;;  %v4876_v29 = vsel %vm6185_vm4, %v4872_v36, 0.0  ;;  %vm8601_vm9 = vmmov %vm8600_vm0 }
 0x959   : > { %v4879_v28 = vadd.f32 %v4877_v61, %v4849_v10  ;;  %v4878_v47 = vadd.f32 %v4876_v29, %v4848_v50 }
 0x95a   : > { %v4896_v48 = vpop.permute.xlu0 %4895  ;;  %v4898_v9 = vpop.permute.xlu1 %4897 }
 0x95b   : > { %v4902_v55 = vsel %vm8597_vm10, %v4896_v48, %v4898_v9 }
 0x95c   : > { %v4906_v15 = vsel %vm6194_vm6, %v4902_v55, 0.0 }
 0x95d   : > { %v4908_v7 = vadd.f32 %v4906_v15, %v4878_v47 }
 0x95e   : > { %v4926_v1 = vpop.permute.xlu1 %4925  ;;  %v4900_v62 = vpop.permute.xlu0 %4899 }
 0x95f   : > { %v4903_v11 = vsel %vm8596_vm8, %v4898_v9, %v4900_v62 }
 0x960   : > { %v4907_v38 = vsel %vm6198_vm7, %v4903_v11, 0.0 }
 0x961   : > { %v4909_v37 = vadd.f32 %v4907_v38, %v4879_v28 }
 0x962   : > { %v4930_v45 = vpop.permute.xlu1 %4929  ;;  %v4928_v40 = vpop.permute.xlu0 %4927 }
 0x963   : > { %v4932_v13 = vsel %vm8600_vm0, %v4926_v1, %v4928_v40  ;;  %v4933_v18 = vsel %vm8601_vm9, %v4928_v40, %v4930_v45 }
 0x964   : > { %v4936_v58 = vadd.f32 %v4932_v13, %v4908_v7  ;;  %v4937_v0 = vadd.f32 %v4933_v18, %v4909_v37 }
 0x966   : > { %v4954_v4 = vpop.permute.xlu1 %4953  ;;  %v4958_v34 = vpop.permute.xlu0 %4957 }
 0x96a   : > { %v4956_v8 = vpop.permute.xlu1 %4955 }
 0x96b   : > { %v4960_v22 = vsel %vm8598_vm11, %v4954_v4, %v4956_v8  ;;  %v4961_v35 = vsel %vm8599_vm14, %v4956_v8, %v4958_v34 }
 0x96c   : > { %v4964_v39 = vsel %vm6185_vm4, %v4960_v22, 0.0  ;;  %v4965_v46 = vsel %vm6190_vm5, %v4961_v35, 0.0  ;;  %vm5015_vm4 = vcmp.lt.s32.totalorder %v8602_v42, 256 }
 0x96d   : > { %v4966_v3 = vadd.f32 %v4964_v39, %v4936_v58  ;;  %v4967_v25 = vadd.f32 %v4965_v46, %v4937_v0 }
 0x96f   : > { %v4973_v33 = vmul.f32 %v8281_v41, %v4966_v3  ;;  %v4974_v16 = vmul.f32 %v8281_v41, %v4967_v25  ;;  %v4999_v41 = vunpack.c.l.s4 %v5936_v14 }
 0x971   : > { %v5000_v21 = vunpack.c.0.s8 %v4999_v41 }
 0x973   : > { %v5003_v43 = vsub.s32 %v5000_v21, %v8583_v63 }
 0x977   : > { %v4977_v23 = vpop.permute.xlu1 %4976 }
 0x978   : > { %v4979_v48 = vadd.f32 %v4977_v23, %v4973_v33  ;;  %v4980_v9 = vadd.f32 %v4977_v23, %v4974_v16 }
 0x97a   : > { %v4981_v56 = vmax.f32 %v4979_v48, 0.0  ;;  %v4982_v44 = vmax.f32 %v4980_v9, 0.0 }
 0x97c   : > { %v4983_v60 = vsub.f32 0.0, %v4981_v56  ;;  %v4984_v53 = vsub.f32 0.0, %v4982_v44 }
 0x97e   : > { %v4985_v1 = vmul.f32 1.442695, %v4983_v60  ;;  %v4987_v2 = vmul.f32 1.442695, %v4984_v53 }
 0x980   : > { %5800 = vpow2.f32 %v4985_v1 }
 0x981   : > { %5802 = vpow2.f32 %v4987_v2 }
 0x98d   : > { %v5801_v24 = vpop.eup %5800 }
 0x98e   : > { %v5803_v62 = vpop.eup %5802  ;;  %v4989_v19 = vadd.f32 1.0, %v5801_v24 }
 0x98f   : > { %v4990_v51 = vadd.f32 1.0, %v5803_v62 }
 0x990   : > { %5804 = vrcp.f32 %v4989_v19 }
 0x991   : > { %5806 = vrcp.f32 %v4990_v51 }
 0x99d   : > { %v5805_v26 = vpop.eup %5804 }
 0x99e   : > { %v5807_v57 = vpop.eup %5806 }
 0x99f   : > { %v4997_v20 = vcombine.low %v5805_v26, %v5807_v57 }
 0x9a1   : > { %v5004_v17 = vrot.slane %v4997_v20, %v5003_v43 }
 0x9a3   : > { %v5011_v5 = vrot.slane %v5004_v17, %v5003_v43 }
 0x9a5   : > { %5017 = vst.msk [vmem:[%s8603_s15] sm:$0x3] %vm5015_vm4, %v5011_v5 }
 0x9a6 PF: > { %s5522_s16 = sshll.u32 %s5896_s22, 5  ;;  %s8604_s17 = scalar_lea.vmem [#allocation5], %s6053_s7 }
 0x9a7   : > { %s5031_s14 = scalar_lea.hbm %s8384_s5, %s5522_s16  ;;  %s5033_s21 = sshll.u32 %s8604_s17, 4  ;;  %s5034_s21 = int_to_ptr.vmem [resolvable:$true] %s5033_s21 }
 0x9a8   : > { %s8605_s26 = sand.u32 1, %s5884_s19   ;;  %s5816_s10 = scalar_lea.vmem %s5034_s21, 32 }
 0x9a9   : > { %s5019_s27 = scalar_lea.sflag [#allocation6], %s8605_s26  ;;  %p5817_p4 = scmp.ne.s32.totalorder %s5034_s21, %s5816_s10 }
 0x9aa   : > { %s5937_s8 = smov [#allocation5]  }
 0x9ab   : > { %p5818_p5 = pnand %p5817_p4, %p6017_p3  ;;  %s5820_s11 = sshll.u32 %s5937_s8, 4  ;;  %s5821_s11 = int_to_ptr.vmem [resolvable:$false] %s5820_s11 }
 0x9ac   : > { %s5822_s15 = scalar_lea.vmem %s5821_s11, 64  ;;  %p5823_p7 = scmp.lt.s32.totalorder %s5034_s21, %s5821_s11 }
 0x9ad   : > { %p5819_p6 = pneg %p5818_p5  ;;  %p5824_p8 = scmp.lt.s32.totalorder %s5822_s15, %s5816_s10 }
 0x9af   : > { %p5825_p10 = por %p5824_p8, %p5823_p7 }
 0x9b1   : > { %p5826_p11 = pnand %p5825_p10, %p5819_p6 }
 0x9b3   : > { %5829 = shalt.err (!%p5826_p11)
}
 0x9b4   : > { %s5830_s22 = scalar_lea.hbm %s5031_s14, 32  ;;  %s5834_s13 = scalar_lea.hbm %s8384_s5, 64 }
 0x9b5   : > { %p5831_p12 = scmp.ne.s32.totalorder %s5031_s14, %s5830_s22  ;;  %p5835_p1 = scmp.lt.s32.totalorder %s5031_s14, %s8384_s5 }
 0x9b6   : > { %p5836_p2 = scmp.lt.s32.totalorder %s5834_s13, %s5830_s22 }
 0x9b7   : > { %p5832_p13 = pnand %p5831_p12, %p6017_p3 }
 0x9b8   : > { %p5837_p4 = por %p5836_p2, %p5835_p1 }
 0x9b9   : > { %p5833_p0 = pneg %p5832_p13 }
 0x9bb   : > { %p5838_p5 = pnand %p5837_p4, %p5833_p0 }
 0x9bd   : > { %5841 = shalt.err (!%p5838_p5)
}
 0x9be   : > { %5539 = dma.vmem_to_hbm [thread:$0]  (%p6017_p3), %s5034_s21, 32, %s5031_s14, %s5019_s27  }
 0x9bf PF: > { %p5545_p6 = scmp.ge.s32.totalorder %s5908_s25, 2  ;;  %s5045_s26 = sand.u32 1, %s5880_s18  }
 0x9c0   : > { %s5046_s10 = scalar_lea.sflag [#allocation6], %s5045_s26 }
 0x9c1   : > { %p5542_p7 = pnand %p5545_p6, %p6027_p9 }
 0x9c3   : > { %p5543_p8 = pneg %p5542_p7 }
 0x9c5   : > { %5875 = dma.done.wait (%p5543_p8), %s5046_s10, 32  }
 0x9c6   : > { %5877 = vsyncadd (%p5543_p8), %s5046_s10, 4294967264  ;;  %s18_s25 = sadd.s32 1, %s5908_s25   ;;  %s8606_s18 = smov %s5884_s19 }
 0x9c7   : > { %p15_p10 = scmp.ge.s32.totalorder %s18_s25, 18   ;;  %s8607_s19 = smov %s5888_s20 }
 0x9c8   : > { %s8608_s20 = smov %s6035_s9  ;;  %s8609_s21 = smov %s5900_s23 }
 0x9c9   : > { %s8610_s22 = smov %s5904_s24  ;;  %s8611_s23 = smov %s8614_s28 }
 0x9ca   : > { %s8612_s24 = smov %s8618_s29  ;;  %17 = sbr.rel (!%p15_p10) target bundleno = 5 (0x5), region = 114 }
 0x9cf   :  { %5051 = vsyncpa [#allocation6], 1 }
 0x9d0   :  { %5053 = vsyncpa [#allocation6 + $0x1], 1 }

</bundles_post_ra>
